<compile_context>
chip_gen: v7x
topology: tpu7x:2x2x1
jax: 0.10.0
libtpu: 0.0.40
codegen_flags: <defaults>
</compile_context>

<pallas_src>
import jax
import jax.numpy as jnp
from jax import lax
from jax.experimental import pallas as pl
from jax.experimental.pallas import tpu as pltpu


def _tsgru_kernel(gi_ref, whh_ref, bhh_ref, wc_ref, bc_ref, h0_ref,
                  out_ref, hT_ref, h_ref):
    """One (batch b, F-tile fi, T-tile ti) grid step; feature-major layout.

    gi_ref : (tile_t, 3H, tile_f)  precomputed W_ih·x + b_ih
    whh_ref: (3H, H)   bhh_ref: (3H, 1)
    wc_ref : (Cout, H) bc_ref : (Cout, 1)   1x1 conv folded with BatchNorm(eval)
    h0_ref : (H, tile_f)                    initial rnn state for these rows
    out_ref: (Cout, tile_t, tile_f)         module output block (lane-dense on F)
    hT_ref : (H, tile_f)                    final rnn state (written at last T-tile)
    h_ref  : VMEM scratch (H, tile_f)       hidden state carried across T-tiles
    """
    H = whh_ref.shape[1]
    tile_t = gi_ref.shape[0]
    ti = pl.program_id(2)

    @pl.when(ti == 0)
    def _():
        h_ref[...] = h0_ref[...]

    # loop-invariant loads hoisted out of the unrolled time loop
    whh = whh_ref[...]
    bhh = bhh_ref[...]
    wc = wc_ref[...]
    bc = bc_ref[...]

    h = h_ref[...]                                       # (H, tile_f)
    for i in range(tile_t):                              # static unroll (tile_t small)
        gi = gi_ref[i]                                   # (3H, tile_f)
        # single MXU matmul on the serialized recurrent critical path
        gh = jnp.dot(whh, h, preferred_element_type=jnp.float32) + bhh
        r = jax.nn.sigmoid(gi[0:H] + gh[0:H])            # sublane-aligned gate slices
        z = jax.nn.sigmoid(gi[H:2 * H] + gh[H:2 * H])
        n = jnp.tanh(gi[2 * H:3 * H] + r * gh[2 * H:3 * H])
        h = (1.0 - z) * n + z * h                        # (H, tile_f)
        # fused 1x1 conv + BatchNorm(eval) + ReLU; lane-dense store into (B,Cout,T,F)
        y = jnp.dot(wc, h, preferred_element_type=jnp.float32) + bc
        out_ref[:, i, :] = jnp.maximum(y, 0.0).astype(out_ref.dtype)
    h_ref[...] = h

    @pl.when(ti == pl.num_programs(2) - 1)
    def _():
        hT_ref[...] = h.astype(hT_ref.dtype)


def _pick_tile(n, candidates):
    for c in candidates:
        if n % c == 0:
            return c
    return n


def tsgru_block_pallas(x, rnn_state, params, eps=1e-5):
    """x: (B, C, T, F) f32; rnn_state: (1, B*F, H) f32 or None.
    Returns (output (B, Cout, T, F), rnn_state (1, B*F, H)) like TSGRUBlock.forward."""
    B, C, T, F = x.shape
    w_ih = params["w_ih"].astype(jnp.float32)            # (3H, C)
    w_hh = params["w_hh"].astype(jnp.float32)            # (3H, H)
    b_ih = params["b_ih"].astype(jnp.float32)            # (3H,)
    b_hh = params["b_hh"].astype(jnp.float32)            # (3H,)
    w_conv = params["w_conv"].astype(jnp.float32)        # (Cout, H, 1, 1)
    b_conv = params["b_conv"].astype(jnp.float32)        # (Cout,)
    gamma = params["gamma"].astype(jnp.float32)
    beta = params["beta"].astype(jnp.float32)
    mean = params["running_mean"].astype(jnp.float32)
    var = params["running_var"].astype(jnp.float32)
    H = w_hh.shape[1]
    Cout = w_conv.shape[0]

    # (1) hoisted input projection: one big XLA matmul, laid out feature-major
    #     gi[b, t, g, f] = sum_c w_ih[g, c] * x[b, c, t, f] + b_ih[g]
    gi = jnp.einsum("gc,bctf->btgf", w_ih, x.astype(jnp.float32))
    gi = gi + b_ih[None, None, :, None]                  # (B, T, 3H, F)

    # (2) fold 1x1 conv + eval-mode BatchNorm into a single (Cout, H) affine.
    # TODO(synk): BatchNorm2d is fused in eval mode (running stats); training-mode
    # batch statistics are not computed in-kernel.
    scale = gamma / jnp.sqrt(var + eps)                  # (Cout,)
    wc = w_conv.reshape(Cout, H) * scale[:, None]        # (Cout, H)
    bc = (b_conv * scale + beta - mean * scale).reshape(Cout, 1)

    bhh = b_hh.reshape(3 * H, 1)
    whh = w_hh                                           # used as (3H,H) @ (H,tile_f)

    if rnn_state is None:
        h0 = jnp.zeros((B, H, F), jnp.float32)
    else:
        h0 = jnp.transpose(rnn_state.reshape(B, F, H), (0, 2, 1))   # (B, H, F), tiny

    # tiling: T innermost (recurrent, "arbitrary"); B and F-tiles are independent rows.
    tile_t = _pick_tile(T, (16, 8))
    tile_f = 128 if F % 128 == 0 else F
    grid = (B, F // tile_f, T // tile_t)

    # explicit VMEM budget (double-buffered blocks + weights + scratch), v7x-safe.
    est = 4 * (2 * tile_t * 3 * H * tile_f + 2 * Cout * tile_t * tile_f
               + 5 * H * tile_f + 2 * (3 * H * H + 3 * H + Cout * H + Cout))
    vmem_limit = int(min(48 << 20, max(16 << 20, 2 * est)))

    out, h_last = pl.pallas_call(
        _tsgru_kernel,
        out_shape=(
            jax.ShapeDtypeStruct((B, Cout, T, F), jnp.float32),
            jax.ShapeDtypeStruct((B, H, F), jnp.float32),
        ),
        grid_spec=pltpu.PrefetchScalarGridSpec(
            num_scalar_prefetch=0,
            grid=grid,
            in_specs=[
                pl.BlockSpec((None, tile_t, 3 * H, tile_f),
                             lambda b, fi, ti: (b, ti, 0, fi)),
                pl.BlockSpec((3 * H, H), lambda b, fi, ti: (0, 0)),
                pl.BlockSpec((3 * H, 1), lambda b, fi, ti: (0, 0)),
                pl.BlockSpec((Cout, H), lambda b, fi, ti: (0, 0)),
                pl.BlockSpec((Cout, 1), lambda b, fi, ti: (0, 0)),
                pl.BlockSpec((None, H, tile_f), lambda b, fi, ti: (b, 0, fi)),
            ],
            out_specs=(
                pl.BlockSpec((None, Cout, tile_t, tile_f),
                             lambda b, fi, ti: (b, 0, ti, fi)),
                pl.BlockSpec((None, H, tile_f), lambda b, fi, ti: (b, 0, fi)),
            ),
            scratch_shapes=[pltpu.VMEM((H, tile_f), jnp.float32)],
        ),
        compiler_params=pltpu.CompilerParams(
            dimension_semantics=("parallel", "parallel", "arbitrary"),
            vmem_limit_bytes=vmem_limit),
    )(gi, whh, bhh, wc, bc, h0)

    rnn_out = jnp.transpose(h_last, (0, 2, 1)).reshape(1, B * F, H)  # tiny
    return out, rnn_out


def tsgru_block_ref(x, rnn_state, params, eps=1e-5):
    """Pure-JAX reference mirroring the PyTorch forward (BatchNorm in eval mode)."""
    B, C, T, F = x.shape
    w_ih, w_hh = params["w_ih"], params["w_hh"]
    b_ih, b_hh = params["b_ih"], params["b_hh"]
    H = w_hh.shape[1]
    Cout = params["w_conv"].shape[0]

    x_seq = jnp.transpose(x, (0, 3, 2, 1)).reshape(B * F, T, C)
    h0 = rnn_state[0] if rnn_state is not None else jnp.zeros((B * F, H), jnp.float32)

    def cell(h, x_t):
        gi = x_t @ w_ih.T + b_ih
        gh = h @ w_hh.T + b_hh
        r = jax.nn.sigmoid(gi[:, :H] + gh[:, :H])
        z = jax.nn.sigmoid(gi[:, H:2 * H] + gh[:, H:2 * H])
        n = jnp.tanh(gi[:, 2 * H:] + r * gh[:, 2 * H:])
        h_new = (1.0 - z) * n + z * h
        return h_new, h_new

    h_last, ys = lax.scan(cell, h0, jnp.transpose(x_seq, (1, 0, 2)))
    y = jnp.transpose(ys, (1, 0, 2)).reshape(B, F, T, H)
    y2 = jnp.transpose(y, (0, 3, 2, 1))                       # (B, H, T, F)

    w_conv = params["w_conv"].reshape(Cout, H)
    out = jnp.einsum("oh,bhtf->botf", w_conv, y2) + params["b_conv"][None, :, None, None]
    scale = params["gamma"] / jnp.sqrt(params["running_var"] + eps)
    shift = params["beta"] - params["running_mean"] * scale
    out = out * scale[None, :, None, None] + shift[None, :, None, None]
    return jnp.maximum(out, 0.0), h_last[None]


def make_params(key, in_channels, hidden_size, out_channels):
    kk = jax.random.split(key, 10)
    s = 1.0 / float(hidden_size) ** 0.5
    u = lambda k, shape, b: jax.random.uniform(k, shape, jnp.float32, -b, b)
    return {
        "w_ih": u(kk[0], (3 * hidden_size, in_channels), s),
        "w_hh": u(kk[1], (3 * hidden_size, hidden_size), s),
        "b_ih": u(kk[2], (3 * hidden_size,), s),
        "b_hh": u(kk[3], (3 * hidden_size,), s),
        "w_conv": u(kk[4], (out_channels, hidden_size, 1, 1), s),
        "b_conv": u(kk[5], (out_channels,), s),
        "gamma": jax.random.uniform(kk[6], (out_channels,), jnp.float32, 0.5, 1.5),
        "beta": 0.1 * jax.random.normal(kk[7], (out_channels,), jnp.float32),
        "running_mean": 0.1 * jax.random.normal(kk[8], (out_channels,), jnp.float32),
        "running_var": jax.random.uniform(kk[9], (out_channels,), jnp.float32, 0.5, 1.5),
    }


if __name__ == "__main__":
    # x: (B, in_channels, T, F); GRU input size = in_channels, sequences are the B*F rows.
    B, C, T, F = 2, 4, 32, 16
    hidden_size, out_channels = 32, 8

    key = jax.random.PRNGKey(0)
    kx, kh, kp = jax.random.split(key, 3)
    x = jax.random.normal(kx, (B, C, T, F), jnp.float32)
    rnn_state = 0.1 * jax.random.normal(kh, (1, B * F, hidden_size), jnp.float32)
    params = make_params(kp, C, hidden_size, out_channels)

    out, new_state = jax.jit(tsgru_block_pallas)(x, rnn_state, params)
    jax.block_until_ready((out, new_state))

    out_ref, state_ref = tsgru_block_ref(x, rnn_state, params)

    assert out.shape == (B, out_channels, T, F)
    assert new_state.shape == (1, B * F, hidden_size)
    assert jnp.allclose(out, out_ref, atol=2e-5, rtol=2e-5), (
        float(jnp.max(jnp.abs(out - out_ref))))
    assert jnp.allclose(new_state, state_ref, atol=2e-5, rtol=2e-5), (
        float(jnp.max(jnp.abs(new_state - state_ref))))
    print("KERNEL_OK")
</pallas_src>

<mosaic_0001>
module attributes {stable_mosaic.version = 11 : i64} {
  func.func @_tsgru_kernel(%arg0: i32, %arg1: i32, %arg2: i32, %arg3: memref<1x16x96x16xf32, #tpu.memory_space<vmem>>, %arg4: memref<96x32xf32, #tpu.memory_space<vmem>>, %arg5: memref<96x1xf32, #tpu.memory_space<vmem>>, %arg6: memref<8x32xf32, #tpu.memory_space<vmem>>, %arg7: memref<8x1xf32, #tpu.memory_space<vmem>>, %arg8: memref<1x32x16xf32, #tpu.memory_space<vmem>>, %arg9: memref<1x8x16x16xf32, #tpu.memory_space<vmem>>, %arg10: memref<1x32x16xf32, #tpu.memory_space<vmem>>, %arg11: memref<32x16xf32, #tpu.memory_space<vmem>>) attributes {dimension_semantics = [#tpu.dimension_semantics<parallel>, #tpu.dimension_semantics<parallel>, #tpu.dimension_semantics<arbitrary>], iteration_bounds = array<i64: 2, 1, 2>, scalar_prefetch = 0 : i64, scratch_operands = 1 : i64, tpu.core_type = #tpu.core_type<tc>, window_params = [{transform_indices = @transform_0, window_bounds = array<i64: 1, 16, 96, 16>}, {pipeline_mode = #tpu.pipeline_mode<synchronous>, transform_indices = @transform_1, window_bounds = array<i64: 96, 32>}, {pipeline_mode = #tpu.pipeline_mode<synchronous>, transform_indices = @transform_2, window_bounds = array<i64: 96, 1>}, {pipeline_mode = #tpu.pipeline_mode<synchronous>, transform_indices = @transform_3, window_bounds = array<i64: 8, 32>}, {pipeline_mode = #tpu.pipeline_mode<synchronous>, transform_indices = @transform_4, window_bounds = array<i64: 8, 1>}, {transform_indices = @transform_5, window_bounds = array<i64: 1, 32, 16>}, {transform_indices = @transform_6, window_bounds = array<i64: 1, 8, 16, 16>}, {transform_indices = @transform_7, window_bounds = array<i64: 1, 32, 16>}]} {
    %c0_i32 = arith.constant 0 : i32
    %0 = arith.cmpi eq, %arg2, %c0_i32 : i32
    %1 = arith.extui %0 : i1 to i32
    %c0_i32_0 = arith.constant 0 : i32
    %2 = arith.cmpi ne, %1, %c0_i32_0 : i32
    scf.if %2 {
      %c0_221 = arith.constant 0 : index
      %c0_222 = arith.constant 0 : index
      %c0_223 = arith.constant 0 : index
      %636 = vector.load %arg8[%c0_221, %c0_222, %c0_223] : memref<1x32x16xf32, #tpu.memory_space<vmem>>, vector<1x32x16xf32>
      %637 = vector.shape_cast %636 : vector<1x32x16xf32> to vector<32x16xf32>
      %c0_224 = arith.constant 0 : index
      %c0_225 = arith.constant 0 : index
      %638 = vector.load %arg11[%c0_224, %c0_225] : memref<32x16xf32, #tpu.memory_space<vmem>>, vector<32x16xf32>
      tpu.vector_store %arg11[%c0_224, %c0_225], %637 {strides = array<i32>} : memref<32x16xf32, #tpu.memory_space<vmem>>, vector<32x16xf32>,
    } else {
    }
    %c0 = arith.constant 0 : index
    %c0_1 = arith.constant 0 : index
    %3 = vector.load %arg4[%c0, %c0_1] : memref<96x32xf32, #tpu.memory_space<vmem>>, vector<96x32xf32>
    %c0_2 = arith.constant 0 : index
    %c0_3 = arith.constant 0 : index
    %4 = vector.load %arg5[%c0_2, %c0_3] : memref<96x1xf32, #tpu.memory_space<vmem>>, vector<96x1xf32>
    %c0_4 = arith.constant 0 : index
    %c0_5 = arith.constant 0 : index
    %5 = vector.load %arg6[%c0_4, %c0_5] : memref<8x32xf32, #tpu.memory_space<vmem>>, vector<8x32xf32>
    %c0_6 = arith.constant 0 : index
    %c0_7 = arith.constant 0 : index
    %6 = vector.load %arg7[%c0_6, %c0_7] : memref<8x1xf32, #tpu.memory_space<vmem>>, vector<8x1xf32>
    %c0_8 = arith.constant 0 : index
    %c0_9 = arith.constant 0 : index
    %7 = vector.load %arg11[%c0_8, %c0_9] : memref<32x16xf32, #tpu.memory_space<vmem>>, vector<32x16xf32>
    %c0_10 = arith.constant 0 : index
    %c0_11 = arith.constant 0 : index
    %c0_12 = arith.constant 0 : index
    %c0_13 = arith.constant 0 : index
    %8 = vector.load %arg3[%c0_10, %c0_11, %c0_12, %c0_13] : memref<1x16x96x16xf32, #tpu.memory_space<vmem>>, vector<1x1x96x16xf32>
    %9 = vector.shape_cast %8 : vector<1x1x96x16xf32> to vector<96x16xf32>
    %cst = arith.constant dense<0.000000e+00> : vector<96x16xf32>
    %10 = tpu.matmul %3, %7, %cst {dimension_numbers = #tpu.dot_dimension_numbers<[1], [0], [0], [1], [0, 0, 1, 1], [], []>} : vector<96x32xf32>, vector<32x16xf32>, vector<96x16xf32> -> vector<96x16xf32>
    %11 = vector.broadcast %4 : vector<96x1xf32> to vector<96x16xf32>
    %12 = arith.addf %10, %11 : vector<96x16xf32>
    %13 = vector.extract_strided_slice %9 {offsets = [0, 0], sizes = [32, 16], strides = [1, 1]} : vector<96x16xf32> to vector<32x16xf32>
    %14 = vector.extract_strided_slice %12 {offsets = [0, 0], sizes = [32, 16], strides = [1, 1]} : vector<96x16xf32> to vector<32x16xf32>
    %15 = arith.addf %13, %14 : vector<32x16xf32>
    %16 = arith.negf %15 : vector<32x16xf32>
    %17 = math.exp %16 : vector<32x16xf32>
    %cst_14 = arith.constant 1.000000e+00 : f32
    %18 = vector.broadcast %cst_14 : f32 to vector<32x16xf32>
    %19 = arith.addf %18, %17 : vector<32x16xf32>
    %20 = arith.divf %18, %19 : vector<32x16xf32>
    %21 = vector.extract_strided_slice %9 {offsets = [32, 0], sizes = [32, 16], strides = [1, 1]} : vector<96x16xf32> to vector<32x16xf32>
    %22 = vector.extract_strided_slice %12 {offsets = [32, 0], sizes = [32, 16], strides = [1, 1]} : vector<96x16xf32> to vector<32x16xf32>
    %23 = arith.addf %21, %22 : vector<32x16xf32>
    %24 = arith.negf %23 : vector<32x16xf32>
    %25 = math.exp %24 : vector<32x16xf32>
    %cst_15 = arith.constant 1.000000e+00 : f32
    %26 = vector.broadcast %cst_15 : f32 to vector<32x16xf32>
    %27 = arith.addf %26, %25 : vector<32x16xf32>
    %28 = arith.divf %26, %27 : vector<32x16xf32>
    %29 = vector.extract_strided_slice %9 {offsets = [64, 0], sizes = [32, 16], strides = [1, 1]} : vector<96x16xf32> to vector<32x16xf32>
    %30 = vector.extract_strided_slice %12 {offsets = [64, 0], sizes = [32, 16], strides = [1, 1]} : vector<96x16xf32> to vector<32x16xf32>
    %31 = arith.mulf %20, %30 : vector<32x16xf32>
    %32 = arith.addf %29, %31 : vector<32x16xf32>
    %33 = math.tanh %32 : vector<32x16xf32>
    %cst_16 = arith.constant 1.000000e+00 : f32
    %34 = vector.broadcast %cst_16 : f32 to vector<32x16xf32>
    %35 = arith.subf %34, %28 : vector<32x16xf32>
    %36 = arith.mulf %35, %33 : vector<32x16xf32>
    %37 = arith.mulf %28, %7 : vector<32x16xf32>
    %38 = arith.addf %36, %37 : vector<32x16xf32>
    %cst_17 = arith.constant dense<0.000000e+00> : vector<8x16xf32>
    %39 = tpu.matmul %5, %38, %cst_17 {dimension_numbers = #tpu.dot_dimension_numbers<[1], [0], [0], [1], [0, 0, 1, 1], [], []>} : vector<8x32xf32>, vector<32x16xf32>, vector<8x16xf32> -> vector<8x16xf32>
    %40 = vector.broadcast %6 : vector<8x1xf32> to vector<8x16xf32>
    %41 = arith.addf %39, %40 : vector<8x16xf32>
    %cst_18 = arith.constant 0.000000e+00 : f32
    %42 = vector.broadcast %cst_18 : f32 to vector<8x16xf32>
    %43 = arith.maximumf %41, %42 : vector<8x16xf32>
    %c0_19 = arith.constant 0 : index
    %c0_20 = arith.constant 0 : index
    %c0_21 = arith.constant 0 : index
    %c0_22 = arith.constant 0 : index
    %44 = vector.load %arg9[%c0_19, %c0_20, %c0_21, %c0_22] : memref<1x8x16x16xf32, #tpu.memory_space<vmem>>, vector<1x8x1x16xf32>
    %45 = vector.shape_cast %44 : vector<1x8x1x16xf32> to vector<8x16xf32>
    %46 = vector.shape_cast %43 : vector<8x16xf32> to vector<1x8x1x16xf32>
    tpu.vector_store %arg9[%c0_19, %c0_20, %c0_21, %c0_22], %46 {strides = array<i32>} : memref<1x8x16x16xf32, #tpu.memory_space<vmem>>, vector<1x8x1x16xf32>,
    %c0_23 = arith.constant 0 : index
    %c1 = arith.constant 1 : index
    %c0_24 = arith.constant 0 : index
    %c0_25 = arith.constant 0 : index
    %47 = vector.load %arg3[%c0_23, %c1, %c0_24, %c0_25] : memref<1x16x96x16xf32, #tpu.memory_space<vmem>>, vector<1x1x96x16xf32>
    %48 = vector.shape_cast %47 : vector<1x1x96x16xf32> to vector<96x16xf32>
    %cst_26 = arith.constant dense<0.000000e+00> : vector<96x16xf32>
    %49 = tpu.matmul %3, %38, %cst_26 {dimension_numbers = #tpu.dot_dimension_numbers<[1], [0], [0], [1], [0, 0, 1, 1], [], []>} : vector<96x32xf32>, vector<32x16xf32>, vector<96x16xf32> -> vector<96x16xf32>
    %50 = vector.broadcast %4 : vector<96x1xf32> to vector<96x16xf32>
    %51 = arith.addf %49, %50 : vector<96x16xf32>
    %52 = vector.extract_strided_slice %48 {offsets = [0, 0], sizes = [32, 16], strides = [1, 1]} : vector<96x16xf32> to vector<32x16xf32>
    %53 = vector.extract_strided_slice %51 {offsets = [0, 0], sizes = [32, 16], strides = [1, 1]} : vector<96x16xf32> to vector<32x16xf32>
    %54 = arith.addf %52, %53 : vector<32x16xf32>
    %55 = arith.negf %54 : vector<32x16xf32>
    %56 = math.exp %55 : vector<32x16xf32>
    %cst_27 = arith.constant 1.000000e+00 : f32
    %57 = vector.broadcast %cst_27 : f32 to vector<32x16xf32>
    %58 = arith.addf %57, %56 : vector<32x16xf32>
    %59 = arith.divf %57, %58 : vector<32x16xf32>
    %60 = vector.extract_strided_slice %48 {offsets = [32, 0], sizes = [32, 16], strides = [1, 1]} : vector<96x16xf32> to vector<32x16xf32>
    %61 = vector.extract_strided_slice %51 {offsets = [32, 0], sizes = [32, 16], strides = [1, 1]} : vector<96x16xf32> to vector<32x16xf32>
    %62 = arith.addf %60, %61 : vector<32x16xf32>
    %63 = arith.negf %62 : vector<32x16xf32>
    %64 = math.exp %63 : vector<32x16xf32>
    %cst_28 = arith.constant 1.000000e+00 : f32
    %65 = vector.broadcast %cst_28 : f32 to vector<32x16xf32>
    %66 = arith.addf %65, %64 : vector<32x16xf32>
    %67 = arith.divf %65, %66 : vector<32x16xf32>
    %68 = vector.extract_strided_slice %48 {offsets = [64, 0], sizes = [32, 16], strides = [1, 1]} : vector<96x16xf32> to vector<32x16xf32>
    %69 = vector.extract_strided_slice %51 {offsets = [64, 0], sizes = [32, 16], strides = [1, 1]} : vector<96x16xf32> to vector<32x16xf32>
    %70 = arith.mulf %59, %69 : vector<32x16xf32>
    %71 = arith.addf %68, %70 : vector<32x16xf32>
    %72 = math.tanh %71 : vector<32x16xf32>
    %cst_29 = arith.constant 1.000000e+00 : f32
    %73 = vector.broadcast %cst_29 : f32 to vector<32x16xf32>
    %74 = arith.subf %73, %67 : vector<32x16xf32>
    %75 = arith.mulf %74, %72 : vector<32x16xf32>
    %76 = arith.mulf %67, %38 : vector<32x16xf32>
    %77 = arith.addf %75, %76 : vector<32x16xf32>
    %cst_30 = arith.constant dense<0.000000e+00> : vector<8x16xf32>
    %78 = tpu.matmul %5, %77, %cst_30 {dimension_numbers = #tpu.dot_dimension_numbers<[1], [0], [0], [1], [0, 0, 1, 1], [], []>} : vector<8x32xf32>, vector<32x16xf32>, vector<8x16xf32> -> vector<8x16xf32>
    %79 = vector.broadcast %6 : vector<8x1xf32> to vector<8x16xf32>
    %80 = arith.addf %78, %79 : vector<8x16xf32>
    %cst_31 = arith.constant 0.000000e+00 : f32
    %81 = vector.broadcast %cst_31 : f32 to vector<8x16xf32>
    %82 = arith.maximumf %80, %81 : vector<8x16xf32>
    %c0_32 = arith.constant 0 : index
    %c0_33 = arith.constant 0 : index
    %c1_34 = arith.constant 1 : index
    %c0_35 = arith.constant 0 : index
    %83 = vector.load %arg9[%c0_32, %c0_33, %c1_34, %c0_35] : memref<1x8x16x16xf32, #tpu.memory_space<vmem>>, vector<1x8x1x16xf32>
    %84 = vector.shape_cast %83 : vector<1x8x1x16xf32> to vector<8x16xf32>
    %85 = vector.shape_cast %82 : vector<8x16xf32> to vector<1x8x1x16xf32>
    tpu.vector_store %arg9[%c0_32, %c0_33, %c1_34, %c0_35], %85 {strides = array<i32>} : memref<1x8x16x16xf32, #tpu.memory_space<vmem>>, vector<1x8x1x16xf32>,
    %c0_36 = arith.constant 0 : index
    %c2 = arith.constant 2 : index
    %c0_37 = arith.constant 0 : index
    %c0_38 = arith.constant 0 : index
    %86 = vector.load %arg3[%c0_36, %c2, %c0_37, %c0_38] : memref<1x16x96x16xf32, #tpu.memory_space<vmem>>, vector<1x1x96x16xf32>
    %87 = vector.shape_cast %86 : vector<1x1x96x16xf32> to vector<96x16xf32>
    %cst_39 = arith.constant dense<0.000000e+00> : vector<96x16xf32>
    %88 = tpu.matmul %3, %77, %cst_39 {dimension_numbers = #tpu.dot_dimension_numbers<[1], [0], [0], [1], [0, 0, 1, 1], [], []>} : vector<96x32xf32>, vector<32x16xf32>, vector<96x16xf32> -> vector<96x16xf32>
    %89 = vector.broadcast %4 : vector<96x1xf32> to vector<96x16xf32>
    %90 = arith.addf %88, %89 : vector<96x16xf32>
    %91 = vector.extract_strided_slice %87 {offsets = [0, 0], sizes = [32, 16], strides = [1, 1]} : vector<96x16xf32> to vector<32x16xf32>
    %92 = vector.extract_strided_slice %90 {offsets = [0, 0], sizes = [32, 16], strides = [1, 1]} : vector<96x16xf32> to vector<32x16xf32>
    %93 = arith.addf %91, %92 : vector<32x16xf32>
    %94 = arith.negf %93 : vector<32x16xf32>
    %95 = math.exp %94 : vector<32x16xf32>
    %cst_40 = arith.constant 1.000000e+00 : f32
    %96 = vector.broadcast %cst_40 : f32 to vector<32x16xf32>
    %97 = arith.addf %96, %95 : vector<32x16xf32>
    %98 = arith.divf %96, %97 : vector<32x16xf32>
    %99 = vector.extract_strided_slice %87 {offsets = [32, 0], sizes = [32, 16], strides = [1, 1]} : vector<96x16xf32> to vector<32x16xf32>
    %100 = vector.extract_strided_slice %90 {offsets = [32, 0], sizes = [32, 16], strides = [1, 1]} : vector<96x16xf32> to vector<32x16xf32>
    %101 = arith.addf %99, %100 : vector<32x16xf32>
    %102 = arith.negf %101 : vector<32x16xf32>
    %103 = math.exp %102 : vector<32x16xf32>
    %cst_41 = arith.constant 1.000000e+00 : f32
    %104 = vector.broadcast %cst_41 : f32 to vector<32x16xf32>
    %105 = arith.addf %104, %103 : vector<32x16xf32>
    %106 = arith.divf %104, %105 : vector<32x16xf32>
    %107 = vector.extract_strided_slice %87 {offsets = [64, 0], sizes = [32, 16], strides = [1, 1]} : vector<96x16xf32> to vector<32x16xf32>
    %108 = vector.extract_strided_slice %90 {offsets = [64, 0], sizes = [32, 16], strides = [1, 1]} : vector<96x16xf32> to vector<32x16xf32>
    %109 = arith.mulf %98, %108 : vector<32x16xf32>
    %110 = arith.addf %107, %109 : vector<32x16xf32>
    %111 = math.tanh %110 : vector<32x16xf32>
    %cst_42 = arith.constant 1.000000e+00 : f32
    %112 = vector.broadcast %cst_42 : f32 to vector<32x16xf32>
    %113 = arith.subf %112, %106 : vector<32x16xf32>
    %114 = arith.mulf %113, %111 : vector<32x16xf32>
    %115 = arith.mulf %106, %77 : vector<32x16xf32>
    %116 = arith.addf %114, %115 : vector<32x16xf32>
    %cst_43 = arith.constant dense<0.000000e+00> : vector<8x16xf32>
    %117 = tpu.matmul %5, %116, %cst_43 {dimension_numbers = #tpu.dot_dimension_numbers<[1], [0], [0], [1], [0, 0, 1, 1], [], []>} : vector<8x32xf32>, vector<32x16xf32>, vector<8x16xf32> -> vector<8x16xf32>
    %118 = vector.broadcast %6 : vector<8x1xf32> to vector<8x16xf32>
    %119 = arith.addf %117, %118 : vector<8x16xf32>
    %cst_44 = arith.constant 0.000000e+00 : f32
    %120 = vector.broadcast %cst_44 : f32 to vector<8x16xf32>
    %121 = arith.maximumf %119, %120 : vector<8x16xf32>
    %c0_45 = arith.constant 0 : index
    %c0_46 = arith.constant 0 : index
    %c2_47 = arith.constant 2 : index
    %c0_48 = arith.constant 0 : index
    %122 = vector.load %arg9[%c0_45, %c0_46, %c2_47, %c0_48] : memref<1x8x16x16xf32, #tpu.memory_space<vmem>>, vector<1x8x1x16xf32>
    %123 = vector.shape_cast %122 : vector<1x8x1x16xf32> to vector<8x16xf32>
    %124 = vector.shape_cast %121 : vector<8x16xf32> to vector<1x8x1x16xf32>
    tpu.vector_store %arg9[%c0_45, %c0_46, %c2_47, %c0_48], %124 {strides = array<i32>} : memref<1x8x16x16xf32, #tpu.memory_space<vmem>>, vector<1x8x1x16xf32>,
    %c0_49 = arith.constant 0 : index
    %c3 = arith.constant 3 : index
    %c0_50 = arith.constant 0 : index
    %c0_51 = arith.constant 0 : index
    %125 = vector.load %arg3[%c0_49, %c3, %c0_50, %c0_51] : memref<1x16x96x16xf32, #tpu.memory_space<vmem>>, vector<1x1x96x16xf32>
    %126 = vector.shape_cast %125 : vector<1x1x96x16xf32> to vector<96x16xf32>
    %cst_52 = arith.constant dense<0.000000e+00> : vector<96x16xf32>
    %127 = tpu.matmul %3, %116, %cst_52 {dimension_numbers = #tpu.dot_dimension_numbers<[1], [0], [0], [1], [0, 0, 1, 1], [], []>} : vector<96x32xf32>, vector<32x16xf32>, vector<96x16xf32> -> vector<96x16xf32>
    %128 = vector.broadcast %4 : vector<96x1xf32> to vector<96x16xf32>
    %129 = arith.addf %127, %128 : vector<96x16xf32>
    %130 = vector.extract_strided_slice %126 {offsets = [0, 0], sizes = [32, 16], strides = [1, 1]} : vector<96x16xf32> to vector<32x16xf32>
    %131 = vector.extract_strided_slice %129 {offsets = [0, 0], sizes = [32, 16], strides = [1, 1]} : vector<96x16xf32> to vector<32x16xf32>
    %132 = arith.addf %130, %131 : vector<32x16xf32>
    %133 = arith.negf %132 : vector<32x16xf32>
    %134 = math.exp %133 : vector<32x16xf32>
    %cst_53 = arith.constant 1.000000e+00 : f32
    %135 = vector.broadcast %cst_53 : f32 to vector<32x16xf32>
    %136 = arith.addf %135, %134 : vector<32x16xf32>
    %137 = arith.divf %135, %136 : vector<32x16xf32>
    %138 = vector.extract_strided_slice %126 {offsets = [32, 0], sizes = [32, 16], strides = [1, 1]} : vector<96x16xf32> to vector<32x16xf32>
    %139 = vector.extract_strided_slice %129 {offsets = [32, 0], sizes = [32, 16], strides = [1, 1]} : vector<96x16xf32> to vector<32x16xf32>
    %140 = arith.addf %138, %139 : vector<32x16xf32>
    %141 = arith.negf %140 : vector<32x16xf32>
    %142 = math.exp %141 : vector<32x16xf32>
    %cst_54 = arith.constant 1.000000e+00 : f32
    %143 = vector.broadcast %cst_54 : f32 to vector<32x16xf32>
    %144 = arith.addf %143, %142 : vector<32x16xf32>
    %145 = arith.divf %143, %144 : vector<32x16xf32>
    %146 = vector.extract_strided_slice %126 {offsets = [64, 0], sizes = [32, 16], strides = [1, 1]} : vector<96x16xf32> to vector<32x16xf32>
    %147 = vector.extract_strided_slice %129 {offsets = [64, 0], sizes = [32, 16], strides = [1, 1]} : vector<96x16xf32> to vector<32x16xf32>
    %148 = arith.mulf %137, %147 : vector<32x16xf32>
    %149 = arith.addf %146, %148 : vector<32x16xf32>
    %150 = math.tanh %149 : vector<32x16xf32>
    %cst_55 = arith.constant 1.000000e+00 : f32
    %151 = vector.broadcast %cst_55 : f32 to vector<32x16xf32>
    %152 = arith.subf %151, %145 : vector<32x16xf32>
    %153 = arith.mulf %152, %150 : vector<32x16xf32>
    %154 = arith.mulf %145, %116 : vector<32x16xf32>
    %155 = arith.addf %153, %154 : vector<32x16xf32>
    %cst_56 = arith.constant dense<0.000000e+00> : vector<8x16xf32>
    %156 = tpu.matmul %5, %155, %cst_56 {dimension_numbers = #tpu.dot_dimension_numbers<[1], [0], [0], [1], [0, 0, 1, 1], [], []>} : vector<8x32xf32>, vector<32x16xf32>, vector<8x16xf32> -> vector<8x16xf32>
    %157 = vector.broadcast %6 : vector<8x1xf32> to vector<8x16xf32>
    %158 = arith.addf %156, %157 : vector<8x16xf32>
    %cst_57 = arith.constant 0.000000e+00 : f32
    %159 = vector.broadcast %cst_57 : f32 to vector<8x16xf32>
    %160 = arith.maximumf %158, %159 : vector<8x16xf32>
    %c0_58 = arith.constant 0 : index
    %c0_59 = arith.constant 0 : index
    %c3_60 = arith.constant 3 : index
    %c0_61 = arith.constant 0 : index
    %161 = vector.load %arg9[%c0_58, %c0_59, %c3_60, %c0_61] : memref<1x8x16x16xf32, #tpu.memory_space<vmem>>, vector<1x8x1x16xf32>
    %162 = vector.shape_cast %161 : vector<1x8x1x16xf32> to vector<8x16xf32>
    %163 = vector.shape_cast %160 : vector<8x16xf32> to vector<1x8x1x16xf32>
    tpu.vector_store %arg9[%c0_58, %c0_59, %c3_60, %c0_61], %163 {strides = array<i32>} : memref<1x8x16x16xf32, #tpu.memory_space<vmem>>, vector<1x8x1x16xf32>,
    %c0_62 = arith.constant 0 : index
    %c4 = arith.constant 4 : index
    %c0_63 = arith.constant 0 : index
    %c0_64 = arith.constant 0 : index
    %164 = vector.load %arg3[%c0_62, %c4, %c0_63, %c0_64] : memref<1x16x96x16xf32, #tpu.memory_space<vmem>>, vector<1x1x96x16xf32>
    %165 = vector.shape_cast %164 : vector<1x1x96x16xf32> to vector<96x16xf32>
    %cst_65 = arith.constant dense<0.000000e+00> : vector<96x16xf32>
    %166 = tpu.matmul %3, %155, %cst_65 {dimension_numbers = #tpu.dot_dimension_numbers<[1], [0], [0], [1], [0, 0, 1, 1], [], []>} : vector<96x32xf32>, vector<32x16xf32>, vector<96x16xf32> -> vector<96x16xf32>
    %167 = vector.broadcast %4 : vector<96x1xf32> to vector<96x16xf32>
    %168 = arith.addf %166, %167 : vector<96x16xf32>
    %169 = vector.extract_strided_slice %165 {offsets = [0, 0], sizes = [32, 16], strides = [1, 1]} : vector<96x16xf32> to vector<32x16xf32>
    %170 = vector.extract_strided_slice %168 {offsets = [0, 0], sizes = [32, 16], strides = [1, 1]} : vector<96x16xf32> to vector<32x16xf32>
    %171 = arith.addf %169, %170 : vector<32x16xf32>
    %172 = arith.negf %171 : vector<32x16xf32>
    %173 = math.exp %172 : vector<32x16xf32>
    %cst_66 = arith.constant 1.000000e+00 : f32
    %174 = vector.broadcast %cst_66 : f32 to vector<32x16xf32>
    %175 = arith.addf %174, %173 : vector<32x16xf32>
    %176 = arith.divf %174, %175 : vector<32x16xf32>
    %177 = vector.extract_strided_slice %165 {offsets = [32, 0], sizes = [32, 16], strides = [1, 1]} : vector<96x16xf32> to vector<32x16xf32>
    %178 = vector.extract_strided_slice %168 {offsets = [32, 0], sizes = [32, 16], strides = [1, 1]} : vector<96x16xf32> to vector<32x16xf32>
    %179 = arith.addf %177, %178 : vector<32x16xf32>
    %180 = arith.negf %179 : vector<32x16xf32>
    %181 = math.exp %180 : vector<32x16xf32>
    %cst_67 = arith.constant 1.000000e+00 : f32
    %182 = vector.broadcast %cst_67 : f32 to vector<32x16xf32>
    %183 = arith.addf %182, %181 : vector<32x16xf32>
    %184 = arith.divf %182, %183 : vector<32x16xf32>
    %185 = vector.extract_strided_slice %165 {offsets = [64, 0], sizes = [32, 16], strides = [1, 1]} : vector<96x16xf32> to vector<32x16xf32>
    %186 = vector.extract_strided_slice %168 {offsets = [64, 0], sizes = [32, 16], strides = [1, 1]} : vector<96x16xf32> to vector<32x16xf32>
    %187 = arith.mulf %176, %186 : vector<32x16xf32>
    %188 = arith.addf %185, %187 : vector<32x16xf32>
    %189 = math.tanh %188 : vector<32x16xf32>
    %cst_68 = arith.constant 1.000000e+00 : f32
    %190 = vector.broadcast %cst_68 : f32 to vector<32x16xf32>
    %191 = arith.subf %190, %184 : vector<32x16xf32>
    %192 = arith.mulf %191, %189 : vector<32x16xf32>
    %193 = arith.mulf %184, %155 : vector<32x16xf32>
    %194 = arith.addf %192, %193 : vector<32x16xf32>
    %cst_69 = arith.constant dense<0.000000e+00> : vector<8x16xf32>
    %195 = tpu.matmul %5, %194, %cst_69 {dimension_numbers = #tpu.dot_dimension_numbers<[1], [0], [0], [1], [0, 0, 1, 1], [], []>} : vector<8x32xf32>, vector<32x16xf32>, vector<8x16xf32> -> vector<8x16xf32>
    %196 = vector.broadcast %6 : vector<8x1xf32> to vector<8x16xf32>
    %197 = arith.addf %195, %196 : vector<8x16xf32>
    %cst_70 = arith.constant 0.000000e+00 : f32
    %198 = vector.broadcast %cst_70 : f32 to vector<8x16xf32>
    %199 = arith.maximumf %197, %198 : vector<8x16xf32>
    %c0_71 = arith.constant 0 : index
    %c0_72 = arith.constant 0 : index
    %c4_73 = arith.constant 4 : index
    %c0_74 = arith.constant 0 : index
    %200 = vector.load %arg9[%c0_71, %c0_72, %c4_73, %c0_74] : memref<1x8x16x16xf32, #tpu.memory_space<vmem>>, vector<1x8x1x16xf32>
    %201 = vector.shape_cast %200 : vector<1x8x1x16xf32> to vector<8x16xf32>
    %202 = vector.shape_cast %199 : vector<8x16xf32> to vector<1x8x1x16xf32>
    tpu.vector_store %arg9[%c0_71, %c0_72, %c4_73, %c0_74], %202 {strides = array<i32>} : memref<1x8x16x16xf32, #tpu.memory_space<vmem>>, vector<1x8x1x16xf32>,
    %c0_75 = arith.constant 0 : index
    %c5 = arith.constant 5 : index
    %c0_76 = arith.constant 0 : index
    %c0_77 = arith.constant 0 : index
    %203 = vector.load %arg3[%c0_75, %c5, %c0_76, %c0_77] : memref<1x16x96x16xf32, #tpu.memory_space<vmem>>, vector<1x1x96x16xf32>
    %204 = vector.shape_cast %203 : vector<1x1x96x16xf32> to vector<96x16xf32>
    %cst_78 = arith.constant dense<0.000000e+00> : vector<96x16xf32>
    %205 = tpu.matmul %3, %194, %cst_78 {dimension_numbers = #tpu.dot_dimension_numbers<[1], [0], [0], [1], [0, 0, 1, 1], [], []>} : vector<96x32xf32>, vector<32x16xf32>, vector<96x16xf32> -> vector<96x16xf32>
    %206 = vector.broadcast %4 : vector<96x1xf32> to vector<96x16xf32>
    %207 = arith.addf %205, %206 : vector<96x16xf32>
    %208 = vector.extract_strided_slice %204 {offsets = [0, 0], sizes = [32, 16], strides = [1, 1]} : vector<96x16xf32> to vector<32x16xf32>
    %209 = vector.extract_strided_slice %207 {offsets = [0, 0], sizes = [32, 16], strides = [1, 1]} : vector<96x16xf32> to vector<32x16xf32>
    %210 = arith.addf %208, %209 : vector<32x16xf32>
    %211 = arith.negf %210 : vector<32x16xf32>
    %212 = math.exp %211 : vector<32x16xf32>
    %cst_79 = arith.constant 1.000000e+00 : f32
    %213 = vector.broadcast %cst_79 : f32 to vector<32x16xf32>
    %214 = arith.addf %213, %212 : vector<32x16xf32>
    %215 = arith.divf %213, %214 : vector<32x16xf32>
    %216 = vector.extract_strided_slice %204 {offsets = [32, 0], sizes = [32, 16], strides = [1, 1]} : vector<96x16xf32> to vector<32x16xf32>
    %217 = vector.extract_strided_slice %207 {offsets = [32, 0], sizes = [32, 16], strides = [1, 1]} : vector<96x16xf32> to vector<32x16xf32>
    %218 = arith.addf %216, %217 : vector<32x16xf32>
    %219 = arith.negf %218 : vector<32x16xf32>
    %220 = math.exp %219 : vector<32x16xf32>
    %cst_80 = arith.constant 1.000000e+00 : f32
    %221 = vector.broadcast %cst_80 : f32 to vector<32x16xf32>
    %222 = arith.addf %221, %220 : vector<32x16xf32>
    %223 = arith.divf %221, %222 : vector<32x16xf32>
    %224 = vector.extract_strided_slice %204 {offsets = [64, 0], sizes = [32, 16], strides = [1, 1]} : vector<96x16xf32> to vector<32x16xf32>
    %225 = vector.extract_strided_slice %207 {offsets = [64, 0], sizes = [32, 16], strides = [1, 1]} : vector<96x16xf32> to vector<32x16xf32>
    %226 = arith.mulf %215, %225 : vector<32x16xf32>
    %227 = arith.addf %224, %226 : vector<32x16xf32>
    %228 = math.tanh %227 : vector<32x16xf32>
    %cst_81 = arith.constant 1.000000e+00 : f32
    %229 = vector.broadcast %cst_81 : f32 to vector<32x16xf32>
    %230 = arith.subf %229, %223 : vector<32x16xf32>
    %231 = arith.mulf %230, %228 : vector<32x16xf32>
    %232 = arith.mulf %223, %194 : vector<32x16xf32>
    %233 = arith.addf %231, %232 : vector<32x16xf32>
    %cst_82 = arith.constant dense<0.000000e+00> : vector<8x16xf32>
    %234 = tpu.matmul %5, %233, %cst_82 {dimension_numbers = #tpu.dot_dimension_numbers<[1], [0], [0], [1], [0, 0, 1, 1], [], []>} : vector<8x32xf32>, vector<32x16xf32>, vector<8x16xf32> -> vector<8x16xf32>
    %235 = vector.broadcast %6 : vector<8x1xf32> to vector<8x16xf32>
    %236 = arith.addf %234, %235 : vector<8x16xf32>
    %cst_83 = arith.constant 0.000000e+00 : f32
    %237 = vector.broadcast %cst_83 : f32 to vector<8x16xf32>
    %238 = arith.maximumf %236, %237 : vector<8x16xf32>
    %c0_84 = arith.constant 0 : index
    %c0_85 = arith.constant 0 : index
    %c5_86 = arith.constant 5 : index
    %c0_87 = arith.constant 0 : index
    %239 = vector.load %arg9[%c0_84, %c0_85, %c5_86, %c0_87] : memref<1x8x16x16xf32, #tpu.memory_space<vmem>>, vector<1x8x1x16xf32>
    %240 = vector.shape_cast %239 : vector<1x8x1x16xf32> to vector<8x16xf32>
    %241 = vector.shape_cast %238 : vector<8x16xf32> to vector<1x8x1x16xf32>
    tpu.vector_store %arg9[%c0_84, %c0_85, %c5_86, %c0_87], %241 {strides = array<i32>} : memref<1x8x16x16xf32, #tpu.memory_space<vmem>>, vector<1x8x1x16xf32>,
    %c0_88 = arith.constant 0 : index
    %c6 = arith.constant 6 : index
    %c0_89 = arith.constant 0 : index
    %c0_90 = arith.constant 0 : index
    %242 = vector.load %arg3[%c0_88, %c6, %c0_89, %c0_90] : memref<1x16x96x16xf32, #tpu.memory_space<vmem>>, vector<1x1x96x16xf32>
    %243 = vector.shape_cast %242 : vector<1x1x96x16xf32> to vector<96x16xf32>
    %cst_91 = arith.constant dense<0.000000e+00> : vector<96x16xf32>
    %244 = tpu.matmul %3, %233, %cst_91 {dimension_numbers = #tpu.dot_dimension_numbers<[1], [0], [0], [1], [0, 0, 1, 1], [], []>} : vector<96x32xf32>, vector<32x16xf32>, vector<96x16xf32> -> vector<96x16xf32>
    %245 = vector.broadcast %4 : vector<96x1xf32> to vector<96x16xf32>
    %246 = arith.addf %244, %245 : vector<96x16xf32>
    %247 = vector.extract_strided_slice %243 {offsets = [0, 0], sizes = [32, 16], strides = [1, 1]} : vector<96x16xf32> to vector<32x16xf32>
    %248 = vector.extract_strided_slice %246 {offsets = [0, 0], sizes = [32, 16], strides = [1, 1]} : vector<96x16xf32> to vector<32x16xf32>
    %249 = arith.addf %247, %248 : vector<32x16xf32>
    %250 = arith.negf %249 : vector<32x16xf32>
    %251 = math.exp %250 : vector<32x16xf32>
    %cst_92 = arith.constant 1.000000e+00 : f32
    %252 = vector.broadcast %cst_92 : f32 to vector<32x16xf32>
    %253 = arith.addf %252, %251 : vector<32x16xf32>
    %254 = arith.divf %252, %253 : vector<32x16xf32>
    %255 = vector.extract_strided_slice %243 {offsets = [32, 0], sizes = [32, 16], strides = [1, 1]} : vector<96x16xf32> to vector<32x16xf32>
    %256 = vector.extract_strided_slice %246 {offsets = [32, 0], sizes = [32, 16], strides = [1, 1]} : vector<96x16xf32> to vector<32x16xf32>
    %257 = arith.addf %255, %256 : vector<32x16xf32>
    %258 = arith.negf %257 : vector<32x16xf32>
    %259 = math.exp %258 : vector<32x16xf32>
    %cst_93 = arith.constant 1.000000e+00 : f32
    %260 = vector.broadcast %cst_93 : f32 to vector<32x16xf32>
    %261 = arith.addf %260, %259 : vector<32x16xf32>
    %262 = arith.divf %260, %261 : vector<32x16xf32>
    %263 = vector.extract_strided_slice %243 {offsets = [64, 0], sizes = [32, 16], strides = [1, 1]} : vector<96x16xf32> to vector<32x16xf32>
    %264 = vector.extract_strided_slice %246 {offsets = [64, 0], sizes = [32, 16], strides = [1, 1]} : vector<96x16xf32> to vector<32x16xf32>
    %265 = arith.mulf %254, %264 : vector<32x16xf32>
    %266 = arith.addf %263, %265 : vector<32x16xf32>
    %267 = math.tanh %266 : vector<32x16xf32>
    %cst_94 = arith.constant 1.000000e+00 : f32
    %268 = vector.broadcast %cst_94 : f32 to vector<32x16xf32>
    %269 = arith.subf %268, %262 : vector<32x16xf32>
    %270 = arith.mulf %269, %267 : vector<32x16xf32>
    %271 = arith.mulf %262, %233 : vector<32x16xf32>
    %272 = arith.addf %270, %271 : vector<32x16xf32>
    %cst_95 = arith.constant dense<0.000000e+00> : vector<8x16xf32>
    %273 = tpu.matmul %5, %272, %cst_95 {dimension_numbers = #tpu.dot_dimension_numbers<[1], [0], [0], [1], [0, 0, 1, 1], [], []>} : vector<8x32xf32>, vector<32x16xf32>, vector<8x16xf32> -> vector<8x16xf32>
    %274 = vector.broadcast %6 : vector<8x1xf32> to vector<8x16xf32>
    %275 = arith.addf %273, %274 : vector<8x16xf32>
    %cst_96 = arith.constant 0.000000e+00 : f32
    %276 = vector.broadcast %cst_96 : f32 to vector<8x16xf32>
    %277 = arith.maximumf %275, %276 : vector<8x16xf32>
    %c0_97 = arith.constant 0 : index
    %c0_98 = arith.constant 0 : index
    %c6_99 = arith.constant 6 : index
    %c0_100 = arith.constant 0 : index
    %278 = vector.load %arg9[%c0_97, %c0_98, %c6_99, %c0_100] : memref<1x8x16x16xf32, #tpu.memory_space<vmem>>, vector<1x8x1x16xf32>
    %279 = vector.shape_cast %278 : vector<1x8x1x16xf32> to vector<8x16xf32>
    %280 = vector.shape_cast %277 : vector<8x16xf32> to vector<1x8x1x16xf32>
    tpu.vector_store %arg9[%c0_97, %c0_98, %c6_99, %c0_100], %280 {strides = array<i32>} : memref<1x8x16x16xf32, #tpu.memory_space<vmem>>, vector<1x8x1x16xf32>,
    %c0_101 = arith.constant 0 : index
    %c7 = arith.constant 7 : index
    %c0_102 = arith.constant 0 : index
    %c0_103 = arith.constant 0 : index
    %281 = vector.load %arg3[%c0_101, %c7, %c0_102, %c0_103] : memref<1x16x96x16xf32, #tpu.memory_space<vmem>>, vector<1x1x96x16xf32>
    %282 = vector.shape_cast %281 : vector<1x1x96x16xf32> to vector<96x16xf32>
    %cst_104 = arith.constant dense<0.000000e+00> : vector<96x16xf32>
    %283 = tpu.matmul %3, %272, %cst_104 {dimension_numbers = #tpu.dot_dimension_numbers<[1], [0], [0], [1], [0, 0, 1, 1], [], []>} : vector<96x32xf32>, vector<32x16xf32>, vector<96x16xf32> -> vector<96x16xf32>
    %284 = vector.broadcast %4 : vector<96x1xf32> to vector<96x16xf32>
    %285 = arith.addf %283, %284 : vector<96x16xf32>
    %286 = vector.extract_strided_slice %282 {offsets = [0, 0], sizes = [32, 16], strides = [1, 1]} : vector<96x16xf32> to vector<32x16xf32>
    %287 = vector.extract_strided_slice %285 {offsets = [0, 0], sizes = [32, 16], strides = [1, 1]} : vector<96x16xf32> to vector<32x16xf32>
    %288 = arith.addf %286, %287 : vector<32x16xf32>
    %289 = arith.negf %288 : vector<32x16xf32>
    %290 = math.exp %289 : vector<32x16xf32>
    %cst_105 = arith.constant 1.000000e+00 : f32
    %291 = vector.broadcast %cst_105 : f32 to vector<32x16xf32>
    %292 = arith.addf %291, %290 : vector<32x16xf32>
    %293 = arith.divf %291, %292 : vector<32x16xf32>
    %294 = vector.extract_strided_slice %282 {offsets = [32, 0], sizes = [32, 16], strides = [1, 1]} : vector<96x16xf32> to vector<32x16xf32>
    %295 = vector.extract_strided_slice %285 {offsets = [32, 0], sizes = [32, 16], strides = [1, 1]} : vector<96x16xf32> to vector<32x16xf32>
    %296 = arith.addf %294, %295 : vector<32x16xf32>
    %297 = arith.negf %296 : vector<32x16xf32>
    %298 = math.exp %297 : vector<32x16xf32>
    %cst_106 = arith.constant 1.000000e+00 : f32
    %299 = vector.broadcast %cst_106 : f32 to vector<32x16xf32>
    %300 = arith.addf %299, %298 : vector<32x16xf32>
    %301 = arith.divf %299, %300 : vector<32x16xf32>
    %302 = vector.extract_strided_slice %282 {offsets = [64, 0], sizes = [32, 16], strides = [1, 1]} : vector<96x16xf32> to vector<32x16xf32>
    %303 = vector.extract_strided_slice %285 {offsets = [64, 0], sizes = [32, 16], strides = [1, 1]} : vector<96x16xf32> to vector<32x16xf32>
    %304 = arith.mulf %293, %303 : vector<32x16xf32>
    %305 = arith.addf %302, %304 : vector<32x16xf32>
    %306 = math.tanh %305 : vector<32x16xf32>
    %cst_107 = arith.constant 1.000000e+00 : f32
    %307 = vector.broadcast %cst_107 : f32 to vector<32x16xf32>
    %308 = arith.subf %307, %301 : vector<32x16xf32>
    %309 = arith.mulf %308, %306 : vector<32x16xf32>
    %310 = arith.mulf %301, %272 : vector<32x16xf32>
    %311 = arith.addf %309, %310 : vector<32x16xf32>
    %cst_108 = arith.constant dense<0.000000e+00> : vector<8x16xf32>
    %312 = tpu.matmul %5, %311, %cst_108 {dimension_numbers = #tpu.dot_dimension_numbers<[1], [0], [0], [1], [0, 0, 1, 1], [], []>} : vector<8x32xf32>, vector<32x16xf32>, vector<8x16xf32> -> vector<8x16xf32>
    %313 = vector.broadcast %6 : vector<8x1xf32> to vector<8x16xf32>
    %314 = arith.addf %312, %313 : vector<8x16xf32>
    %cst_109 = arith.constant 0.000000e+00 : f32
    %315 = vector.broadcast %cst_109 : f32 to vector<8x16xf32>
    %316 = arith.maximumf %314, %315 : vector<8x16xf32>
    %c0_110 = arith.constant 0 : index
    %c0_111 = arith.constant 0 : index
    %c7_112 = arith.constant 7 : index
    %c0_113 = arith.constant 0 : index
    %317 = vector.load %arg9[%c0_110, %c0_111, %c7_112, %c0_113] : memref<1x8x16x16xf32, #tpu.memory_space<vmem>>, vector<1x8x1x16xf32>
    %318 = vector.shape_cast %317 : vector<1x8x1x16xf32> to vector<8x16xf32>
    %319 = vector.shape_cast %316 : vector<8x16xf32> to vector<1x8x1x16xf32>
    tpu.vector_store %arg9[%c0_110, %c0_111, %c7_112, %c0_113], %319 {strides = array<i32>} : memref<1x8x16x16xf32, #tpu.memory_space<vmem>>, vector<1x8x1x16xf32>,
    %c0_114 = arith.constant 0 : index
    %c8 = arith.constant 8 : index
    %c0_115 = arith.constant 0 : index
    %c0_116 = arith.constant 0 : index
    %320 = vector.load %arg3[%c0_114, %c8, %c0_115, %c0_116] : memref<1x16x96x16xf32, #tpu.memory_space<vmem>>, vector<1x1x96x16xf32>
    %321 = vector.shape_cast %320 : vector<1x1x96x16xf32> to vector<96x16xf32>
    %cst_117 = arith.constant dense<0.000000e+00> : vector<96x16xf32>
    %322 = tpu.matmul %3, %311, %cst_117 {dimension_numbers = #tpu.dot_dimension_numbers<[1], [0], [0], [1], [0, 0, 1, 1], [], []>} : vector<96x32xf32>, vector<32x16xf32>, vector<96x16xf32> -> vector<96x16xf32>
    %323 = vector.broadcast %4 : vector<96x1xf32> to vector<96x16xf32>
    %324 = arith.addf %322, %323 : vector<96x16xf32>
    %325 = vector.extract_strided_slice %321 {offsets = [0, 0], sizes = [32, 16], strides = [1, 1]} : vector<96x16xf32> to vector<32x16xf32>
    %326 = vector.extract_strided_slice %324 {offsets = [0, 0], sizes = [32, 16], strides = [1, 1]} : vector<96x16xf32> to vector<32x16xf32>
    %327 = arith.addf %325, %326 : vector<32x16xf32>
    %328 = arith.negf %327 : vector<32x16xf32>
    %329 = math.exp %328 : vector<32x16xf32>
    %cst_118 = arith.constant 1.000000e+00 : f32
    %330 = vector.broadcast %cst_118 : f32 to vector<32x16xf32>
    %331 = arith.addf %330, %329 : vector<32x16xf32>
    %332 = arith.divf %330, %331 : vector<32x16xf32>
    %333 = vector.extract_strided_slice %321 {offsets = [32, 0], sizes = [32, 16], strides = [1, 1]} : vector<96x16xf32> to vector<32x16xf32>
    %334 = vector.extract_strided_slice %324 {offsets = [32, 0], sizes = [32, 16], strides = [1, 1]} : vector<96x16xf32> to vector<32x16xf32>
    %335 = arith.addf %333, %334 : vector<32x16xf32>
    %336 = arith.negf %335 : vector<32x16xf32>
    %337 = math.exp %336 : vector<32x16xf32>
    %cst_119 = arith.constant 1.000000e+00 : f32
    %338 = vector.broadcast %cst_119 : f32 to vector<32x16xf32>
    %339 = arith.addf %338, %337 : vector<32x16xf32>
    %340 = arith.divf %338, %339 : vector<32x16xf32>
    %341 = vector.extract_strided_slice %321 {offsets = [64, 0], sizes = [32, 16], strides = [1, 1]} : vector<96x16xf32> to vector<32x16xf32>
    %342 = vector.extract_strided_slice %324 {offsets = [64, 0], sizes = [32, 16], strides = [1, 1]} : vector<96x16xf32> to vector<32x16xf32>
    %343 = arith.mulf %332, %342 : vector<32x16xf32>
    %344 = arith.addf %341, %343 : vector<32x16xf32>
    %345 = math.tanh %344 : vector<32x16xf32>
    %cst_120 = arith.constant 1.000000e+00 : f32
    %346 = vector.broadcast %cst_120 : f32 to vector<32x16xf32>
    %347 = arith.subf %346, %340 : vector<32x16xf32>
    %348 = arith.mulf %347, %345 : vector<32x16xf32>
    %349 = arith.mulf %340, %311 : vector<32x16xf32>
    %350 = arith.addf %348, %349 : vector<32x16xf32>
    %cst_121 = arith.constant dense<0.000000e+00> : vector<8x16xf32>
    %351 = tpu.matmul %5, %350, %cst_121 {dimension_numbers = #tpu.dot_dimension_numbers<[1], [0], [0], [1], [0, 0, 1, 1], [], []>} : vector<8x32xf32>, vector<32x16xf32>, vector<8x16xf32> -> vector<8x16xf32>
    %352 = vector.broadcast %6 : vector<8x1xf32> to vector<8x16xf32>
    %353 = arith.addf %351, %352 : vector<8x16xf32>
    %cst_122 = arith.constant 0.000000e+00 : f32
    %354 = vector.broadcast %cst_122 : f32 to vector<8x16xf32>
    %355 = arith.maximumf %353, %354 : vector<8x16xf32>
    %c0_123 = arith.constant 0 : index
    %c0_124 = arith.constant 0 : index
    %c8_125 = arith.constant 8 : index
    %c0_126 = arith.constant 0 : index
    %356 = vector.load %arg9[%c0_123, %c0_124, %c8_125, %c0_126] : memref<1x8x16x16xf32, #tpu.memory_space<vmem>>, vector<1x8x1x16xf32>
    %357 = vector.shape_cast %356 : vector<1x8x1x16xf32> to vector<8x16xf32>
    %358 = vector.shape_cast %355 : vector<8x16xf32> to vector<1x8x1x16xf32>
    tpu.vector_store %arg9[%c0_123, %c0_124, %c8_125, %c0_126], %358 {strides = array<i32>} : memref<1x8x16x16xf32, #tpu.memory_space<vmem>>, vector<1x8x1x16xf32>,
    %c0_127 = arith.constant 0 : index
    %c9 = arith.constant 9 : index
    %c0_128 = arith.constant 0 : index
    %c0_129 = arith.constant 0 : index
    %359 = vector.load %arg3[%c0_127, %c9, %c0_128, %c0_129] : memref<1x16x96x16xf32, #tpu.memory_space<vmem>>, vector<1x1x96x16xf32>
    %360 = vector.shape_cast %359 : vector<1x1x96x16xf32> to vector<96x16xf32>
    %cst_130 = arith.constant dense<0.000000e+00> : vector<96x16xf32>
    %361 = tpu.matmul %3, %350, %cst_130 {dimension_numbers = #tpu.dot_dimension_numbers<[1], [0], [0], [1], [0, 0, 1, 1], [], []>} : vector<96x32xf32>, vector<32x16xf32>, vector<96x16xf32> -> vector<96x16xf32>
    %362 = vector.broadcast %4 : vector<96x1xf32> to vector<96x16xf32>
    %363 = arith.addf %361, %362 : vector<96x16xf32>
    %364 = vector.extract_strided_slice %360 {offsets = [0, 0], sizes = [32, 16], strides = [1, 1]} : vector<96x16xf32> to vector<32x16xf32>
    %365 = vector.extract_strided_slice %363 {offsets = [0, 0], sizes = [32, 16], strides = [1, 1]} : vector<96x16xf32> to vector<32x16xf32>
    %366 = arith.addf %364, %365 : vector<32x16xf32>
    %367 = arith.negf %366 : vector<32x16xf32>
    %368 = math.exp %367 : vector<32x16xf32>
    %cst_131 = arith.constant 1.000000e+00 : f32
    %369 = vector.broadcast %cst_131 : f32 to vector<32x16xf32>
    %370 = arith.addf %369, %368 : vector<32x16xf32>
    %371 = arith.divf %369, %370 : vector<32x16xf32>
    %372 = vector.extract_strided_slice %360 {offsets = [32, 0], sizes = [32, 16], strides = [1, 1]} : vector<96x16xf32> to vector<32x16xf32>
    %373 = vector.extract_strided_slice %363 {offsets = [32, 0], sizes = [32, 16], strides = [1, 1]} : vector<96x16xf32> to vector<32x16xf32>
    %374 = arith.addf %372, %373 : vector<32x16xf32>
    %375 = arith.negf %374 : vector<32x16xf32>
    %376 = math.exp %375 : vector<32x16xf32>
    %cst_132 = arith.constant 1.000000e+00 : f32
    %377 = vector.broadcast %cst_132 : f32 to vector<32x16xf32>
    %378 = arith.addf %377, %376 : vector<32x16xf32>
    %379 = arith.divf %377, %378 : vector<32x16xf32>
    %380 = vector.extract_strided_slice %360 {offsets = [64, 0], sizes = [32, 16], strides = [1, 1]} : vector<96x16xf32> to vector<32x16xf32>
    %381 = vector.extract_strided_slice %363 {offsets = [64, 0], sizes = [32, 16], strides = [1, 1]} : vector<96x16xf32> to vector<32x16xf32>
    %382 = arith.mulf %371, %381 : vector<32x16xf32>
    %383 = arith.addf %380, %382 : vector<32x16xf32>
    %384 = math.tanh %383 : vector<32x16xf32>
    %cst_133 = arith.constant 1.000000e+00 : f32
    %385 = vector.broadcast %cst_133 : f32 to vector<32x16xf32>
    %386 = arith.subf %385, %379 : vector<32x16xf32>
    %387 = arith.mulf %386, %384 : vector<32x16xf32>
    %388 = arith.mulf %379, %350 : vector<32x16xf32>
    %389 = arith.addf %387, %388 : vector<32x16xf32>
    %cst_134 = arith.constant dense<0.000000e+00> : vector<8x16xf32>
    %390 = tpu.matmul %5, %389, %cst_134 {dimension_numbers = #tpu.dot_dimension_numbers<[1], [0], [0], [1], [0, 0, 1, 1], [], []>} : vector<8x32xf32>, vector<32x16xf32>, vector<8x16xf32> -> vector<8x16xf32>
    %391 = vector.broadcast %6 : vector<8x1xf32> to vector<8x16xf32>
    %392 = arith.addf %390, %391 : vector<8x16xf32>
    %cst_135 = arith.constant 0.000000e+00 : f32
    %393 = vector.broadcast %cst_135 : f32 to vector<8x16xf32>
    %394 = arith.maximumf %392, %393 : vector<8x16xf32>
    %c0_136 = arith.constant 0 : index
    %c0_137 = arith.constant 0 : index
    %c9_138 = arith.constant 9 : index
    %c0_139 = arith.constant 0 : index
    %395 = vector.load %arg9[%c0_136, %c0_137, %c9_138, %c0_139] : memref<1x8x16x16xf32, #tpu.memory_space<vmem>>, vector<1x8x1x16xf32>
    %396 = vector.shape_cast %395 : vector<1x8x1x16xf32> to vector<8x16xf32>
    %397 = vector.shape_cast %394 : vector<8x16xf32> to vector<1x8x1x16xf32>
    tpu.vector_store %arg9[%c0_136, %c0_137, %c9_138, %c0_139], %397 {strides = array<i32>} : memref<1x8x16x16xf32, #tpu.memory_space<vmem>>, vector<1x8x1x16xf32>,
    %c0_140 = arith.constant 0 : index
    %c10 = arith.constant 10 : index
    %c0_141 = arith.constant 0 : index
    %c0_142 = arith.constant 0 : index
    %398 = vector.load %arg3[%c0_140, %c10, %c0_141, %c0_142] : memref<1x16x96x16xf32, #tpu.memory_space<vmem>>, vector<1x1x96x16xf32>
    %399 = vector.shape_cast %398 : vector<1x1x96x16xf32> to vector<96x16xf32>
    %cst_143 = arith.constant dense<0.000000e+00> : vector<96x16xf32>
    %400 = tpu.matmul %3, %389, %cst_143 {dimension_numbers = #tpu.dot_dimension_numbers<[1], [0], [0], [1], [0, 0, 1, 1], [], []>} : vector<96x32xf32>, vector<32x16xf32>, vector<96x16xf32> -> vector<96x16xf32>
    %401 = vector.broadcast %4 : vector<96x1xf32> to vector<96x16xf32>
    %402 = arith.addf %400, %401 : vector<96x16xf32>
    %403 = vector.extract_strided_slice %399 {offsets = [0, 0], sizes = [32, 16], strides = [1, 1]} : vector<96x16xf32> to vector<32x16xf32>
    %404 = vector.extract_strided_slice %402 {offsets = [0, 0], sizes = [32, 16], strides = [1, 1]} : vector<96x16xf32> to vector<32x16xf32>
    %405 = arith.addf %403, %404 : vector<32x16xf32>
    %406 = arith.negf %405 : vector<32x16xf32>
    %407 = math.exp %406 : vector<32x16xf32>
    %cst_144 = arith.constant 1.000000e+00 : f32
    %408 = vector.broadcast %cst_144 : f32 to vector<32x16xf32>
    %409 = arith.addf %408, %407 : vector<32x16xf32>
    %410 = arith.divf %408, %409 : vector<32x16xf32>
    %411 = vector.extract_strided_slice %399 {offsets = [32, 0], sizes = [32, 16], strides = [1, 1]} : vector<96x16xf32> to vector<32x16xf32>
    %412 = vector.extract_strided_slice %402 {offsets = [32, 0], sizes = [32, 16], strides = [1, 1]} : vector<96x16xf32> to vector<32x16xf32>
    %413 = arith.addf %411, %412 : vector<32x16xf32>
    %414 = arith.negf %413 : vector<32x16xf32>
    %415 = math.exp %414 : vector<32x16xf32>
    %cst_145 = arith.constant 1.000000e+00 : f32
    %416 = vector.broadcast %cst_145 : f32 to vector<32x16xf32>
    %417 = arith.addf %416, %415 : vector<32x16xf32>
    %418 = arith.divf %416, %417 : vector<32x16xf32>
    %419 = vector.extract_strided_slice %399 {offsets = [64, 0], sizes = [32, 16], strides = [1, 1]} : vector<96x16xf32> to vector<32x16xf32>
    %420 = vector.extract_strided_slice %402 {offsets = [64, 0], sizes = [32, 16], strides = [1, 1]} : vector<96x16xf32> to vector<32x16xf32>
    %421 = arith.mulf %410, %420 : vector<32x16xf32>
    %422 = arith.addf %419, %421 : vector<32x16xf32>
    %423 = math.tanh %422 : vector<32x16xf32>
    %cst_146 = arith.constant 1.000000e+00 : f32
    %424 = vector.broadcast %cst_146 : f32 to vector<32x16xf32>
    %425 = arith.subf %424, %418 : vector<32x16xf32>
    %426 = arith.mulf %425, %423 : vector<32x16xf32>
    %427 = arith.mulf %418, %389 : vector<32x16xf32>
    %428 = arith.addf %426, %427 : vector<32x16xf32>
    %cst_147 = arith.constant dense<0.000000e+00> : vector<8x16xf32>
    %429 = tpu.matmul %5, %428, %cst_147 {dimension_numbers = #tpu.dot_dimension_numbers<[1], [0], [0], [1], [0, 0, 1, 1], [], []>} : vector<8x32xf32>, vector<32x16xf32>, vector<8x16xf32> -> vector<8x16xf32>
    %430 = vector.broadcast %6 : vector<8x1xf32> to vector<8x16xf32>
    %431 = arith.addf %429, %430 : vector<8x16xf32>
    %cst_148 = arith.constant 0.000000e+00 : f32
    %432 = vector.broadcast %cst_148 : f32 to vector<8x16xf32>
    %433 = arith.maximumf %431, %432 : vector<8x16xf32>
    %c0_149 = arith.constant 0 : index
    %c0_150 = arith.constant 0 : index
    %c10_151 = arith.constant 10 : index
    %c0_152 = arith.constant 0 : index
    %434 = vector.load %arg9[%c0_149, %c0_150, %c10_151, %c0_152] : memref<1x8x16x16xf32, #tpu.memory_space<vmem>>, vector<1x8x1x16xf32>
    %435 = vector.shape_cast %434 : vector<1x8x1x16xf32> to vector<8x16xf32>
    %436 = vector.shape_cast %433 : vector<8x16xf32> to vector<1x8x1x16xf32>
    tpu.vector_store %arg9[%c0_149, %c0_150, %c10_151, %c0_152], %436 {strides = array<i32>} : memref<1x8x16x16xf32, #tpu.memory_space<vmem>>, vector<1x8x1x16xf32>,
    %c0_153 = arith.constant 0 : index
    %c11 = arith.constant 11 : index
    %c0_154 = arith.constant 0 : index
    %c0_155 = arith.constant 0 : index
    %437 = vector.load %arg3[%c0_153, %c11, %c0_154, %c0_155] : memref<1x16x96x16xf32, #tpu.memory_space<vmem>>, vector<1x1x96x16xf32>
    %438 = vector.shape_cast %437 : vector<1x1x96x16xf32> to vector<96x16xf32>
    %cst_156 = arith.constant dense<0.000000e+00> : vector<96x16xf32>
    %439 = tpu.matmul %3, %428, %cst_156 {dimension_numbers = #tpu.dot_dimension_numbers<[1], [0], [0], [1], [0, 0, 1, 1], [], []>} : vector<96x32xf32>, vector<32x16xf32>, vector<96x16xf32> -> vector<96x16xf32>
    %440 = vector.broadcast %4 : vector<96x1xf32> to vector<96x16xf32>
    %441 = arith.addf %439, %440 : vector<96x16xf32>
    %442 = vector.extract_strided_slice %438 {offsets = [0, 0], sizes = [32, 16], strides = [1, 1]} : vector<96x16xf32> to vector<32x16xf32>
    %443 = vector.extract_strided_slice %441 {offsets = [0, 0], sizes = [32, 16], strides = [1, 1]} : vector<96x16xf32> to vector<32x16xf32>
    %444 = arith.addf %442, %443 : vector<32x16xf32>
    %445 = arith.negf %444 : vector<32x16xf32>
    %446 = math.exp %445 : vector<32x16xf32>
    %cst_157 = arith.constant 1.000000e+00 : f32
    %447 = vector.broadcast %cst_157 : f32 to vector<32x16xf32>
    %448 = arith.addf %447, %446 : vector<32x16xf32>
    %449 = arith.divf %447, %448 : vector<32x16xf32>
    %450 = vector.extract_strided_slice %438 {offsets = [32, 0], sizes = [32, 16], strides = [1, 1]} : vector<96x16xf32> to vector<32x16xf32>
    %451 = vector.extract_strided_slice %441 {offsets = [32, 0], sizes = [32, 16], strides = [1, 1]} : vector<96x16xf32> to vector<32x16xf32>
    %452 = arith.addf %450, %451 : vector<32x16xf32>
    %453 = arith.negf %452 : vector<32x16xf32>
    %454 = math.exp %453 : vector<32x16xf32>
    %cst_158 = arith.constant 1.000000e+00 : f32
    %455 = vector.broadcast %cst_158 : f32 to vector<32x16xf32>
    %456 = arith.addf %455, %454 : vector<32x16xf32>
    %457 = arith.divf %455, %456 : vector<32x16xf32>
    %458 = vector.extract_strided_slice %438 {offsets = [64, 0], sizes = [32, 16], strides = [1, 1]} : vector<96x16xf32> to vector<32x16xf32>
    %459 = vector.extract_strided_slice %441 {offsets = [64, 0], sizes = [32, 16], strides = [1, 1]} : vector<96x16xf32> to vector<32x16xf32>
    %460 = arith.mulf %449, %459 : vector<32x16xf32>
    %461 = arith.addf %458, %460 : vector<32x16xf32>
    %462 = math.tanh %461 : vector<32x16xf32>
    %cst_159 = arith.constant 1.000000e+00 : f32
    %463 = vector.broadcast %cst_159 : f32 to vector<32x16xf32>
    %464 = arith.subf %463, %457 : vector<32x16xf32>
    %465 = arith.mulf %464, %462 : vector<32x16xf32>
    %466 = arith.mulf %457, %428 : vector<32x16xf32>
    %467 = arith.addf %465, %466 : vector<32x16xf32>
    %cst_160 = arith.constant dense<0.000000e+00> : vector<8x16xf32>
    %468 = tpu.matmul %5, %467, %cst_160 {dimension_numbers = #tpu.dot_dimension_numbers<[1], [0], [0], [1], [0, 0, 1, 1], [], []>} : vector<8x32xf32>, vector<32x16xf32>, vector<8x16xf32> -> vector<8x16xf32>
    %469 = vector.broadcast %6 : vector<8x1xf32> to vector<8x16xf32>
    %470 = arith.addf %468, %469 : vector<8x16xf32>
    %cst_161 = arith.constant 0.000000e+00 : f32
    %471 = vector.broadcast %cst_161 : f32 to vector<8x16xf32>
    %472 = arith.maximumf %470, %471 : vector<8x16xf32>
    %c0_162 = arith.constant 0 : index
    %c0_163 = arith.constant 0 : index
    %c11_164 = arith.constant 11 : index
    %c0_165 = arith.constant 0 : index
    %473 = vector.load %arg9[%c0_162, %c0_163, %c11_164, %c0_165] : memref<1x8x16x16xf32, #tpu.memory_space<vmem>>, vector<1x8x1x16xf32>
    %474 = vector.shape_cast %473 : vector<1x8x1x16xf32> to vector<8x16xf32>
    %475 = vector.shape_cast %472 : vector<8x16xf32> to vector<1x8x1x16xf32>
    tpu.vector_store %arg9[%c0_162, %c0_163, %c11_164, %c0_165], %475 {strides = array<i32>} : memref<1x8x16x16xf32, #tpu.memory_space<vmem>>, vector<1x8x1x16xf32>,
    %c0_166 = arith.constant 0 : index
    %c12 = arith.constant 12 : index
    %c0_167 = arith.constant 0 : index
    %c0_168 = arith.constant 0 : index
    %476 = vector.load %arg3[%c0_166, %c12, %c0_167, %c0_168] : memref<1x16x96x16xf32, #tpu.memory_space<vmem>>, vector<1x1x96x16xf32>
    %477 = vector.shape_cast %476 : vector<1x1x96x16xf32> to vector<96x16xf32>
    %cst_169 = arith.constant dense<0.000000e+00> : vector<96x16xf32>
    %478 = tpu.matmul %3, %467, %cst_169 {dimension_numbers = #tpu.dot_dimension_numbers<[1], [0], [0], [1], [0, 0, 1, 1], [], []>} : vector<96x32xf32>, vector<32x16xf32>, vector<96x16xf32> -> vector<96x16xf32>
    %479 = vector.broadcast %4 : vector<96x1xf32> to vector<96x16xf32>
    %480 = arith.addf %478, %479 : vector<96x16xf32>
    %481 = vector.extract_strided_slice %477 {offsets = [0, 0], sizes = [32, 16], strides = [1, 1]} : vector<96x16xf32> to vector<32x16xf32>
    %482 = vector.extract_strided_slice %480 {offsets = [0, 0], sizes = [32, 16], strides = [1, 1]} : vector<96x16xf32> to vector<32x16xf32>
    %483 = arith.addf %481, %482 : vector<32x16xf32>
    %484 = arith.negf %483 : vector<32x16xf32>
    %485 = math.exp %484 : vector<32x16xf32>
    %cst_170 = arith.constant 1.000000e+00 : f32
    %486 = vector.broadcast %cst_170 : f32 to vector<32x16xf32>
    %487 = arith.addf %486, %485 : vector<32x16xf32>
    %488 = arith.divf %486, %487 : vector<32x16xf32>
    %489 = vector.extract_strided_slice %477 {offsets = [32, 0], sizes = [32, 16], strides = [1, 1]} : vector<96x16xf32> to vector<32x16xf32>
    %490 = vector.extract_strided_slice %480 {offsets = [32, 0], sizes = [32, 16], strides = [1, 1]} : vector<96x16xf32> to vector<32x16xf32>
    %491 = arith.addf %489, %490 : vector<32x16xf32>
    %492 = arith.negf %491 : vector<32x16xf32>
    %493 = math.exp %492 : vector<32x16xf32>
    %cst_171 = arith.constant 1.000000e+00 : f32
    %494 = vector.broadcast %cst_171 : f32 to vector<32x16xf32>
    %495 = arith.addf %494, %493 : vector<32x16xf32>
    %496 = arith.divf %494, %495 : vector<32x16xf32>
    %497 = vector.extract_strided_slice %477 {offsets = [64, 0], sizes = [32, 16], strides = [1, 1]} : vector<96x16xf32> to vector<32x16xf32>
    %498 = vector.extract_strided_slice %480 {offsets = [64, 0], sizes = [32, 16], strides = [1, 1]} : vector<96x16xf32> to vector<32x16xf32>
    %499 = arith.mulf %488, %498 : vector<32x16xf32>
    %500 = arith.addf %497, %499 : vector<32x16xf32>
    %501 = math.tanh %500 : vector<32x16xf32>
    %cst_172 = arith.constant 1.000000e+00 : f32
    %502 = vector.broadcast %cst_172 : f32 to vector<32x16xf32>
    %503 = arith.subf %502, %496 : vector<32x16xf32>
    %504 = arith.mulf %503, %501 : vector<32x16xf32>
    %505 = arith.mulf %496, %467 : vector<32x16xf32>
    %506 = arith.addf %504, %505 : vector<32x16xf32>
    %cst_173 = arith.constant dense<0.000000e+00> : vector<8x16xf32>
    %507 = tpu.matmul %5, %506, %cst_173 {dimension_numbers = #tpu.dot_dimension_numbers<[1], [0], [0], [1], [0, 0, 1, 1], [], []>} : vector<8x32xf32>, vector<32x16xf32>, vector<8x16xf32> -> vector<8x16xf32>
    %508 = vector.broadcast %6 : vector<8x1xf32> to vector<8x16xf32>
    %509 = arith.addf %507, %508 : vector<8x16xf32>
    %cst_174 = arith.constant 0.000000e+00 : f32
    %510 = vector.broadcast %cst_174 : f32 to vector<8x16xf32>
    %511 = arith.maximumf %509, %510 : vector<8x16xf32>
    %c0_175 = arith.constant 0 : index
    %c0_176 = arith.constant 0 : index
    %c12_177 = arith.constant 12 : index
    %c0_178 = arith.constant 0 : index
    %512 = vector.load %arg9[%c0_175, %c0_176, %c12_177, %c0_178] : memref<1x8x16x16xf32, #tpu.memory_space<vmem>>, vector<1x8x1x16xf32>
    %513 = vector.shape_cast %512 : vector<1x8x1x16xf32> to vector<8x16xf32>
    %514 = vector.shape_cast %511 : vector<8x16xf32> to vector<1x8x1x16xf32>
    tpu.vector_store %arg9[%c0_175, %c0_176, %c12_177, %c0_178], %514 {strides = array<i32>} : memref<1x8x16x16xf32, #tpu.memory_space<vmem>>, vector<1x8x1x16xf32>,
    %c0_179 = arith.constant 0 : index
    %c13 = arith.constant 13 : index
    %c0_180 = arith.constant 0 : index
    %c0_181 = arith.constant 0 : index
    %515 = vector.load %arg3[%c0_179, %c13, %c0_180, %c0_181] : memref<1x16x96x16xf32, #tpu.memory_space<vmem>>, vector<1x1x96x16xf32>
    %516 = vector.shape_cast %515 : vector<1x1x96x16xf32> to vector<96x16xf32>
    %cst_182 = arith.constant dense<0.000000e+00> : vector<96x16xf32>
    %517 = tpu.matmul %3, %506, %cst_182 {dimension_numbers = #tpu.dot_dimension_numbers<[1], [0], [0], [1], [0, 0, 1, 1], [], []>} : vector<96x32xf32>, vector<32x16xf32>, vector<96x16xf32> -> vector<96x16xf32>
    %518 = vector.broadcast %4 : vector<96x1xf32> to vector<96x16xf32>
    %519 = arith.addf %517, %518 : vector<96x16xf32>
    %520 = vector.extract_strided_slice %516 {offsets = [0, 0], sizes = [32, 16], strides = [1, 1]} : vector<96x16xf32> to vector<32x16xf32>
    %521 = vector.extract_strided_slice %519 {offsets = [0, 0], sizes = [32, 16], strides = [1, 1]} : vector<96x16xf32> to vector<32x16xf32>
    %522 = arith.addf %520, %521 : vector<32x16xf32>
    %523 = arith.negf %522 : vector<32x16xf32>
    %524 = math.exp %523 : vector<32x16xf32>
    %cst_183 = arith.constant 1.000000e+00 : f32
    %525 = vector.broadcast %cst_183 : f32 to vector<32x16xf32>
    %526 = arith.addf %525, %524 : vector<32x16xf32>
    %527 = arith.divf %525, %526 : vector<32x16xf32>
    %528 = vector.extract_strided_slice %516 {offsets = [32, 0], sizes = [32, 16], strides = [1, 1]} : vector<96x16xf32> to vector<32x16xf32>
    %529 = vector.extract_strided_slice %519 {offsets = [32, 0], sizes = [32, 16], strides = [1, 1]} : vector<96x16xf32> to vector<32x16xf32>
    %530 = arith.addf %528, %529 : vector<32x16xf32>
    %531 = arith.negf %530 : vector<32x16xf32>
    %532 = math.exp %531 : vector<32x16xf32>
    %cst_184 = arith.constant 1.000000e+00 : f32
    %533 = vector.broadcast %cst_184 : f32 to vector<32x16xf32>
    %534 = arith.addf %533, %532 : vector<32x16xf32>
    %535 = arith.divf %533, %534 : vector<32x16xf32>
    %536 = vector.extract_strided_slice %516 {offsets = [64, 0], sizes = [32, 16], strides = [1, 1]} : vector<96x16xf32> to vector<32x16xf32>
    %537 = vector.extract_strided_slice %519 {offsets = [64, 0], sizes = [32, 16], strides = [1, 1]} : vector<96x16xf32> to vector<32x16xf32>
    %538 = arith.mulf %527, %537 : vector<32x16xf32>
    %539 = arith.addf %536, %538 : vector<32x16xf32>
    %540 = math.tanh %539 : vector<32x16xf32>
    %cst_185 = arith.constant 1.000000e+00 : f32
    %541 = vector.broadcast %cst_185 : f32 to vector<32x16xf32>
    %542 = arith.subf %541, %535 : vector<32x16xf32>
    %543 = arith.mulf %542, %540 : vector<32x16xf32>
    %544 = arith.mulf %535, %506 : vector<32x16xf32>
    %545 = arith.addf %543, %544 : vector<32x16xf32>
    %cst_186 = arith.constant dense<0.000000e+00> : vector<8x16xf32>
    %546 = tpu.matmul %5, %545, %cst_186 {dimension_numbers = #tpu.dot_dimension_numbers<[1], [0], [0], [1], [0, 0, 1, 1], [], []>} : vector<8x32xf32>, vector<32x16xf32>, vector<8x16xf32> -> vector<8x16xf32>
    %547 = vector.broadcast %6 : vector<8x1xf32> to vector<8x16xf32>
    %548 = arith.addf %546, %547 : vector<8x16xf32>
    %cst_187 = arith.constant 0.000000e+00 : f32
    %549 = vector.broadcast %cst_187 : f32 to vector<8x16xf32>
    %550 = arith.maximumf %548, %549 : vector<8x16xf32>
    %c0_188 = arith.constant 0 : index
    %c0_189 = arith.constant 0 : index
    %c13_190 = arith.constant 13 : index
    %c0_191 = arith.constant 0 : index
    %551 = vector.load %arg9[%c0_188, %c0_189, %c13_190, %c0_191] : memref<1x8x16x16xf32, #tpu.memory_space<vmem>>, vector<1x8x1x16xf32>
    %552 = vector.shape_cast %551 : vector<1x8x1x16xf32> to vector<8x16xf32>
    %553 = vector.shape_cast %550 : vector<8x16xf32> to vector<1x8x1x16xf32>
    tpu.vector_store %arg9[%c0_188, %c0_189, %c13_190, %c0_191], %553 {strides = array<i32>} : memref<1x8x16x16xf32, #tpu.memory_space<vmem>>, vector<1x8x1x16xf32>,
    %c0_192 = arith.constant 0 : index
    %c14 = arith.constant 14 : index
    %c0_193 = arith.constant 0 : index
    %c0_194 = arith.constant 0 : index
    %554 = vector.load %arg3[%c0_192, %c14, %c0_193, %c0_194] : memref<1x16x96x16xf32, #tpu.memory_space<vmem>>, vector<1x1x96x16xf32>
    %555 = vector.shape_cast %554 : vector<1x1x96x16xf32> to vector<96x16xf32>
    %cst_195 = arith.constant dense<0.000000e+00> : vector<96x16xf32>
    %556 = tpu.matmul %3, %545, %cst_195 {dimension_numbers = #tpu.dot_dimension_numbers<[1], [0], [0], [1], [0, 0, 1, 1], [], []>} : vector<96x32xf32>, vector<32x16xf32>, vector<96x16xf32> -> vector<96x16xf32>
    %557 = vector.broadcast %4 : vector<96x1xf32> to vector<96x16xf32>
    %558 = arith.addf %556, %557 : vector<96x16xf32>
    %559 = vector.extract_strided_slice %555 {offsets = [0, 0], sizes = [32, 16], strides = [1, 1]} : vector<96x16xf32> to vector<32x16xf32>
    %560 = vector.extract_strided_slice %558 {offsets = [0, 0], sizes = [32, 16], strides = [1, 1]} : vector<96x16xf32> to vector<32x16xf32>
    %561 = arith.addf %559, %560 : vector<32x16xf32>
    %562 = arith.negf %561 : vector<32x16xf32>
    %563 = math.exp %562 : vector<32x16xf32>
    %cst_196 = arith.constant 1.000000e+00 : f32
    %564 = vector.broadcast %cst_196 : f32 to vector<32x16xf32>
    %565 = arith.addf %564, %563 : vector<32x16xf32>
    %566 = arith.divf %564, %565 : vector<32x16xf32>
    %567 = vector.extract_strided_slice %555 {offsets = [32, 0], sizes = [32, 16], strides = [1, 1]} : vector<96x16xf32> to vector<32x16xf32>
    %568 = vector.extract_strided_slice %558 {offsets = [32, 0], sizes = [32, 16], strides = [1, 1]} : vector<96x16xf32> to vector<32x16xf32>
    %569 = arith.addf %567, %568 : vector<32x16xf32>
    %570 = arith.negf %569 : vector<32x16xf32>
    %571 = math.exp %570 : vector<32x16xf32>
    %cst_197 = arith.constant 1.000000e+00 : f32
    %572 = vector.broadcast %cst_197 : f32 to vector<32x16xf32>
    %573 = arith.addf %572, %571 : vector<32x16xf32>
    %574 = arith.divf %572, %573 : vector<32x16xf32>
    %575 = vector.extract_strided_slice %555 {offsets = [64, 0], sizes = [32, 16], strides = [1, 1]} : vector<96x16xf32> to vector<32x16xf32>
    %576 = vector.extract_strided_slice %558 {offsets = [64, 0], sizes = [32, 16], strides = [1, 1]} : vector<96x16xf32> to vector<32x16xf32>
    %577 = arith.mulf %566, %576 : vector<32x16xf32>
    %578 = arith.addf %575, %577 : vector<32x16xf32>
    %579 = math.tanh %578 : vector<32x16xf32>
    %cst_198 = arith.constant 1.000000e+00 : f32
    %580 = vector.broadcast %cst_198 : f32 to vector<32x16xf32>
    %581 = arith.subf %580, %574 : vector<32x16xf32>
    %582 = arith.mulf %581, %579 : vector<32x16xf32>
    %583 = arith.mulf %574, %545 : vector<32x16xf32>
    %584 = arith.addf %582, %583 : vector<32x16xf32>
    %cst_199 = arith.constant dense<0.000000e+00> : vector<8x16xf32>
    %585 = tpu.matmul %5, %584, %cst_199 {dimension_numbers = #tpu.dot_dimension_numbers<[1], [0], [0], [1], [0, 0, 1, 1], [], []>} : vector<8x32xf32>, vector<32x16xf32>, vector<8x16xf32> -> vector<8x16xf32>
    %586 = vector.broadcast %6 : vector<8x1xf32> to vector<8x16xf32>
    %587 = arith.addf %585, %586 : vector<8x16xf32>
    %cst_200 = arith.constant 0.000000e+00 : f32
    %588 = vector.broadcast %cst_200 : f32 to vector<8x16xf32>
    %589 = arith.maximumf %587, %588 : vector<8x16xf32>
    %c0_201 = arith.constant 0 : index
    %c0_202 = arith.constant 0 : index
    %c14_203 = arith.constant 14 : index
    %c0_204 = arith.constant 0 : index
    %590 = vector.load %arg9[%c0_201, %c0_202, %c14_203, %c0_204] : memref<1x8x16x16xf32, #tpu.memory_space<vmem>>, vector<1x8x1x16xf32>
    %591 = vector.shape_cast %590 : vector<1x8x1x16xf32> to vector<8x16xf32>
    %592 = vector.shape_cast %589 : vector<8x16xf32> to vector<1x8x1x16xf32>
    tpu.vector_store %arg9[%c0_201, %c0_202, %c14_203, %c0_204], %592 {strides = array<i32>} : memref<1x8x16x16xf32, #tpu.memory_space<vmem>>, vector<1x8x1x16xf32>,
    %c0_205 = arith.constant 0 : index
    %c15 = arith.constant 15 : index
    %c0_206 = arith.constant 0 : index
    %c0_207 = arith.constant 0 : index
    %593 = vector.load %arg3[%c0_205, %c15, %c0_206, %c0_207] : memref<1x16x96x16xf32, #tpu.memory_space<vmem>>, vector<1x1x96x16xf32>
    %594 = vector.shape_cast %593 : vector<1x1x96x16xf32> to vector<96x16xf32>
    %cst_208 = arith.constant dense<0.000000e+00> : vector<96x16xf32>
    %595 = tpu.matmul %3, %584, %cst_208 {dimension_numbers = #tpu.dot_dimension_numbers<[1], [0], [0], [1], [0, 0, 1, 1], [], []>} : vector<96x32xf32>, vector<32x16xf32>, vector<96x16xf32> -> vector<96x16xf32>
    %596 = vector.broadcast %4 : vector<96x1xf32> to vector<96x16xf32>
    %597 = arith.addf %595, %596 : vector<96x16xf32>
    %598 = vector.extract_strided_slice %594 {offsets = [0, 0], sizes = [32, 16], strides = [1, 1]} : vector<96x16xf32> to vector<32x16xf32>
    %599 = vector.extract_strided_slice %597 {offsets = [0, 0], sizes = [32, 16], strides = [1, 1]} : vector<96x16xf32> to vector<32x16xf32>
    %600 = arith.addf %598, %599 : vector<32x16xf32>
    %601 = arith.negf %600 : vector<32x16xf32>
    %602 = math.exp %601 : vector<32x16xf32>
    %cst_209 = arith.constant 1.000000e+00 : f32
    %603 = vector.broadcast %cst_209 : f32 to vector<32x16xf32>
    %604 = arith.addf %603, %602 : vector<32x16xf32>
    %605 = arith.divf %603, %604 : vector<32x16xf32>
    %606 = vector.extract_strided_slice %594 {offsets = [32, 0], sizes = [32, 16], strides = [1, 1]} : vector<96x16xf32> to vector<32x16xf32>
    %607 = vector.extract_strided_slice %597 {offsets = [32, 0], sizes = [32, 16], strides = [1, 1]} : vector<96x16xf32> to vector<32x16xf32>
    %608 = arith.addf %606, %607 : vector<32x16xf32>
    %609 = arith.negf %608 : vector<32x16xf32>
    %610 = math.exp %609 : vector<32x16xf32>
    %cst_210 = arith.constant 1.000000e+00 : f32
    %611 = vector.broadcast %cst_210 : f32 to vector<32x16xf32>
    %612 = arith.addf %611, %610 : vector<32x16xf32>
    %613 = arith.divf %611, %612 : vector<32x16xf32>
    %614 = vector.extract_strided_slice %594 {offsets = [64, 0], sizes = [32, 16], strides = [1, 1]} : vector<96x16xf32> to vector<32x16xf32>
    %615 = vector.extract_strided_slice %597 {offsets = [64, 0], sizes = [32, 16], strides = [1, 1]} : vector<96x16xf32> to vector<32x16xf32>
    %616 = arith.mulf %605, %615 : vector<32x16xf32>
    %617 = arith.addf %614, %616 : vector<32x16xf32>
    %618 = math.tanh %617 : vector<32x16xf32>
    %cst_211 = arith.constant 1.000000e+00 : f32
    %619 = vector.broadcast %cst_211 : f32 to vector<32x16xf32>
    %620 = arith.subf %619, %613 : vector<32x16xf32>
    %621 = arith.mulf %620, %618 : vector<32x16xf32>
    %622 = arith.mulf %613, %584 : vector<32x16xf32>
    %623 = arith.addf %621, %622 : vector<32x16xf32>
    %cst_212 = arith.constant dense<0.000000e+00> : vector<8x16xf32>
    %624 = tpu.matmul %5, %623, %cst_212 {dimension_numbers = #tpu.dot_dimension_numbers<[1], [0], [0], [1], [0, 0, 1, 1], [], []>} : vector<8x32xf32>, vector<32x16xf32>, vector<8x16xf32> -> vector<8x16xf32>
    %625 = vector.broadcast %6 : vector<8x1xf32> to vector<8x16xf32>
    %626 = arith.addf %624, %625 : vector<8x16xf32>
    %cst_213 = arith.constant 0.000000e+00 : f32
    %627 = vector.broadcast %cst_213 : f32 to vector<8x16xf32>
    %628 = arith.maximumf %626, %627 : vector<8x16xf32>
    %c0_214 = arith.constant 0 : index
    %c0_215 = arith.constant 0 : index
    %c15_216 = arith.constant 15 : index
    %c0_217 = arith.constant 0 : index
    %629 = vector.load %arg9[%c0_214, %c0_215, %c15_216, %c0_217] : memref<1x8x16x16xf32, #tpu.memory_space<vmem>>, vector<1x8x1x16xf32>
    %630 = vector.shape_cast %629 : vector<1x8x1x16xf32> to vector<8x16xf32>
    %631 = vector.shape_cast %628 : vector<8x16xf32> to vector<1x8x1x16xf32>
    tpu.vector_store %arg9[%c0_214, %c0_215, %c15_216, %c0_217], %631 {strides = array<i32>} : memref<1x8x16x16xf32, #tpu.memory_space<vmem>>, vector<1x8x1x16xf32>,
    %c0_218 = arith.constant 0 : index
    %c0_219 = arith.constant 0 : index
    %632 = vector.load %arg11[%c0_218, %c0_219] : memref<32x16xf32, #tpu.memory_space<vmem>>, vector<32x16xf32>
    tpu.vector_store %arg11[%c0_218, %c0_219], %623 {strides = array<i32>} : memref<32x16xf32, #tpu.memory_space<vmem>>, vector<32x16xf32>,
    %c1_i32 = arith.constant 1 : i32
    %633 = arith.cmpi eq, %arg2, %c1_i32 : i32
    %634 = arith.extui %633 : i1 to i32
    %c0_i32_220 = arith.constant 0 : i32
    %635 = arith.cmpi ne, %634, %c0_i32_220 : i32
    scf.if %635 {
      %c0_221 = arith.constant 0 : index
      %c0_222 = arith.constant 0 : index
      %c0_223 = arith.constant 0 : index
      %636 = vector.load %arg10[%c0_221, %c0_222, %c0_223] : memref<1x32x16xf32, #tpu.memory_space<vmem>>, vector<1x32x16xf32>
      %637 = vector.shape_cast %636 : vector<1x32x16xf32> to vector<32x16xf32>
      %638 = vector.shape_cast %623 : vector<32x16xf32> to vector<1x32x16xf32>
      tpu.vector_store %arg10[%c0_221, %c0_222, %c0_223], %638 {strides = array<i32>} : memref<1x32x16xf32, #tpu.memory_space<vmem>>, vector<1x32x16xf32>,
    } else {
    }
    return
  }
  func.func @transform_0(%arg0: i32, %arg1: i32, %arg2: i32) -> (i32, i32, i32, i32) {
    %c0_i32 = arith.constant 0 : i32
    %c0_i32_0 = arith.constant 0 : i32
    return %arg0, %arg2, %c0_i32, %arg1 : i32, i32, i32, i32
  }
  func.func @transform_1(%arg0: i32, %arg1: i32, %arg2: i32) -> (i32, i32) {
    %c0_i32 = arith.constant 0 : i32
    %c0_i32_0 = arith.constant 0 : i32
    %c0_i32_1 = arith.constant 0 : i32
    return %c0_i32, %c0_i32_0 : i32, i32
  }
  func.func @transform_2(%arg0: i32, %arg1: i32, %arg2: i32) -> (i32, i32) {
    %c0_i32 = arith.constant 0 : i32
    %c0_i32_0 = arith.constant 0 : i32
    %c0_i32_1 = arith.constant 0 : i32
    return %c0_i32, %c0_i32_0 : i32, i32
  }
  func.func @transform_3(%arg0: i32, %arg1: i32, %arg2: i32) -> (i32, i32) {
    %c0_i32 = arith.constant 0 : i32
    %c0_i32_0 = arith.constant 0 : i32
    %c0_i32_1 = arith.constant 0 : i32
    return %c0_i32, %c0_i32_0 : i32, i32
  }
  func.func @transform_4(%arg0: i32, %arg1: i32, %arg2: i32) -> (i32, i32) {
    %c0_i32 = arith.constant 0 : i32
    %c0_i32_0 = arith.constant 0 : i32
    %c0_i32_1 = arith.constant 0 : i32
    return %c0_i32, %c0_i32_0 : i32, i32
  }
  func.func @transform_5(%arg0: i32, %arg1: i32, %arg2: i32) -> (i32, i32, i32) {
    %c0_i32 = arith.constant 0 : i32
    %c0_i32_0 = arith.constant 0 : i32
    return %arg0, %c0_i32, %arg1 : i32, i32, i32
  }
  func.func @transform_6(%arg0: i32, %arg1: i32, %arg2: i32) -> (i32, i32, i32, i32) {
    %c0_i32 = arith.constant 0 : i32
    %c0_i32_0 = arith.constant 0 : i32
    return %arg0, %c0_i32, %arg2, %arg1 : i32, i32, i32, i32
  }
  func.func @transform_7(%arg0: i32, %arg1: i32, %arg2: i32) -> (i32, i32, i32) {
    %c0_i32 = arith.constant 0 : i32
    %c0_i32_0 = arith.constant 0 : i32
    return %arg0, %c0_i32, %arg1 : i32, i32, i32
  }
}

</mosaic_0001>

<bundles_post_ra>
// kernel: tsgru_block_pallas.1
= control target key start
LH: loop header
LB: loop body
LE: loop exit
PB: predicated region body
PF: predicated region fallthrough
CT: control target
= control target key end

     0   :  { %s9096_s24 = smov 0   ;;  %s9098_s25 = smov 0   ;;  %s11138_s0 = inlined_call_operand.vmem [shape: f32[2,32,96,16], index: 0, kind: input, shape index: {}]   ;;  %s11139_s1 = inlined_call_operand.vmem [shape: f32[96,32], index: 1, kind: input, shape index: {}]   ;;  %s11140_s2 = inlined_call_operand.vmem [shape: f32[96,1], index: 2, kind: input, shape index: {}]   ;;  %s11141_s3 = inlined_call_operand.vmem [shape: f32[8,32], index: 3, kind: input, shape index: {}]   ;;  %s11142_s4 = inlined_call_operand.vmem [shape: f32[8,1], index: 4, kind: input, shape index: {}]   ;;  %s11143_s5 = inlined_call_operand.vmem [shape: f32[2,32,16], index: 5, kind: input, shape index: {}]   ;;  %s11144_s6 = inlined_call_operand.vmem [shape: f32[2,8,32,16], index: 6, kind: output, shape index: {0}]   ;;  %s11145_s7 = inlined_call_operand.vmem [shape: f32[2,32,16], index: 7, kind: output, shape index: {1}]  }
   0x1   :  { %s9100_s26 = smov 0   ;;  %s9102_s27 = smov 0  }
   0x2   :  { %s9104_s28 = smov 0   ;;  %s9106_s29 = smov 0  }
   0x3   :  { %s9108_s30 = smov 0  }
   0x4 LB: > { %11150 = sst [smem:[#allocation4_spill]] %s9041_s28  ;;  %s30_s8 = sadd.s32 1, %s9041_s28  ;;  %s9049_s30 = sphi %s9108_s30, %s18_s30   ;;  %s9045_s29 = sphi %s9106_s29, %s11160_s29   ;;  %s9041_s28 = sphi %s9104_s28, %s11159_s28   ;;  %s9037_s27 = sphi %s9102_s27, %s11164_s27   ;;  %s9033_s26 = sphi %s9100_s26, %s11163_s26   ;;  %s9029_s25 = sphi %s9098_s25, %s11162_s25   ;;  %s9025_s24 = sphi %s9096_s24, %s11161_s24  }
   0x5   : > { %11151 = sst [smem:[#allocation5_spill]] %s9045_s29  ;;  %p31_p0 = scmp.ge.s32.totalorder %s30_s8, 2 }
   0x6   : > { %s37_s9 = sadd.s32 1, %s9045_s29  ;;  %s6535_s10 = sadd.s32 4294967295, %s9049_s30  }
   0x7   : > { %p200_p1 = scmp.ne.s32.totalorder %s9029_s25, %s9025_s24  ;;  %s11166_s8 = smov (%p31_p0, %s30_s8), 0 }
   0x8   : > { %11152 = sst [smem:[#allocation6_spill]] %s11166_s8  ;;  %s11168_s9 = smov (!%p31_p0, %s37_s9), %s9045_s29 }
   0x9   : > { %s184_s11 = ssub.s32 %s9041_s28, %s11166_s8  ;;  %p201_p2 = scmp.eq.s32.totalorder %s6535_s10, 3 }
   0xa   : > { %p39_p3 = scmp.ge.s32.totalorder %s11168_s9, 2  ;;  %p6539_p4 = scmp.ge.s32.totalorder %s9049_s30, 1 }
   0xb   : > { %p9142_p5 = por %p201_p2, %p200_p1  ;;  %p293_p6 = scmp.lt.s32.totalorder %s9049_s30, 5 }
   0xc   : > { %s11170_s9 = smov (%p39_p3, %s11168_s9), 0  ;;  %s190_s15 = sadd.s32 1, %s9029_s25 }
   0xd   : > { %11154 = sst [smem:[#allocation7_spill]] %s11170_s9  ;;  %p294_p7 = pnand %p6539_p4, %p293_p6 }
   0xe   : > { %s183_s13 = ssub.s32 %s9045_s29, %s11170_s9  ;;  %s335_s17 = sand.u32 (!%p294_p7), 1, %s9025_s24  }
   0xf   : > { %s185_s14 = sor.u32 %s184_s11, %s183_s13  ;;  %297 = sbr.rel (%p294_p7) target bundleno = 4757 (0x1295), region = 44 }
  0x10   : > { %p188_p8 = scmp.eq.s32.totalorder %s185_s14, 0  ;;  %s6541_s18 = sshll.u32 (!%p294_p7), %s9033_s26, 4 }
  0x11   : > { %s6540_s19 = sshll.u32 (!%p294_p7), %s335_s17, 7  ;;  %p349_p9 = scmp.lt.s32.totalorder (!%p294_p7), %s9037_s27, 1 }
  0x12   : > { %s9153_s16 = scalar_select %p188_p8, %s9029_s25, %s190_s15  }
  0x13   : > { %p351_p10 = scmp.lt.s32.totalorder (!%p294_p7), %s6541_s18, 31  ;;  %p6547_p11 = scmp.ne.s32.totalorder (!%p294_p7), %s9033_s26, 0 }
  0x14   : > { %11155 = sst [smem:[#allocation8_spill]] %s9153_s16  ;;  %s9172_s16 = scalar_lea.vmem (!%p294_p7), [#allocation3], %s6540_s19 }
  0x16   : > { %s350_s20 = scalar_select %p349_p9, %s9037_s27, 1 }
  0x17   : > { %s11172_s18 = smov (!%p351_p10, %s6541_s18), 31  ;;  %382 = sbr.rel (%p6547_p11) target bundleno = 30 (0x1e), region = 48 }
  0x18   : > { %s8226_s21 = smul.u32 384, %s350_s20  ;;  %s7071_s22 = sshll.u32 %s350_s20, 5  ;;  %vm387_vm0 = vcmask (!%p6547_p11), 130048  }
  0x19   : > { %s8225_s23 = smul.u32 12, %s11172_s18  ;;  %s369_s13 = scalar_lea.vmem %s11143_s5, %s7071_s22 }
  0x1a   : > { %s9165_s9 = scalar_lea.vmem %s11145_s7, %s7071_s22  ;;  %v383_v0 = vld [vmem:[%s369_s13] sm:$0xff] (!%p6547_p11)  ;;  %v384_v1 = vld [vmem:[%s369_s13 + $0x8] sm:$0xff] (!%p6547_p11)  ;;  %v385_v2 = vld [vmem:[%s369_s13 + $0x10] sm:$0xff] (!%p6547_p11) }
  0x1b   : > { %s358_s8 = sadd.s32 %s8226_s21, %s8225_s23  ;;  %388 = vst.msk [vmem:[#allocation2] sm:$0xff] (!%p6547_p11), %vm387_vm0, %v383_v0  ;;  %389 = vst.msk [vmem:[#allocation2 + $0x8] sm:$0xff] (!%p6547_p11), %vm387_vm0, %v384_v1  ;;  %v386_v3 = vld [vmem:[%s369_s13 + $0x18] sm:$0xff] (!%p6547_p11) }
  0x1c   : > { %s6542_s24 = sshll.u32 %s358_s8, 3  ;;  %390 = vst.msk [vmem:[#allocation2 + $0x10] sm:$0xff] (!%p6547_p11), %vm387_vm0, %v385_v2  ;;  %391 = vst.msk [vmem:[#allocation2 + $0x18] sm:$0xff] (!%p6547_p11), %vm387_vm0, %v386_v3 }
  0x1d   : > { %s9170_s28 = scalar_lea.vmem %s11138_s0, %s6542_s24 }
  0x1e PF: > { %vm494_vm1 = vcmask 261120   ;;  %v9188_v9 = vld [vmem:[%s11139_s1] sm:$0xff]  ;;  %v9051_v10 = vmov 0   ;;  %v406_v13 = vld [vmem:[%s11140_s2 + $0x10] sm:$0xff]  ;;  %v405_v14 = vld [vmem:[%s11140_s2 + $0x8] sm:$0xff]  ;;  %v9052_v36 = vmov 0.0|0.0  }
  0x1f   : > { %8288 = vset.pattern.permute.xlu0 %v9051_v10  ;;  %8289 = vset.pattern.permute.xlu1 %v9051_v10  ;;  %v404_v12 = vld [vmem:[%s11140_s2] sm:$0xff]  ;;  %v9206_v15 = vld [vmem:[%s11139_s1 + $0x8] sm:$0xff]  ;;  %v407_v16 = vld [vmem:[%s11140_s2 + $0x18] sm:$0xff]  ;;  %vm9053_vm2 = vmmov 0   ;;  %v9054_v37 = vmov 0.0   ;;  %vm877_vm3 = vcmask 122880  }
  0x20   : > { %7417 = vmatprep.mubr.msk.f32.mxu0 %vm494_vm1, %v9188_v9  ;;  %436 = vperm.xlu0 %8288, %v404_v12   ;;  %v9214_v17 = vld [vmem:[%s11139_s1 + $0x10] sm:$0xff]  ;;  %v408_v18 = vld [vmem:[%s11140_s2 + $0x20] sm:$0xff]  ;;  %v9226_v19 = vld [vmem:[%s11139_s1 + $0x18] sm:$0xff]  ;;  %vm6271_vm4 = vcmask 130048   ;;  %p7064_p12 = scmp.ne.s32.totalorder %s9033_s26, 1 }
  0x21   : > { %446 = vperm.xlu1 %8289, %v406_v13   ;;  %v409_v20 = vld [vmem:[%s11140_s2 + $0x28] sm:$0xff]  ;;  %v9234_v21 = vld [vmem:[%s11139_s1 + $0x20] sm:$0xff]  ;;  %v410_v22 = vld [vmem:[%s11140_s2 + $0x30] sm:$0xff]  ;;  %8009 = vmatprep.subr.bf16.mxu1 %v9052_v36 }
  0x22   : > { %v9175_v4 = vld [vmem:[#allocation2] sm:$0xff]  ;;  %v9177_v5 = vld [vmem:[#allocation2 + $0x8] sm:$0xff]  ;;  %v411_v24 = vld [vmem:[%s11140_s2 + $0x38] sm:$0xff]  ;;  %7443 = vmatprep.mubr.msk.f32.mxu1 %vm9053_vm2, %v9054_v37 }
  0x23   : > { %v9179_v6 = vld [vmem:[#allocation2 + $0x10] sm:$0xff]  ;;  %v8001_v7 = vpack.c.bf16 %v9177_v5, %v9175_v4  ;;  %v9183_v8 = vld [vmem:[#allocation2 + $0x18] sm:$0xff]  ;;  %v9246_v23 = vld [vmem:[%s11139_s1 + $0x28] sm:$0xff] }
  0x24   : > { %v8005_v11 = vpack.c.bf16 %v9183_v8, %v9179_v6  ;;  %441 = vperm.xlu0 %8288, %v405_v14   ;;  %v9254_v25 = vld [vmem:[%s11139_s1 + $0x30] sm:$0xff]  ;;  %v412_v26 = vld [vmem:[%s11140_s2 + $0x40] sm:$0xff]  ;;  %v9266_v27 = vld [vmem:[%s11139_s1 + $0x38] sm:$0xff] }
  0x25   : > { %8002 = vmatprep.subr.bf16.mxu0 %v8001_v7  ;;  %451 = vperm.xlu1 %8289, %v407_v16   ;;  %v413_v28 = vld [vmem:[%s11140_s2 + $0x48] sm:$0xff]  ;;  %v9274_v29 = vld [vmem:[%s11139_s1 + $0x40] sm:$0xff]  ;;  %v414_v30 = vld [vmem:[%s11140_s2 + $0x50] sm:$0xff] }
  0x26   : > { %8004 = vmatpush3.bf16.msra.mxu0 %v8001_v7  ;;  %v9286_v31 = vld [vmem:[%s11139_s1 + $0x48] sm:$0xff]  ;;  %v415_v32 = vld [vmem:[%s11140_s2 + $0x58] sm:$0xff]  ;;  %v9294_v33 = vld [vmem:[%s11139_s1 + $0x50] sm:$0xff] }
  0x27   : > { %8006 = vmatprep.subr.bf16.mxu0 %v8005_v11  ;;  %v417_v34 = vld [vmem:[%s11142_s4] sm:$0xff]  ;;  %v9306_v35 = vld [vmem:[%s11139_s1 + $0x58] sm:$0xff]  ;;  %v423_v42 = vld [vmem:[%s9170_s28 + $0x8] sm:$0xff] }
  0x28   : > { %456 = vperm.xlu0 %8288, %v408_v18   ;;  %v422_v45 = vld [vmem:[%s9170_s28] sm:$0xff]  ;;  %v425_v50 = vld [vmem:[%s9170_s28 + $0x18] sm:$0xff]  ;;  %v424_v54 = vld [vmem:[%s9170_s28 + $0x10] sm:$0xff] }
  0x29   : > { %461 = vperm.xlu1 %8289, %v409_v20   ;;  %v427_v62 = vld [vmem:[%s9170_s28 + $0x28] sm:$0xff]  ;;  %v426_v2 = vld [vmem:[%s9170_s28 + $0x20] sm:$0xff]  ;;  %v429_v14 = vld [vmem:[%s9170_s28 + $0x38] sm:$0xff] }
  0x2a   : > { %8008 = vmatpush3.bf16.msra.mxu0 %v8005_v11 }
  0x2b   : > { %8023 = vmatprep.subr.bf16.mxu0 %v9052_v36 }
  0x2c   : > { %466 = vperm.xlu0 %8288, %v410_v22  }
  0x2d   : > { %7418 = vmatmul.mubr.msk.f32.vlgmr.msra.gmra.mrb[0].mxu0 %vm494_vm1, %v9206_v15  ;;  %471 = vperm.xlu1 %8289, %v411_v24   ;;  %v428_v24 = vld [vmem:[%s9170_s28 + $0x30] sm:$0xff] }
  0x2e   : > { %7420 = vmatprep.mubr.msk.f32.mxu0 %vm494_vm1, %v9214_v17 }
  0x30   : > { %476 = vperm.xlu0 %8288, %v412_v26  }
  0x31   : > { %7421 = vmatmul.mubr.msk.f32.gmra.mrb[2].mxu0 %vm494_vm1, %v9226_v19  ;;  %481 = vperm.xlu1 %8289, %v413_v28  }
  0x32   : > { %7423 = vmatprep.mubr.msk.f32.mxu0 %vm494_vm1, %v9234_v21 }
  0x34   : > { %486 = vperm.xlu0 %8288, %v414_v30  }
  0x35   : > { %7424 = vmatmul.mubr.msk.f32.gmra.mrb[4].mxu0 %vm494_vm1, %v9246_v23  ;;  %491 = vperm.xlu1 %8289, %v415_v32  }
  0x36   : > { %7426 = vmatprep.mubr.msk.f32.mxu0 %vm494_vm1, %v9254_v25 }
  0x38   : > { %742 = vperm.xlu0 %8288, %v417_v34  }
  0x39   : > { %7427 = vmatmul.mubr.msk.f32.gmra.mrb[6].mxu0 %vm494_vm1, %v9266_v27 }
  0x3a   : > { %7429 = vmatprep.mubr.msk.f32.mxu0 %vm494_vm1, %v9274_v29 }
  0x3d   : > { %7430 = vmatmul.mubr.msk.f32.gmra.mrb[8].mxu0 %vm494_vm1, %v9286_v31 }
  0x3e   : > { %7432 = vmatprep.mubr.msk.f32.mxu0 %vm494_vm1, %v9294_v33 }
  0x41   : > { %7433 = vmatmul.mubr.msk.f32.gmra.mrb[10].mxu0 %vm494_vm1, %v9306_v35 }
  0x42   : > { %7480 = vmatprep.mubr.msk.f32.mxu0 %vm9053_vm2, %v9054_v37 }
  0x9f   : > { %v9316_v38 = vpop.permute.xlu0 %436 }
  0xa0   : > { %v9318_v39 = vpop.permute.xlu1 %446 }
  0xa3   : > { %v9320_v40 = vpop.permute.xlu0 %441 }
  0xa4   : > { %v9322_v41 = vpop.permute.xlu1 %451 }
  0xa7   : > { %v9334_v59 = vpop.permute.xlu0 %456 }
  0xa8   : > { %v9331_v56 = vpop.permute.xlu1 %461 }
  0xab   : > { %v9343_v18 = vpop.permute.xlu0 %466 }
  0xac   : > { %v9340_v12 = vpop.permute.xlu1 %471 }
 0x100   : > { %v7419_v43 = vpop.f32.mrb[0].mxu0 }
 0x101   : > { %v603_v44 = vadd.f32 %v7419_v43, %v9320_v40  ;;  %v597_v46 = vpop.f32.mrb[1].mxu0 }
 0x102   : > { %v598_v47 = vadd.f32 %v597_v46, %v9316_v38 }
 0x103   : > { %v657_v48 = vadd.f32 %v603_v44, %v423_v42 }
 0x104   : > { %v656_v49 = vadd.f32 %v598_v47, %v422_v45  ;;  %v7422_v51 = vpop.f32.mrb[2].mxu0 }
 0x105   : > { %v6561_v52 = vmul.f32 -1.442695, %v657_v48  ;;  %v613_v53 = vadd.f32 %v7422_v51, %v9322_v41  ;;  %v607_v55 = vpop.f32.mrb[3].mxu0 }
 0x106   : > { %v6560_v57 = vmul.f32 -1.442695, %v656_v49  ;;  %v608_v58 = vadd.f32 %v607_v55, %v9318_v39 }
 0x107   : > { %8290 = vpow2.f32 %v6561_v52  ;;  %v659_v60 = vadd.f32 %v613_v53, %v425_v50 }
 0x108   : > { %8292 = vpow2.f32 %v6560_v57  ;;  %v658_v61 = vadd.f32 %v608_v58, %v424_v54  ;;  %v7425_v63 = vpop.f32.mrb[4].mxu0 }
 0x109   : > { %v6563_v0 = vmul.f32 -1.442695, %v659_v60  ;;  %v623_v1 = vadd.f32 %v7425_v63, %v9331_v56  ;;  %v617_v3 = vpop.f32.mrb[5].mxu0  ;;  %v9348_v60 = vpop.permute.xlu1 %481 }
 0x10a   : > { %v6562_v7 = vmul.f32 -1.442695, %v658_v61  ;;  %v618_v10 = vadd.f32 %v617_v3, %v9334_v59  ;;  %v9350_v61 = vpop.permute.xlu0 %476 }
 0x10b   : > { %8294 = vpow2.f32 %v6563_v0  ;;  %v685_v11 = vadd.f32 %v623_v1, %v427_v62 }
 0x10c   : > { %8296 = vpow2.f32 %v6562_v7  ;;  %v684_v13 = vadd.f32 %v618_v10, %v426_v2  ;;  %v7428_v16 = vpop.f32.mrb[6].mxu0  ;;  %v431_v7 = vld [vmem:[%s9170_s28 + $0x48] sm:$0xff] }
 0x10d   : > { %v6565_v20 = vmul.f32 -1.442695, %v685_v11  ;;  %v633_v22 = vadd.f32 %v7428_v16, %v9340_v12  ;;  %v627_v26 = vpop.f32.mrb[7].mxu0 }
 0x10e   : > { %v6564_v28 = vmul.f32 -1.442695, %v684_v13  ;;  %v628_v30 = vadd.f32 %v627_v26, %v9343_v18 }
 0x10f   : > { %8298 = vpow2.f32 %v6565_v20  ;;  %v687_v32 = vadd.f32 %v633_v22, %v429_v14  ;;  %v430_v14 = vld [vmem:[%s9170_s28 + $0x40] sm:$0xff]  ;;  %v9356_v20 = vpop.permute.xlu1 %491 }
 0x110   : > { %8300 = vpow2.f32 %v6564_v28  ;;  %v686_v34 = vadd.f32 %v628_v30, %v428_v24  ;;  %v7431_v42 = vpop.f32.mrb[8].mxu0  ;;  %v9358_v24 = vpop.permute.xlu0 %486 }
 0x111   : > { %v8291_v43 = vpop.eup %8290  ;;  %v6567_v44 = vmul.f32 -1.442695, %v687_v32  ;;  %v637_v45 = vpop.f32.mrb[9].mxu0  ;;  %v643_v1 = vadd.f32 %v7431_v42, %v9348_v60  ;;  %v433_v42 = vld [vmem:[%s9170_s28 + $0x58] sm:$0xff] }
 0x112   : > { %v8293_v46 = vpop.eup %8292  ;;  %v673_v47 = vadd.f32 1.0, %v8291_v43  ;;  %v6566_v48 = vmul.f32 -1.442695, %v686_v34  ;;  %v638_v10 = vadd.f32 %v637_v45, %v9350_v61 }
 0x113   : > { %v672_v49 = vadd.f32 1.0, %v8293_v46  ;;  %8302 = vpow2.f32 %v6567_v44  ;;  %v432_v46 = vld [vmem:[%s9170_s28 + $0x50] sm:$0xff] }
 0x114   : > { %8304 = vrcp.f32 %v673_v47  ;;  %v7434_v50 = vpop.f32.mrb[10].mxu0 }
 0x115   : > { %v8295_v51 = vpop.eup %8294  ;;  %8306 = vrcp.f32 %v672_v49  ;;  %v647_v52 = vpop.f32.mrb[11].mxu0  ;;  %v653_v30 = vadd.f32 %v7434_v50, %v9356_v20 }
 0x116   : > { %v8297_v53 = vpop.eup %8296  ;;  %v675_v54 = vadd.f32 1.0, %v8295_v51  ;;  %8308 = vpow2.f32 %v6566_v48  ;;  %v648_v43 = vadd.f32 %v647_v52, %v9358_v24 }
 0x117   : > { %v674_v55 = vadd.f32 1.0, %v8297_v53 }
 0x118   : > { %8310 = vrcp.f32 %v675_v54 }
 0x119   : > { %v8299_v57 = vpop.eup %8298  ;;  %8312 = vrcp.f32 %v674_v55 }
 0x11a   : > { %v8301_v58 = vpop.eup %8300  ;;  %v701_v62 = vadd.f32 1.0, %v8299_v57 }
 0x11b   : > { %v700_v0 = vadd.f32 1.0, %v8301_v58 }
 0x11c   : > { %8314 = vrcp.f32 %v701_v62 }
 0x11d   : > { %v8303_v63 = vpop.eup %8302  ;;  %8316 = vrcp.f32 %v700_v0 }
 0x11e   : > { %v8305_v2 = vpop.eup %8304  ;;  %v703_v3 = vadd.f32 1.0, %v8303_v63 }
 0x11f   : > { %v8307_v11 = vpop.eup %8306  ;;  %v713_v13 = vmul.f32 %v8305_v2, %v643_v1 }
 0x120   : > { %v8309_v16 = vpop.eup %8308  ;;  %v712_v22 = vmul.f32 %v8307_v11, %v638_v10  ;;  %8318 = vrcp.f32 %v703_v3 }
 0x121   : > { %v702_v26 = vadd.f32 1.0, %v8309_v16  ;;  %v717_v28 = vadd.f32 %v713_v13, %v431_v7 }
 0x122   : > { %v8311_v32 = vpop.eup %8310  ;;  %v716_v34 = vadd.f32 %v712_v22, %v430_v14 }
 0x123   : > { %v8313_v44 = vpop.eup %8312  ;;  %8320 = vrcp.f32 %v702_v26  ;;  %v715_v45 = vmul.f32 %v8311_v32, %v653_v30 }
 0x124   : > { %8322 = vtanh.f32 %v717_v28  ;;  %v714_v47 = vmul.f32 %v8313_v44, %v648_v43  ;;  %v9415_v44 = vpop.permute.xlu0 %742 }
 0x125   : > { %8324 = vtanh.f32 %v716_v34  ;;  %v719_v48 = vadd.f32 %v715_v45, %v433_v42  ;;  %v824_v34 = vlaneseq }
 0x126   : > { %v718_v49 = vadd.f32 %v714_v47, %v432_v46  ;;  %v8315_v51 = vpop.eup %8314 }
 0x127   : > { %8326 = vtanh.f32 %v719_v48  ;;  %v8317_v53 = vpop.eup %8316  ;;  %v725_v55 = vsub.f32 1.0, %v8315_v51  ;;  %v733_v63 = vmul.f32 %v8315_v51, %v9177_v5  ;;  %v825_v43 = vshrl.u32 %v824_v34, 7  ;;  %v6571_v34 = vld [vmem:[%s9170_s28 + $0x70] sm:$0xff] }
 0x128   : > { %8328 = vtanh.f32 %v718_v49  ;;  %v724_v58 = vsub.f32 1.0, %v8317_v53  ;;  %v732_v1 = vmul.f32 %v8317_v53, %v9175_v4 }
 0x12a   : > { %v8319_v50 = vpop.eup %8318 }
 0x12b   : > { %v727_v2 = vsub.f32 1.0, %v8319_v50  ;;  %v735_v16 = vmul.f32 %v8319_v50, %v9183_v8  ;;  %v9384_v8 = vld [vmem:[%s11141_s3] sm:$0xff] }
 0x12d   : > { %v8321_v54 = vpop.eup %8320 }
 0x12e   : > { %v8323_v57 = vpop.eup %8322  ;;  %v726_v10 = vsub.f32 1.0, %v8321_v54  ;;  %v734_v26 = vmul.f32 %v8321_v54, %v9179_v6  ;;  %v9055_v6 = vmov 1966171168  }
 0x12f   : > { %v8325_v62 = vpop.eup %8324  ;;  %v729_v52 = vmul.f32 %v8323_v57, %v725_v55  ;;  %v822_v32 = vunpack.c.l.s4 %v9055_v6 }
 0x130   : > { %v728_v0 = vmul.f32 %v8325_v62, %v724_v58 }
 0x131   : > { %v8327_v3 = vpop.eup %8326  ;;  %v9366_v7 = vadd.f32 %v733_v63, %v729_v52  ;;  %v823_v42 = vunpack.c.0.s8 %v822_v32 }
 0x132   : > { %v8329_v11 = vpop.eup %8328  ;;  %v9368_v13 = vadd.f32 %v732_v1, %v728_v0  ;;  %v731_v14 = vmul.f32 %v8327_v3, %v727_v2  ;;  %v6570_v0 = vld [vmem:[%s9170_s28 + $0x68] sm:$0xff]  ;;  %v6569_v1 = vld [vmem:[%s9170_s28 + $0x60] sm:$0xff] }
 0x133   : > { %v730_v22 = vmul.f32 %v8329_v11, %v726_v10  ;;  %v9418_v47 = vsub.s32 %v823_v42, %v825_v43 }
 0x134   : > { %v8010_v5 = vpack.c.bf16 %v9366_v7, %v9368_v13  ;;  %v9374_v28 = vadd.f32 %v735_v16, %v731_v14 }
 0x135   : > { %v9376_v4 = vadd.f32 %v734_v26, %v730_v22 }
 0x136   : > { %8011 = vmatpush3.bf16.msra.mxu1 %v8010_v5 }
 0x137   : > { %8012 = vmatprep.subr.bf16.mxu1 %v9052_v36  ;;  %v8013_v30 = vpack.c.bf16 %v9374_v28, %v9376_v4 }
 0x13a   : > { %8014 = vmatpush3.bf16.msra.mxu1 %v8013_v30 }
 0x13b   : > { %8016 = vmatprep.subr.bf16.mxu1 %v8010_v5 }
 0x13d   : > { %7444 = vmatmul.mubr.msk.f32.vlgmr.msra.gmra.mrb[0].mxu1 %vm494_vm1, %v9384_v8 }
 0x13e   : > { %8018 = vmatpush3.bf16.msra.mxu1 %v8010_v5  ;;  %7454 = vmatprep.mubr.msk.f32.mxu1 %vm494_vm1, %v9188_v9  ;;  %v6572_v5 = vld [vmem:[%s9170_s28 + $0x78] sm:$0xff] }
 0x13f   : > { %8020 = vmatprep.subr.bf16.mxu1 %v8013_v30 }
 0x142   : > { %8022 = vmatpush3.bf16.msra.mxu1 %v8013_v30 }
 0x143   : > { %8037 = vmatprep.subr.bf16.mxu1 %v9052_v36 }
 0x145   : > { %7455 = vmatmul.mubr.msk.f32.vlgmr.msra.gmra.mrb[2].mxu1 %vm494_vm1, %v9206_v15 }
 0x146   : > { %7457 = vmatprep.mubr.msk.f32.mxu1 %vm494_vm1, %v9214_v17 }
 0x149   : > { %7458 = vmatmul.mubr.msk.f32.gmra.mrb[4].mxu1 %vm494_vm1, %v9226_v19 }
 0x14a   : > { %7460 = vmatprep.mubr.msk.f32.mxu1 %vm494_vm1, %v9234_v21 }
 0x14d   : > { %7461 = vmatmul.mubr.msk.f32.gmra.mrb[6].mxu1 %vm494_vm1, %v9246_v23 }
 0x14e   : > { %7463 = vmatprep.mubr.msk.f32.mxu1 %vm494_vm1, %v9254_v25 }
 0x151   : > { %7464 = vmatmul.mubr.msk.f32.gmra.mrb[8].mxu1 %vm494_vm1, %v9266_v27 }
 0x152   : > { %7466 = vmatprep.mubr.msk.f32.mxu1 %vm494_vm1, %v9274_v29 }
 0x155   : > { %7467 = vmatmul.mubr.msk.f32.gmra.mrb[10].mxu1 %vm494_vm1, %v9286_v31 }
 0x156   : > { %7469 = vmatprep.mubr.msk.f32.mxu1 %vm494_vm1, %v9294_v33 }
 0x159   : > { %7470 = vmatmul.mubr.msk.f32.gmra.mrb[12].mxu1 %vm494_vm1, %v9306_v35 }
 0x15a   : > { %7517 = vmatprep.mubr.msk.f32.mxu1 %vm9053_vm2, %v9054_v37 }
 0x210   : > { %v814_v45 = vpop.f32.mrb[0].mxu1 }
 0x211   : > { %v815_v46 = vadd.f32 %v814_v45, %v9415_v44  ;;  %v7445_v48 = vpop.f32.mrb[1].mxu1 }
 0x213   : > { %v818_v49 = vmax.f32 %v815_v46, 0.0 }
 0x215   : > { %v820_v51 = vcombine.high %v818_v49, %v818_v49  ;;  %v827_v53 = vrot.slane %v818_v49, %v9418_v47 }
 0x217   : > { %v834_v50 = vrot.slane %v820_v51, %v9418_v47  ;;  %v835_v54 = vcombine.high %v827_v53, %v827_v53  ;;  %v843_v55 = vrot.slane %v827_v53, %v9418_v47  ;;  %v6574_v51 = vld [vmem:[%s9170_s28 + $0x88] sm:$0xff] }
 0x218   : > { %v7456_v57 = vpop.f32.mrb[2].mxu1 }
 0x219   : > { %v836_v58 = vcombine.high %v834_v50, %v834_v50  ;;  %v850_v62 = vrot.slane %v834_v50, %v9418_v47  ;;  %v857_v52 = vrot.slane %v835_v54, %v9418_v47  ;;  %v865_v63 = vcombine.high %v843_v55, %v843_v55  ;;  %878 = vst.msk [vmem:[%s9172_s16] sm:$0x1] %vm877_vm3, %v843_v55  ;;  %v965_v2 = vpop.f32.mrb[3].mxu1  ;;  %v6573_v55 = vld [vmem:[%s9170_s28 + $0x80] sm:$0xff] }
 0x21a   : > { %v971_v3 = vadd.f32 %v7456_v57, %v9320_v40  ;;  %v966_v10 = vadd.f32 %v965_v2, %v9316_v38 }
 0x21b   : > { %v864_v11 = vrot.slane %v836_v58, %v9418_v47  ;;  %v866_v14 = vcombine.high %v850_v62, %v850_v62  ;;  %v867_v16 = vcombine.high %v857_v52, %v857_v52  ;;  %879 = vst.msk [vmem:[%s9172_s16 + $0x10] sm:$0x1] %vm877_vm3, %v857_v52  ;;  %880 = vst.msk [vmem:[%s9172_s16 + $0x20] sm:$0x1] %vm877_vm3, %v865_v63 }
 0x21c   : > { %882 = vst.msk [vmem:[%s9172_s16 + $0x40] sm:$0x1] %vm877_vm3, %v850_v62  ;;  %v1025_v22 = vadd.f32 %v6570_v0, %v971_v3  ;;  %v1024_v26 = vadd.f32 %v6569_v1, %v966_v10  ;;  %v7459_v30 = vpop.f32.mrb[4].mxu1  ;;  %v6576_v0 = vld [vmem:[%s9170_s28 + $0x98] sm:$0xff]  ;;  %v6575_v10 = vld [vmem:[%s9170_s28 + $0x90] sm:$0xff] }
 0x21d   : > { %v868_v6 = vcombine.high %v864_v11, %v864_v11  ;;  %881 = vst.msk [vmem:[%s9172_s16 + $0x30] sm:$0x1] %vm877_vm3, %v867_v16  ;;  %883 = vst.msk [vmem:[%s9172_s16 + $0x50] sm:$0x1] %vm877_vm3, %v864_v11  ;;  %v981_v32 = vadd.f32 %v7459_v30, %v9322_v41  ;;  %v975_v42 = vpop.f32.mrb[5].mxu1 }
 0x21e   : > { %884 = vst.msk [vmem:[%s9172_s16 + $0x60] sm:$0x1] %vm877_vm3, %v866_v14  ;;  %v6594_v43 = vmul.f32 -1.442695, %v1025_v22  ;;  %v6593_v45 = vmul.f32 -1.442695, %v1024_v26  ;;  %v976_v46 = vadd.f32 %v975_v42, %v9318_v39 }
 0x21f   : > { %885 = vst.msk [vmem:[%s9172_s16 + $0x70] sm:$0x1] %vm877_vm3, %v868_v6  ;;  %v1027_v48 = vadd.f32 %v6572_v5, %v981_v32 }
 0x220   : > { %8330 = vpow2.f32 %v6594_v43  ;;  %v1026_v49 = vadd.f32 %v6571_v34, %v976_v46  ;;  %v7462_v53 = vpop.f32.mrb[6].mxu1 }
 0x221   : > { %8332 = vpow2.f32 %v6593_v45  ;;  %v6596_v50 = vmul.f32 -1.442695, %v1027_v48  ;;  %v991_v54 = vadd.f32 %v7462_v53, %v9331_v56  ;;  %v985_v57 = vpop.f32.mrb[7].mxu1 }
 0x222   : > { %v6595_v58 = vmul.f32 -1.442695, %v1026_v49  ;;  %v986_v62 = vadd.f32 %v985_v57, %v9334_v59 }
 0x223   : > { %8334 = vpow2.f32 %v6596_v50  ;;  %v1053_v52 = vadd.f32 %v6574_v51, %v991_v54 }
 0x224   : > { %8336 = vpow2.f32 %v6595_v58  ;;  %v1052_v63 = vadd.f32 %v6573_v55, %v986_v62  ;;  %v7465_v1 = vpop.f32.mrb[8].mxu1 }
 0x225   : > { %v6598_v2 = vmul.f32 -1.442695, %v1053_v52  ;;  %v1001_v3 = vadd.f32 %v7465_v1, %v9340_v12  ;;  %v995_v11 = vpop.f32.mrb[9].mxu1 }
 0x226   : > { %v6597_v14 = vmul.f32 -1.442695, %v1052_v63  ;;  %v996_v16 = vadd.f32 %v995_v11, %v9343_v18 }
 0x227   : > { %8338 = vpow2.f32 %v6598_v2  ;;  %v1055_v22 = vadd.f32 %v6576_v0, %v1001_v3  ;;  %v6578_v3 = vld [vmem:[%s9170_s28 + $0xa8] sm:$0xff] }
 0x228   : > { %8340 = vpow2.f32 %v6597_v14  ;;  %v1054_v26 = vadd.f32 %v6575_v10, %v996_v16  ;;  %v7468_v5 = vpop.f32.mrb[10].mxu1  ;;  %v6577_v16 = vld [vmem:[%s9170_s28 + $0xa0] sm:$0xff] }
 0x229   : > { %v6600_v30 = vmul.f32 -1.442695, %v1055_v22  ;;  %v1005_v6 = vpop.f32.mrb[11].mxu1  ;;  %v1011_v0 = vadd.f32 %v7468_v5, %v9348_v60 }
 0x22a   : > { %v8331_v32 = vpop.eup %8330  ;;  %v6599_v34 = vmul.f32 -1.442695, %v1054_v26  ;;  %v1006_v10 = vadd.f32 %v1005_v6, %v9350_v61  ;;  %v6579_v6 = vld [vmem:[%s9170_s28 + $0xb0] sm:$0xff] }
 0x22b   : > { %v8333_v42 = vpop.eup %8332  ;;  %v1041_v43 = vadd.f32 1.0, %v8331_v32  ;;  %8342 = vpow2.f32 %v6600_v30 }
 0x22c   : > { %v1040_v45 = vadd.f32 1.0, %v8333_v42  ;;  %8344 = vpow2.f32 %v6599_v34  ;;  %v7471_v46 = vpop.f32.mrb[12].mxu1  ;;  %v6580_v34 = vld [vmem:[%s9170_s28 + $0xb8] sm:$0xff] }
 0x22d   : > { %v8335_v48 = vpop.eup %8334  ;;  %8346 = vrcp.f32 %v1041_v43  ;;  %v1015_v49 = vpop.f32.mrb[13].mxu1  ;;  %v1021_v26 = vadd.f32 %v7471_v46, %v9356_v20 }
 0x22e   : > { %v8337_v51 = vpop.eup %8336  ;;  %8348 = vrcp.f32 %v1040_v45  ;;  %v1043_v53 = vadd.f32 1.0, %v8335_v48  ;;  %v1016_v5 = vadd.f32 %v1015_v49, %v9358_v24 }
 0x22f   : > { %v1042_v50 = vadd.f32 1.0, %v8337_v51 }
 0x230   : > { %8350 = vrcp.f32 %v1043_v53 }
 0x231   : > { %v8339_v54 = vpop.eup %8338  ;;  %8352 = vrcp.f32 %v1042_v50 }
 0x232   : > { %v8341_v55 = vpop.eup %8340  ;;  %v1069_v57 = vadd.f32 1.0, %v8339_v54 }
 0x233   : > { %v1068_v62 = vadd.f32 1.0, %v8341_v55 }
 0x234   : > { %8354 = vrcp.f32 %v1069_v57 }
 0x235   : > { %v8343_v58 = vpop.eup %8342  ;;  %8356 = vrcp.f32 %v1068_v62 }
 0x236   : > { %v8345_v52 = vpop.eup %8344  ;;  %v1071_v63 = vadd.f32 1.0, %v8343_v58 }
 0x237   : > { %v8347_v1 = vpop.eup %8346  ;;  %v1070_v2 = vadd.f32 1.0, %v8345_v52 }
 0x238   : > { %v8349_v11 = vpop.eup %8348  ;;  %v1081_v14 = vmul.f32 %v8347_v1, %v1011_v0  ;;  %8358 = vrcp.f32 %v1071_v63 }
 0x239   : > { %v1080_v22 = vmul.f32 %v8349_v11, %v1006_v10  ;;  %8360 = vrcp.f32 %v1070_v2 }
 0x23a   : > { %v8351_v30 = vpop.eup %8350  ;;  %v1085_v32 = vadd.f32 %v6578_v3, %v1081_v14 }
 0x23b   : > { %v8353_v42 = vpop.eup %8352  ;;  %v1084_v43 = vadd.f32 %v6577_v16, %v1080_v22  ;;  %v1083_v45 = vmul.f32 %v8351_v30, %v1021_v26 }
 0x23c   : > { %8362 = vtanh.f32 %v1085_v32  ;;  %v1082_v48 = vmul.f32 %v8353_v42, %v1016_v5  ;;  %v6603_v42 = vld [vmem:[%s9170_s28 + $0xc8] sm:$0xff] }
 0x23d   : > { %8364 = vtanh.f32 %v1084_v43  ;;  %v1087_v51 = vadd.f32 %v6580_v34, %v1083_v45  ;;  %v6602_v43 = vld [vmem:[%s9170_s28 + $0xc0] sm:$0xff] }
 0x23e   : > { %v1086_v53 = vadd.f32 %v6579_v6, %v1082_v48  ;;  %v8355_v50 = vpop.eup %8354 }
 0x23f   : > { %8366 = vtanh.f32 %v1087_v51  ;;  %v8357_v46 = vpop.eup %8356  ;;  %v1093_v57 = vsub.f32 1.0, %v8355_v50  ;;  %v1101_v63 = vmul.f32 %v8355_v50, %v9366_v7 }
 0x240   : > { %8368 = vtanh.f32 %v1086_v53  ;;  %v1092_v62 = vsub.f32 1.0, %v8357_v46  ;;  %v1100_v1 = vmul.f32 %v8357_v46, %v9368_v13 }
 0x242   : > { %v8359_v54 = vpop.eup %8358 }
 0x243   : > { %v8361_v55 = vpop.eup %8360  ;;  %v1095_v2 = vsub.f32 1.0, %v8359_v54  ;;  %v1103_v26 = vmul.f32 %v8359_v54, %v9374_v28 }
 0x244   : > { %v1094_v11 = vsub.f32 1.0, %v8361_v55  ;;  %v1102_v32 = vmul.f32 %v8361_v55, %v9376_v4  ;;  %v6605_v55 = vld [vmem:[%s9170_s28 + $0xd8] sm:$0xff] }
 0x246   : > { %v8363_v58 = vpop.eup %8362 }
 0x247   : > { %v8365_v49 = vpop.eup %8364  ;;  %v1097_v52 = vmul.f32 %v8363_v58, %v1093_v57 }
 0x248   : > { %v1096_v0 = vmul.f32 %v8365_v49, %v1092_v62  ;;  %v6604_v49 = vld [vmem:[%s9170_s28 + $0xd0] sm:$0xff] }
 0x249   : > { %v8367_v3 = vpop.eup %8366  ;;  %v9468_v10 = vadd.f32 %v1101_v63, %v1097_v52 }
 0x24a   : > { %v8369_v14 = vpop.eup %8368  ;;  %v9470_v16 = vadd.f32 %v1100_v1, %v1096_v0  ;;  %v1099_v22 = vmul.f32 %v8367_v3, %v1095_v2 }
 0x24b   : > { %v1098_v30 = vmul.f32 %v8369_v14, %v1094_v11  ;;  %v6607_v11 = vld [vmem:[%s9170_s28 + $0xe8] sm:$0xff] }
 0x24c   : > { %v8024_v7 = vpack.c.bf16 %v9468_v10, %v9470_v16  ;;  %v9476_v34 = vadd.f32 %v1103_v26, %v1099_v22 }
 0x24d   : > { %v9478_v13 = vadd.f32 %v1102_v32, %v1098_v30  ;;  %v6606_v30 = vld [vmem:[%s9170_s28 + $0xe0] sm:$0xff] }
 0x24e   : > { %8025 = vmatpush3.bf16.msra.mxu0 %v8024_v7 }
 0x24f   : > { %8026 = vmatprep.subr.bf16.mxu0 %v9052_v36  ;;  %v8027_v5 = vpack.c.bf16 %v9476_v34, %v9478_v13 }
 0x252   : > { %8028 = vmatpush3.bf16.msra.mxu0 %v8027_v5 }
 0x253   : > { %8030 = vmatprep.subr.bf16.mxu0 %v8024_v7 }
 0x255   : > { %7481 = vmatmul.mubr.msk.f32.vlgmr.msra.gmra.mrb[12].mxu0 %vm494_vm1, %v9384_v8 }
 0x256   : > { %8032 = vmatpush3.bf16.msra.mxu0 %v8024_v7  ;;  %7491 = vmatprep.mubr.msk.f32.mxu0 %vm494_vm1, %v9188_v9 }
 0x257   : > { %8034 = vmatprep.subr.bf16.mxu0 %v8027_v5 }
 0x25a   : > { %8036 = vmatpush3.bf16.msra.mxu0 %v8027_v5 }
 0x25b   : > { %8051 = vmatprep.subr.bf16.mxu0 %v9052_v36 }
 0x25d   : > { %7492 = vmatmul.mubr.msk.f32.vlgmr.msra.gmra.mrb[14].mxu0 %vm494_vm1, %v9206_v15 }
 0x25e   : > { %7494 = vmatprep.mubr.msk.f32.mxu0 %vm494_vm1, %v9214_v17 }
 0x261   : > { %7495 = vmatmul.mubr.msk.f32.gmra.mrb[16].mxu0 %vm494_vm1, %v9226_v19 }
 0x262   : > { %7497 = vmatprep.mubr.msk.f32.mxu0 %vm494_vm1, %v9234_v21 }
 0x265   : > { %7498 = vmatmul.mubr.msk.f32.gmra.mrb[18].mxu0 %vm494_vm1, %v9246_v23 }
 0x266   : > { %7500 = vmatprep.mubr.msk.f32.mxu0 %vm494_vm1, %v9254_v25 }
 0x269   : > { %7501 = vmatmul.mubr.msk.f32.gmra.mrb[20].mxu0 %vm494_vm1, %v9266_v27 }
 0x26a   : > { %7503 = vmatprep.mubr.msk.f32.mxu0 %vm494_vm1, %v9274_v29 }
 0x26d   : > { %7504 = vmatmul.mubr.msk.f32.gmra.mrb[22].mxu0 %vm494_vm1, %v9286_v31 }
 0x26e   : > { %7506 = vmatprep.mubr.msk.f32.mxu0 %vm494_vm1, %v9294_v33 }
 0x271   : > { %7507 = vmatmul.mubr.msk.f32.gmra.mrb[24].mxu0 %vm494_vm1, %v9306_v35 }
 0x272   : > { %7554 = vmatprep.mubr.msk.f32.mxu0 %vm9053_vm2, %v9054_v37 }
 0x328   : > { %v1174_v9 = vpop.f32.mrb[12].mxu0 }
 0x329   : > { %v1175_v15 = vadd.f32 %v1174_v9, %v9415_v44  ;;  %v7482_v17 = vpop.f32.mrb[13].mxu0 }
 0x32a   : > { %v6609_v17 = vld [vmem:[%s9170_s28 + $0xf8] sm:$0xff] }
 0x32b   : > { %v1178_v19 = vmax.f32 %v1175_v15, 0.0 }
 0x32d   : > { %v1180_v21 = vcombine.high %v1178_v19, %v1178_v19  ;;  %v1187_v23 = vrot.slane %v1178_v19, %v9418_v47 }
 0x32f   : > { %v1194_v25 = vrot.slane %v1180_v21, %v9418_v47  ;;  %v1195_v27 = vcombine.high %v1187_v23, %v1187_v23  ;;  %v1203_v29 = vrot.slane %v1187_v23, %v9418_v47 }
 0x330   : > { %v7493_v31 = vpop.f32.mrb[14].mxu0 }
 0x331   : > { %v1196_v33 = vcombine.high %v1194_v25, %v1194_v25  ;;  %v1210_v35 = vrot.slane %v1194_v25, %v9418_v47  ;;  %v1217_v28 = vrot.slane %v1195_v27, %v9418_v47  ;;  %v1225_v4 = vcombine.high %v1203_v29, %v1203_v29  ;;  %1237 = vst.msk [vmem:[%s9172_s16 + $0x1] sm:$0x1] %vm877_vm3, %v1203_v29  ;;  %v1324_v45 = vpop.f32.mrb[15].mxu0  ;;  %v6608_v25 = vld [vmem:[%s9170_s28 + $0xf0] sm:$0xff] }
 0x332   : > { %v1330_v6 = vadd.f32 %v7493_v31, %v9320_v40  ;;  %v1325_v48 = vadd.f32 %v1324_v45, %v9316_v38 }
 0x333   : > { %v1224_v51 = vrot.slane %v1196_v33, %v9418_v47  ;;  %v1226_v53 = vcombine.high %v1210_v35, %v1210_v35  ;;  %v1227_v50 = vcombine.high %v1217_v28, %v1217_v28  ;;  %1238 = vst.msk [vmem:[%s9172_s16 + $0x11] sm:$0x1] %vm877_vm3, %v1217_v28  ;;  %1239 = vst.msk [vmem:[%s9172_s16 + $0x21] sm:$0x1] %vm877_vm3, %v1225_v4 }
 0x334   : > { %1241 = vst.msk [vmem:[%s9172_s16 + $0x41] sm:$0x1] %vm877_vm3, %v1210_v35  ;;  %v1384_v46 = vadd.f32 %v6603_v42, %v1330_v6  ;;  %v1383_v54 = vadd.f32 %v6602_v43, %v1325_v48  ;;  %v7496_v57 = vpop.f32.mrb[16].mxu0 }
 0x335   : > { %v1228_v58 = vcombine.high %v1224_v51, %v1224_v51  ;;  %1240 = vst.msk [vmem:[%s9172_s16 + $0x31] sm:$0x1] %vm877_vm3, %v1227_v50  ;;  %1242 = vst.msk [vmem:[%s9172_s16 + $0x51] sm:$0x1] %vm877_vm3, %v1224_v51  ;;  %v1340_v62 = vadd.f32 %v7496_v57, %v9322_v41  ;;  %v1334_v52 = vpop.f32.mrb[17].mxu0 }
 0x336   : > { %1243 = vst.msk [vmem:[%s9172_s16 + $0x61] sm:$0x1] %vm877_vm3, %v1226_v53  ;;  %v6627_v63 = vmul.f32 -1.442695, %v1384_v46  ;;  %v6626_v0 = vmul.f32 -1.442695, %v1383_v54  ;;  %v1335_v1 = vadd.f32 %v1334_v52, %v9318_v39 }
 0x337   : > { %1244 = vst.msk [vmem:[%s9172_s16 + $0x71] sm:$0x1] %vm877_vm3, %v1228_v58  ;;  %v1386_v2 = vadd.f32 %v6605_v55, %v1340_v62 }
 0x338   : > { %8370 = vpow2.f32 %v6627_v63  ;;  %v1385_v3 = vadd.f32 %v6604_v49, %v1335_v1  ;;  %v7499_v14 = vpop.f32.mrb[18].mxu0 }
 0x339   : > { %8372 = vpow2.f32 %v6626_v0  ;;  %v6629_v22 = vmul.f32 -1.442695, %v1386_v2  ;;  %v1350_v26 = vadd.f32 %v7499_v14, %v9331_v56  ;;  %v1344_v32 = vpop.f32.mrb[19].mxu0  ;;  %v6611_v14 = vld [vmem:[%s9170_s28 + $0x108] sm:$0xff] }
 0x33a   : > { %v6628_v7 = vmul.f32 -1.442695, %v1385_v3  ;;  %v1345_v5 = vadd.f32 %v1344_v32, %v9334_v59  ;;  %v6610_v32 = vld [vmem:[%s9170_s28 + $0x100] sm:$0xff] }
 0x33b   : > { %8374 = vpow2.f32 %v6629_v22  ;;  %v1412_v9 = vadd.f32 %v6607_v11, %v1350_v26 }
 0x33c   : > { %8376 = vpow2.f32 %v6628_v7  ;;  %v1411_v15 = vadd.f32 %v6606_v30, %v1345_v5  ;;  %v7502_v19 = vpop.f32.mrb[20].mxu0 }
 0x33d   : > { %v6631_v21 = vmul.f32 -1.442695, %v1412_v9  ;;  %v1360_v23 = vadd.f32 %v7502_v19, %v9340_v12  ;;  %v1354_v27 = vpop.f32.mrb[21].mxu0 }
 0x33e   : > { %v6630_v29 = vmul.f32 -1.442695, %v1411_v15  ;;  %v1355_v31 = vadd.f32 %v1354_v27, %v9343_v18  ;;  %v6612_v27 = vld [vmem:[%s9170_s28 + $0x110] sm:$0xff] }
 0x33f   : > { %8378 = vpow2.f32 %v6631_v21  ;;  %v1414_v33 = vadd.f32 %v6609_v17, %v1360_v23  ;;  %v6613_v17 = vld [vmem:[%s9170_s28 + $0x118] sm:$0xff] }
 0x340   : > { %8380 = vpow2.f32 %v6630_v29  ;;  %v1413_v35 = vadd.f32 %v6608_v25, %v1355_v31  ;;  %v7505_v28 = vpop.f32.mrb[22].mxu0 }
 0x341   : > { %v6633_v4 = vmul.f32 -1.442695, %v1414_v33  ;;  %v1364_v42 = vpop.f32.mrb[23].mxu0  ;;  %v1370_v2 = vadd.f32 %v7505_v28, %v9348_v60 }
 0x342   : > { %v8371_v43 = vpop.eup %8370  ;;  %v6632_v45 = vmul.f32 -1.442695, %v1413_v35  ;;  %v1365_v22 = vadd.f32 %v1364_v42, %v9350_v61 }
 0x343   : > { %v8373_v6 = vpop.eup %8372  ;;  %v1400_v48 = vadd.f32 1.0, %v8371_v43  ;;  %8382 = vpow2.f32 %v6633_v4 }
 0x344   : > { %v1399_v51 = vadd.f32 1.0, %v8373_v6  ;;  %8384 = vpow2.f32 %v6632_v45  ;;  %v7508_v53 = vpop.f32.mrb[24].mxu0 }
 0x345   : > { %v8375_v50 = vpop.eup %8374  ;;  %8386 = vrcp.f32 %v1400_v48  ;;  %v1374_v46 = vpop.f32.mrb[25].mxu0  ;;  %v1380_v5 = vadd.f32 %v7508_v53, %v9356_v20 }
 0x346   : > { %v8377_v54 = vpop.eup %8376  ;;  %8388 = vrcp.f32 %v1399_v51  ;;  %v1402_v55 = vadd.f32 1.0, %v8375_v50  ;;  %v1375_v19 = vadd.f32 %v1374_v46, %v9358_v24 }
 0x347   : > { %v1401_v57 = vadd.f32 1.0, %v8377_v54 }
 0x348   : > { %8390 = vrcp.f32 %v1402_v55 }
 0x349   : > { %v8379_v58 = vpop.eup %8378  ;;  %8392 = vrcp.f32 %v1401_v57 }
 0x34a   : > { %v8381_v62 = vpop.eup %8380  ;;  %v1428_v49 = vadd.f32 1.0, %v8379_v58 }
 0x34b   : > { %v1427_v63 = vadd.f32 1.0, %v8381_v62 }
 0x34c   : > { %8394 = vrcp.f32 %v1428_v49 }
 0x34d   : > { %v8383_v52 = vpop.eup %8382  ;;  %8396 = vrcp.f32 %v1427_v63 }
 0x34e   : > { %v8385_v0 = vpop.eup %8384  ;;  %v1430_v1 = vadd.f32 1.0, %v8383_v52 }
 0x34f   : > { %v8387_v3 = vpop.eup %8386  ;;  %v1429_v11 = vadd.f32 1.0, %v8385_v0 }
 0x350   : > { %v8389_v26 = vpop.eup %8388  ;;  %v1440_v30 = vmul.f32 %v8387_v3, %v1370_v2  ;;  %8398 = vrcp.f32 %v1430_v1 }
 0x351   : > { %v1439_v7 = vmul.f32 %v8389_v26, %v1365_v22  ;;  %8400 = vrcp.f32 %v1429_v11  ;;  %v9603_v11 = vld [vmem:[%s11139_s1 + $0x18] sm:$0xff]  ;;  %v9617_v22 = vld [vmem:[%s11139_s1 + $0x28] sm:$0xff]  ;;  %v9624_v26 = vld [vmem:[%s11139_s1 + $0x30] sm:$0xff] }
 0x352   : > { %v8391_v9 = vpop.eup %8390  ;;  %v1444_v15 = vadd.f32 %v6611_v14, %v1440_v30  ;;  %v9610_v14 = vld [vmem:[%s11139_s1 + $0x20] sm:$0xff]  ;;  %v9631_v30 = vld [vmem:[%s11139_s1 + $0x38] sm:$0xff] }
 0x353   : > { %v8393_v21 = vpop.eup %8392  ;;  %v1443_v23 = vadd.f32 %v6610_v32, %v1439_v7  ;;  %v1442_v25 = vmul.f32 %v8391_v9, %v1380_v5  ;;  %v9638_v32 = vld [vmem:[%s11139_s1 + $0x40] sm:$0xff]  ;;  %v9645_v7 = vld [vmem:[%s11139_s1 + $0x48] sm:$0xff]  ;;  %v9652_v5 = vld [vmem:[%s11139_s1 + $0x50] sm:$0xff] }
 0x354   : > { %8402 = vtanh.f32 %v1444_v15  ;;  %v1441_v29 = vmul.f32 %v8393_v21, %v1375_v19  ;;  %v9659_v9 = vld [vmem:[%s11139_s1 + $0x58] sm:$0xff] }
 0x355   : > { %8404 = vtanh.f32 %v1443_v23  ;;  %v1446_v31 = vadd.f32 %v6613_v17, %v1442_v25 }
 0x356   : > { %v1445_v33 = vadd.f32 %v6612_v27, %v1441_v29  ;;  %v8395_v35 = vpop.eup %8394 }
 0x357   : > { %8406 = vtanh.f32 %v1446_v31  ;;  %v8397_v28 = vpop.eup %8396  ;;  %v1452_v43 = vsub.f32 1.0, %v8395_v35  ;;  %v1460_v53 = vmul.f32 %v8395_v35, %v9468_v10 }
 0x358   : > { %8408 = vtanh.f32 %v1445_v33  ;;  %v1451_v6 = vsub.f32 1.0, %v8397_v28  ;;  %v1459_v46 = vmul.f32 %v8397_v28, %v9470_v16 }
 0x35a   : > { %v8399_v4 = vpop.eup %8398 }
 0x35b   : > { %v8401_v42 = vpop.eup %8400  ;;  %v1454_v54 = vsub.f32 1.0, %v8399_v4  ;;  %v1462_v63 = vmul.f32 %v8399_v4, %v9476_v34  ;;  %v9581_v34 = vld [vmem:[%s11139_s1] sm:$0xff] }
 0x35c   : > { %v1453_v58 = vsub.f32 1.0, %v8401_v42  ;;  %v1461_v1 = vmul.f32 %v8401_v42, %v9478_v13  ;;  %v9589_v13 = vld [vmem:[%s11139_s1 + $0x8] sm:$0xff] }
 0x35e   : > { %v8403_v45 = vpop.eup %8402 }
 0x35f   : > { %v8405_v48 = vpop.eup %8404  ;;  %v1456_v51 = vmul.f32 %v8403_v45, %v1452_v43  ;;  %v6636_v43 = vld [vmem:[%s9170_s28 + $0x128] sm:$0xff]  ;;  %v6635_v45 = vld [vmem:[%s9170_s28 + $0x120] sm:$0xff] }
 0x360   : > { %v1455_v50 = vmul.f32 %v8405_v48, %v1451_v6 }
 0x361   : > { %v8407_v55 = vpop.eup %8406  ;;  %v9561_v57 = vadd.f32 %v1460_v53, %v1456_v51 }
 0x362   : > { %v8409_v62 = vpop.eup %8408  ;;  %v9563_v49 = vadd.f32 %v1459_v46, %v1455_v50  ;;  %v1458_v52 = vmul.f32 %v8407_v55, %v1454_v54 }
 0x363   : > { %v1457_v0 = vmul.f32 %v8409_v62, %v1453_v58  ;;  %v6638_v58 = vld [vmem:[%s9170_s28 + $0x138] sm:$0xff] }
 0x364   : > { %v8038_v10 = vpack.c.bf16 %v9561_v57, %v9563_v49  ;;  %v9569_v2 = vadd.f32 %v1462_v63, %v1458_v52 }
 0x365   : > { %v9571_v16 = vadd.f32 %v1461_v1, %v1457_v0  ;;  %v6637_v0 = vld [vmem:[%s9170_s28 + $0x130] sm:$0xff] }
 0x366   : > { %8039 = vmatpush3.bf16.msra.mxu1 %v8038_v10 }
 0x367   : > { %8040 = vmatprep.subr.bf16.mxu1 %v9052_v36  ;;  %v8041_v3 = vpack.c.bf16 %v9569_v2, %v9571_v16 }
 0x36a   : > { %8042 = vmatpush3.bf16.msra.mxu1 %v8041_v3 }
 0x36b   : > { %8044 = vmatprep.subr.bf16.mxu1 %v8038_v10 }
 0x36d   : > { %7518 = vmatmul.mubr.msk.f32.vlgmr.msra.gmra.mrb[14].mxu1 %vm494_vm1, %v9384_v8  ;;  %v9596_v8 = vld [vmem:[%s11139_s1 + $0x10] sm:$0xff] }
 0x36e   : > { %8046 = vmatpush3.bf16.msra.mxu1 %v8038_v10  ;;  %7528 = vmatprep.mubr.msk.f32.mxu1 %vm494_vm1, %v9581_v34 }
 0x36f   : > { %8048 = vmatprep.subr.bf16.mxu1 %v8041_v3 }
 0x372   : > { %8050 = vmatpush3.bf16.msra.mxu1 %v8041_v3 }
 0x373   : > { %8065 = vmatprep.subr.bf16.mxu1 %v9052_v36 }
 0x375   : > { %7529 = vmatmul.mubr.msk.f32.vlgmr.msra.gmra.mrb[16].mxu1 %vm494_vm1, %v9589_v13 }
 0x376   : > { %7531 = vmatprep.mubr.msk.f32.mxu1 %vm494_vm1, %v9596_v8 }
 0x379   : > { %7532 = vmatmul.mubr.msk.f32.gmra.mrb[18].mxu1 %vm494_vm1, %v9603_v11 }
 0x37a   : > { %7534 = vmatprep.mubr.msk.f32.mxu1 %vm494_vm1, %v9610_v14 }
 0x37d   : > { %7535 = vmatmul.mubr.msk.f32.gmra.mrb[20].mxu1 %vm494_vm1, %v9617_v22 }
 0x37e   : > { %7537 = vmatprep.mubr.msk.f32.mxu1 %vm494_vm1, %v9624_v26 }
 0x381   : > { %7538 = vmatmul.mubr.msk.f32.gmra.mrb[22].mxu1 %vm494_vm1, %v9631_v30 }
 0x382   : > { %7540 = vmatprep.mubr.msk.f32.mxu1 %vm494_vm1, %v9638_v32 }
 0x385   : > { %7541 = vmatmul.mubr.msk.f32.gmra.mrb[24].mxu1 %vm494_vm1, %v9645_v7 }
 0x386   : > { %7543 = vmatprep.mubr.msk.f32.mxu1 %vm494_vm1, %v9652_v5 }
 0x389   : > { %7544 = vmatmul.mubr.msk.f32.gmra.mrb[26].mxu1 %vm494_vm1, %v9659_v9 }
 0x38a   : > { %7591 = vmatprep.mubr.msk.f32.mxu1 %vm9053_vm2, %v9054_v37 }
 0x440   : > { %v1533_v15 = vpop.f32.mrb[14].mxu1 }
 0x441   : > { %v1534_v17 = vadd.f32 %v1533_v15, %v9415_v44  ;;  %v7519_v19 = vpop.f32.mrb[15].mxu1 }
 0x443   : > { %v1537_v21 = vmax.f32 %v1534_v17, 0.0 }
 0x445   : > { %v1539_v23 = vcombine.high %v1537_v21, %v1537_v21  ;;  %v1546_v25 = vrot.slane %v1537_v21, %v9418_v47  ;;  %v6640_v21 = vld [vmem:[%s9170_s28 + $0x148] sm:$0xff] }
 0x447   : > { %v1553_v27 = vrot.slane %v1539_v23, %v9418_v47  ;;  %v1554_v29 = vcombine.high %v1546_v25, %v1546_v25  ;;  %v1562_v31 = vrot.slane %v1546_v25, %v9418_v47 }
 0x448   : > { %v7530_v33 = vpop.f32.mrb[16].mxu1 }
 0x449   : > { %v1555_v35 = vcombine.high %v1553_v27, %v1553_v27  ;;  %v1569_v28 = vrot.slane %v1553_v27, %v9418_v47  ;;  %v1576_v4 = vrot.slane %v1554_v29, %v9418_v47  ;;  %v1584_v42 = vcombine.high %v1562_v31, %v1562_v31  ;;  %1596 = vst.msk [vmem:[%s9172_s16 + $0x2] sm:$0x1] %vm877_vm3, %v1562_v31  ;;  %v1683_v6 = vpop.f32.mrb[17].mxu1  ;;  %v6639_v29 = vld [vmem:[%s9170_s28 + $0x140] sm:$0xff] }
 0x44a   : > { %v1689_v48 = vadd.f32 %v7530_v33, %v9320_v40  ;;  %v1684_v51 = vadd.f32 %v1683_v6, %v9316_v38 }
 0x44b   : > { %v1583_v53 = vrot.slane %v1555_v35, %v9418_v47  ;;  %v1585_v50 = vcombine.high %v1569_v28, %v1569_v28  ;;  %v1586_v46 = vcombine.high %v1576_v4, %v1576_v4  ;;  %1597 = vst.msk [vmem:[%s9172_s16 + $0x12] sm:$0x1] %vm877_vm3, %v1576_v4  ;;  %1598 = vst.msk [vmem:[%s9172_s16 + $0x22] sm:$0x1] %vm877_vm3, %v1584_v42  ;;  %v6642_v42 = vld [vmem:[%s9170_s28 + $0x158] sm:$0xff] }
 0x44c   : > { %1600 = vst.msk [vmem:[%s9172_s16 + $0x42] sm:$0x1] %vm877_vm3, %v1569_v28  ;;  %v1743_v54 = vadd.f32 %v6636_v43, %v1689_v48  ;;  %v1742_v55 = vadd.f32 %v6635_v45, %v1684_v51  ;;  %v7533_v62 = vpop.f32.mrb[18].mxu1  ;;  %v6641_v48 = vld [vmem:[%s9170_s28 + $0x150] sm:$0xff] }
 0x44d   : > { %v1587_v52 = vcombine.high %v1583_v53, %v1583_v53  ;;  %1599 = vst.msk [vmem:[%s9172_s16 + $0x32] sm:$0x1] %vm877_vm3, %v1586_v46  ;;  %1601 = vst.msk [vmem:[%s9172_s16 + $0x52] sm:$0x1] %vm877_vm3, %v1583_v53  ;;  %v1699_v63 = vadd.f32 %v7533_v62, %v9322_v41  ;;  %v1693_v1 = vpop.f32.mrb[19].mxu1 }
 0x44e   : > { %1602 = vst.msk [vmem:[%s9172_s16 + $0x62] sm:$0x1] %vm877_vm3, %v1585_v50  ;;  %v6660_v10 = vmul.f32 -1.442695, %v1743_v54  ;;  %v6659_v3 = vmul.f32 -1.442695, %v1742_v55  ;;  %v1694_v15 = vadd.f32 %v1693_v1, %v9318_v39 }
 0x44f   : > { %1603 = vst.msk [vmem:[%s9172_s16 + $0x72] sm:$0x1] %vm877_vm3, %v1587_v52  ;;  %v1745_v17 = vadd.f32 %v6638_v58, %v1699_v63 }
 0x450   : > { %8410 = vpow2.f32 %v6660_v10  ;;  %v1744_v19 = vadd.f32 %v6637_v0, %v1694_v15  ;;  %v7536_v23 = vpop.f32.mrb[20].mxu1 }
 0x451   : > { %8412 = vpow2.f32 %v6659_v3  ;;  %v6662_v25 = vmul.f32 -1.442695, %v1745_v17  ;;  %v1709_v27 = vadd.f32 %v7536_v23, %v9331_v56  ;;  %v1703_v31 = vpop.f32.mrb[21].mxu1 }
 0x452   : > { %v6661_v33 = vmul.f32 -1.442695, %v1744_v19  ;;  %v1704_v35 = vadd.f32 %v1703_v31, %v9334_v59 }
 0x453   : > { %8414 = vpow2.f32 %v6662_v25  ;;  %v1771_v28 = vadd.f32 %v6640_v21, %v1709_v27 }
 0x454   : > { %8416 = vpow2.f32 %v6661_v33  ;;  %v1770_v4 = vadd.f32 %v6639_v29, %v1704_v35  ;;  %v7539_v43 = vpop.f32.mrb[22].mxu1 }
 0x455   : > { %v6664_v45 = vmul.f32 -1.442695, %v1771_v28  ;;  %v1719_v6 = vadd.f32 %v7539_v43, %v9340_v12  ;;  %v1713_v51 = vpop.f32.mrb[23].mxu1 }
 0x456   : > { %v6663_v53 = vmul.f32 -1.442695, %v1770_v4  ;;  %v1714_v50 = vadd.f32 %v1713_v51, %v9343_v18 }
 0x457   : > { %8418 = vpow2.f32 %v6664_v45  ;;  %v1773_v46 = vadd.f32 %v6642_v42, %v1719_v6  ;;  %v6644_v45 = vld [vmem:[%s9170_s28 + $0x168] sm:$0xff] }
 0x458   : > { %8420 = vpow2.f32 %v6663_v53  ;;  %v1772_v54 = vadd.f32 %v6641_v48, %v1714_v50  ;;  %v7542_v55 = vpop.f32.mrb[24].mxu1  ;;  %v6643_v53 = vld [vmem:[%s9170_s28 + $0x160] sm:$0xff] }
 0x459   : > { %v6666_v58 = vmul.f32 -1.442695, %v1773_v46  ;;  %v1723_v62 = vpop.f32.mrb[25].mxu1  ;;  %v1729_v4 = vadd.f32 %v7542_v55, %v9348_v60 }
 0x45a   : > { %v8411_v52 = vpop.eup %8410  ;;  %v6665_v63 = vmul.f32 -1.442695, %v1772_v54  ;;  %v1724_v6 = vadd.f32 %v1723_v62, %v9350_v61  ;;  %v6645_v62 = vld [vmem:[%s9170_s28 + $0x170] sm:$0xff] }
 0x45b   : > { %v8413_v0 = vpop.eup %8412  ;;  %v1759_v1 = vadd.f32 1.0, %v8411_v52  ;;  %8422 = vpow2.f32 %v6666_v58  ;;  %v6646_v52 = vld [vmem:[%s9170_s28 + $0x178] sm:$0xff] }
 0x45c   : > { %v1758_v10 = vadd.f32 1.0, %v8413_v0  ;;  %8424 = vpow2.f32 %v6665_v63  ;;  %v7545_v3 = vpop.f32.mrb[26].mxu1 }
 0x45d   : > { %v8415_v15 = vpop.eup %8414  ;;  %8426 = vrcp.f32 %v1759_v1  ;;  %v1733_v17 = vpop.f32.mrb[27].mxu1  ;;  %v1739_v46 = vadd.f32 %v7545_v3, %v9356_v20 }
 0x45e   : > { %v8417_v19 = vpop.eup %8416  ;;  %8428 = vrcp.f32 %v1758_v10  ;;  %v1761_v21 = vadd.f32 1.0, %v8415_v15  ;;  %v1734_v55 = vadd.f32 %v1733_v17, %v9358_v24 }
 0x45f   : > { %v1760_v23 = vadd.f32 1.0, %v8417_v19 }
 0x460   : > { %8430 = vrcp.f32 %v1761_v21 }
 0x461   : > { %v8419_v25 = vpop.eup %8418  ;;  %8432 = vrcp.f32 %v1760_v23 }
 0x462   : > { %v8421_v27 = vpop.eup %8420  ;;  %v1787_v29 = vadd.f32 1.0, %v8419_v25 }
 0x463   : > { %v1786_v33 = vadd.f32 1.0, %v8421_v27 }
 0x464   : > { %8434 = vrcp.f32 %v1787_v29 }
 0x465   : > { %v8423_v31 = vpop.eup %8422  ;;  %8436 = vrcp.f32 %v1786_v33 }
 0x466   : > { %v8425_v35 = vpop.eup %8424  ;;  %v1789_v28 = vadd.f32 1.0, %v8423_v31 }
 0x467   : > { %v8427_v42 = vpop.eup %8426  ;;  %v1788_v43 = vadd.f32 1.0, %v8425_v35 }
 0x468   : > { %v8429_v48 = vpop.eup %8428  ;;  %v1799_v51 = vmul.f32 %v8427_v42, %v1729_v4  ;;  %8438 = vrcp.f32 %v1789_v28 }
 0x469   : > { %v1798_v50 = vmul.f32 %v8429_v48, %v1724_v6  ;;  %8440 = vrcp.f32 %v1788_v43 }
 0x46a   : > { %v8431_v54 = vpop.eup %8430  ;;  %v1803_v58 = vadd.f32 %v6644_v45, %v1799_v51 }
 0x46b   : > { %v8433_v63 = vpop.eup %8432  ;;  %v1802_v0 = vadd.f32 %v6643_v53, %v1798_v50  ;;  %v1801_v1 = vmul.f32 %v8431_v54, %v1739_v46 }
 0x46c   : > { %8442 = vtanh.f32 %v1803_v58  ;;  %v1800_v10 = vmul.f32 %v8433_v63, %v1734_v55 }
 0x46d   : > { %8444 = vtanh.f32 %v1802_v0  ;;  %v1805_v15 = vadd.f32 %v6646_v52, %v1801_v1 }
 0x46e   : > { %v1804_v19 = vadd.f32 %v6645_v62, %v1800_v10  ;;  %v8435_v21 = vpop.eup %8434 }
 0x46f   : > { %8446 = vtanh.f32 %v1805_v15  ;;  %v8437_v3 = vpop.eup %8436  ;;  %v1811_v27 = vsub.f32 1.0, %v8435_v21  ;;  %v1819_v35 = vmul.f32 %v8435_v21, %v9561_v57 }
 0x470   : > { %8448 = vtanh.f32 %v1804_v19  ;;  %v1810_v31 = vsub.f32 1.0, %v8437_v3  ;;  %v1818_v4 = vmul.f32 %v8437_v3, %v9563_v49 }
 0x472   : > { %v8439_v23 = vpop.eup %8438 }
 0x473   : > { %v8441_v25 = vpop.eup %8440  ;;  %v1813_v42 = vsub.f32 1.0, %v8439_v23  ;;  %v1821_v50 = vmul.f32 %v8439_v23, %v9569_v2  ;;  %v9732_v2 = vld [vmem:[%s11141_s3] sm:$0xff] }
 0x474   : > { %v1812_v6 = vsub.f32 1.0, %v8441_v25  ;;  %v1820_v54 = vmul.f32 %v8441_v25, %v9571_v16 }
 0x476   : > { %v8443_v29 = vpop.eup %8442 }
 0x477   : > { %v8445_v17 = vpop.eup %8444  ;;  %v1815_v33 = vmul.f32 %v8443_v29, %v1811_v27  ;;  %v6669_v29 = vld [vmem:[%s9170_s28 + $0x188] sm:$0xff] }
 0x478   : > { %v1814_v28 = vmul.f32 %v8445_v17, %v1810_v31  ;;  %v6668_v31 = vld [vmem:[%s9170_s28 + $0x180] sm:$0xff] }
 0x479   : > { %v8447_v43 = vpop.eup %8446  ;;  %v9714_v45 = vadd.f32 %v1819_v35, %v1815_v33 }
 0x47a   : > { %v8449_v48 = vpop.eup %8448  ;;  %v9716_v51 = vadd.f32 %v1818_v4, %v1814_v28  ;;  %v1817_v53 = vmul.f32 %v8447_v43, %v1813_v42 }
 0x47b   : > { %v1816_v46 = vmul.f32 %v8449_v48, %v1812_v6  ;;  %v6671_v48 = vld [vmem:[%s9170_s28 + $0x198] sm:$0xff] }
 0x47c   : > { %v8052_v57 = vpack.c.bf16 %v9714_v45, %v9716_v51  ;;  %v9722_v58 = vadd.f32 %v1821_v50, %v1817_v53 }
 0x47d   : > { %v9724_v49 = vadd.f32 %v1820_v54, %v1816_v46  ;;  %v6670_v54 = vld [vmem:[%s9170_s28 + $0x190] sm:$0xff] }
 0x47e   : > { %8053 = vmatpush3.bf16.msra.mxu0 %v8052_v57 }
 0x47f   : > { %8054 = vmatprep.subr.bf16.mxu0 %v9052_v36  ;;  %v8055_v52 = vpack.c.bf16 %v9722_v58, %v9724_v49 }
 0x482   : > { %8056 = vmatpush3.bf16.msra.mxu0 %v8055_v52 }
 0x483   : > { %8058 = vmatprep.subr.bf16.mxu0 %v8052_v57 }
 0x485   : > { %7555 = vmatmul.mubr.msk.f32.vlgmr.msra.gmra.mrb[26].mxu0 %vm494_vm1, %v9732_v2 }
 0x486   : > { %8060 = vmatpush3.bf16.msra.mxu0 %v8052_v57  ;;  %7565 = vmatprep.mubr.msk.f32.mxu0 %vm494_vm1, %v9581_v34 }
 0x487   : > { %8062 = vmatprep.subr.bf16.mxu0 %v8055_v52 }
 0x48a   : > { %8064 = vmatpush3.bf16.msra.mxu0 %v8055_v52 }
 0x48b   : > { %8079 = vmatprep.subr.bf16.mxu0 %v9052_v36 }
 0x48d   : > { %7566 = vmatmul.mubr.msk.f32.vlgmr.msra.gmra.mrb[28].mxu0 %vm494_vm1, %v9589_v13 }
 0x48e   : > { %7568 = vmatprep.mubr.msk.f32.mxu0 %vm494_vm1, %v9596_v8 }
 0x491   : > { %7569 = vmatmul.mubr.msk.f32.gmra.mrb[30].mxu0 %vm494_vm1, %v9603_v11 }
 0x492   : > { %7571 = vmatprep.mubr.msk.f32.mxu0 %vm494_vm1, %v9610_v14 }
 0x495   : > { %7572 = vmatmul.mubr.msk.f32.gmra.mrb[32].mxu0 %vm494_vm1, %v9617_v22 }
 0x496   : > { %7574 = vmatprep.mubr.msk.f32.mxu0 %vm494_vm1, %v9624_v26 }
 0x499   : > { %7575 = vmatmul.mubr.msk.f32.gmra.mrb[34].mxu0 %vm494_vm1, %v9631_v30 }
 0x49a   : > { %7577 = vmatprep.mubr.msk.f32.mxu0 %vm494_vm1, %v9638_v32 }
 0x49d   : > { %7578 = vmatmul.mubr.msk.f32.gmra.mrb[36].mxu0 %vm494_vm1, %v9645_v7 }
 0x49e   : > { %7580 = vmatprep.mubr.msk.f32.mxu0 %vm494_vm1, %v9652_v5 }
 0x4a1   : > { %7581 = vmatmul.mubr.msk.f32.gmra.mrb[38].mxu0 %vm494_vm1, %v9659_v9 }
 0x4a2   : > { %7628 = vmatprep.mubr.msk.f32.mxu0 %vm9053_vm2, %v9054_v37 }
 0x558   : > { %v1892_v16 = vpop.f32.mrb[26].mxu0 }
 0x559   : > { %v1893_v55 = vadd.f32 %v1892_v16, %v9415_v44  ;;  %v7556_v63 = vpop.f32.mrb[27].mxu0 }
 0x55b   : > { %v1896_v0 = vmax.f32 %v1893_v55, 0.0 }
 0x55d   : > { %v1898_v1 = vcombine.high %v1896_v0, %v1896_v0  ;;  %v1905_v62 = vrot.slane %v1896_v0, %v9418_v47 }
 0x55f   : > { %v1912_v10 = vrot.slane %v1898_v1, %v9418_v47  ;;  %v1913_v15 = vcombine.high %v1905_v62, %v1905_v62  ;;  %v1921_v19 = vrot.slane %v1905_v62, %v9418_v47  ;;  %v6673_v1 = vld [vmem:[%s9170_s28 + $0x1a8] sm:$0xff] }
 0x560   : > { %v7567_v21 = vpop.f32.mrb[28].mxu0 }
 0x561   : > { %v1914_v3 = vcombine.high %v1912_v10, %v1912_v10  ;;  %v1928_v23 = vrot.slane %v1912_v10, %v9418_v47  ;;  %v1935_v25 = vrot.slane %v1913_v15, %v9418_v47  ;;  %v1943_v27 = vcombine.high %v1921_v19, %v1921_v19  ;;  %1955 = vst.msk [vmem:[%s9172_s16 + $0x3] sm:$0x1] %vm877_vm3, %v1921_v19  ;;  %v2042_v17 = vpop.f32.mrb[29].mxu0  ;;  %v6672_v19 = vld [vmem:[%s9170_s28 + $0x1a0] sm:$0xff] }
 0x562   : > { %v2048_v33 = vadd.f32 %v7567_v21, %v9320_v40  ;;  %v2043_v35 = vadd.f32 %v2042_v17, %v9316_v38 }
 0x563   : > { %v1942_v28 = vrot.slane %v1914_v3, %v9418_v47  ;;  %v1944_v4 = vcombine.high %v1928_v23, %v1928_v23  ;;  %v1945_v42 = vcombine.high %v1935_v25, %v1935_v25  ;;  %1956 = vst.msk [vmem:[%s9172_s16 + $0x13] sm:$0x1] %vm877_vm3, %v1935_v25  ;;  %1957 = vst.msk [vmem:[%s9172_s16 + $0x23] sm:$0x1] %vm877_vm3, %v1943_v27 }
 0x564   : > { %1959 = vst.msk [vmem:[%s9172_s16 + $0x43] sm:$0x1] %vm877_vm3, %v1928_v23  ;;  %v2102_v43 = vadd.f32 %v6669_v29, %v2048_v33  ;;  %v2101_v6 = vadd.f32 %v6668_v31, %v2043_v35  ;;  %v7570_v53 = vpop.f32.mrb[30].mxu0  ;;  %v6675_v29 = vld [vmem:[%s9170_s28 + $0x1b8] sm:$0xff]  ;;  %v6674_v35 = vld [vmem:[%s9170_s28 + $0x1b0] sm:$0xff] }
 0x565   : > { %v1946_v50 = vcombine.high %v1942_v28, %v1942_v28  ;;  %1958 = vst.msk [vmem:[%s9172_s16 + $0x33] sm:$0x1] %vm877_vm3, %v1945_v42  ;;  %1960 = vst.msk [vmem:[%s9172_s16 + $0x53] sm:$0x1] %vm877_vm3, %v1942_v28  ;;  %v2058_v46 = vadd.f32 %v7570_v53, %v9322_v41  ;;  %v2052_v57 = vpop.f32.mrb[31].mxu0 }
 0x566   : > { %1961 = vst.msk [vmem:[%s9172_s16 + $0x63] sm:$0x1] %vm877_vm3, %v1944_v4  ;;  %v6693_v52 = vmul.f32 -1.442695, %v2102_v43  ;;  %v6692_v16 = vmul.f32 -1.442695, %v2101_v6  ;;  %v2053_v55 = vadd.f32 %v2052_v57, %v9318_v39 }
 0x567   : > { %1962 = vst.msk [vmem:[%s9172_s16 + $0x73] sm:$0x1] %vm877_vm3, %v1946_v50  ;;  %v2104_v63 = vadd.f32 %v6671_v48, %v2058_v46 }
 0x568   : > { %8450 = vpow2.f32 %v6693_v52  ;;  %v2103_v0 = vadd.f32 %v6670_v54, %v2053_v55  ;;  %v7573_v62 = vpop.f32.mrb[32].mxu0 }
 0x569   : > { %8452 = vpow2.f32 %v6692_v16  ;;  %v6695_v10 = vmul.f32 -1.442695, %v2104_v63  ;;  %v2068_v15 = vadd.f32 %v7573_v62, %v9331_v56  ;;  %v2062_v21 = vpop.f32.mrb[33].mxu0 }
 0x56a   : > { %v6694_v3 = vmul.f32 -1.442695, %v2103_v0  ;;  %v2063_v23 = vadd.f32 %v2062_v21, %v9334_v59 }
 0x56b   : > { %8454 = vpow2.f32 %v6695_v10  ;;  %v2130_v25 = vadd.f32 %v6673_v1, %v2068_v15 }
 0x56c   : > { %8456 = vpow2.f32 %v6694_v3  ;;  %v2129_v27 = vadd.f32 %v6672_v19, %v2063_v23  ;;  %v7576_v31 = vpop.f32.mrb[34].mxu0 }
 0x56d   : > { %v6697_v17 = vmul.f32 -1.442695, %v2130_v25  ;;  %v2078_v33 = vadd.f32 %v7576_v31, %v9340_v12  ;;  %v2072_v28 = vpop.f32.mrb[35].mxu0 }
 0x56e   : > { %v6696_v4 = vmul.f32 -1.442695, %v2129_v27  ;;  %v2073_v42 = vadd.f32 %v2072_v28, %v9343_v18 }
 0x56f   : > { %8458 = vpow2.f32 %v6697_v17  ;;  %v2132_v43 = vadd.f32 %v6675_v29, %v2078_v33  ;;  %v6677_v33 = vld [vmem:[%s9170_s28 + $0x1c8] sm:$0xff] }
 0x570   : > { %8460 = vpow2.f32 %v6696_v4  ;;  %v2131_v6 = vadd.f32 %v6674_v35, %v2073_v42  ;;  %v7579_v48 = vpop.f32.mrb[36].mxu0  ;;  %v6676_v42 = vld [vmem:[%s9170_s28 + $0x1c0] sm:$0xff] }
 0x571   : > { %v6699_v53 = vmul.f32 -1.442695, %v2132_v43  ;;  %v2082_v50 = vpop.f32.mrb[37].mxu0  ;;  %v2088_v29 = vadd.f32 %v7579_v48, %v9348_v60 }
 0x572   : > { %v8451_v46 = vpop.eup %8450  ;;  %v6698_v54 = vmul.f32 -1.442695, %v2131_v6  ;;  %v2083_v35 = vadd.f32 %v2082_v50, %v9350_v61  ;;  %v6678_v50 = vld [vmem:[%s9170_s28 + $0x1d0] sm:$0xff] }
 0x573   : > { %v8453_v57 = vpop.eup %8452  ;;  %v2118_v52 = vadd.f32 1.0, %v8451_v46  ;;  %8462 = vpow2.f32 %v6699_v53 }
 0x574   : > { %v2117_v16 = vadd.f32 1.0, %v8453_v57  ;;  %8464 = vpow2.f32 %v6698_v54  ;;  %v7582_v55 = vpop.f32.mrb[38].mxu0  ;;  %v6679_v54 = vld [vmem:[%s9170_s28 + $0x1d8] sm:$0xff] }
 0x575   : > { %v8455_v63 = vpop.eup %8454  ;;  %8466 = vrcp.f32 %v2118_v52  ;;  %v2092_v0 = vpop.f32.mrb[39].mxu0  ;;  %v2098_v6 = vadd.f32 %v7582_v55, %v9356_v20 }
 0x576   : > { %v8457_v1 = vpop.eup %8456  ;;  %8468 = vrcp.f32 %v2117_v16  ;;  %v2120_v62 = vadd.f32 1.0, %v8455_v63  ;;  %v2093_v48 = vadd.f32 %v2092_v0, %v9358_v24 }
 0x577   : > { %v2119_v10 = vadd.f32 1.0, %v8457_v1 }
 0x578   : > { %8470 = vrcp.f32 %v2120_v62 }
 0x579   : > { %v8459_v15 = vpop.eup %8458  ;;  %8472 = vrcp.f32 %v2119_v10 }
 0x57a   : > { %v8461_v19 = vpop.eup %8460  ;;  %v2146_v21 = vadd.f32 1.0, %v8459_v15 }
 0x57b   : > { %v2145_v23 = vadd.f32 1.0, %v8461_v19 }
 0x57c   : > { %8474 = vrcp.f32 %v2146_v21 }
 0x57d   : > { %v8463_v3 = vpop.eup %8462  ;;  %8476 = vrcp.f32 %v2145_v23 }
 0x57e   : > { %v8465_v25 = vpop.eup %8464  ;;  %v2148_v27 = vadd.f32 1.0, %v8463_v3 }
 0x57f   : > { %v8467_v31 = vpop.eup %8466  ;;  %v2147_v17 = vadd.f32 1.0, %v8465_v25 }
 0x580   : > { %v8469_v28 = vpop.eup %8468  ;;  %v2158_v4 = vmul.f32 %v8467_v31, %v2088_v29  ;;  %8478 = vrcp.f32 %v2148_v27 }
 0x581   : > { %v2157_v43 = vmul.f32 %v8469_v28, %v2083_v35  ;;  %8480 = vrcp.f32 %v2147_v17 }
 0x582   : > { %v8471_v53 = vpop.eup %8470  ;;  %v2162_v46 = vadd.f32 %v6677_v33, %v2158_v4 }
 0x583   : > { %v8473_v57 = vpop.eup %8472  ;;  %v2161_v52 = vadd.f32 %v6676_v42, %v2157_v43  ;;  %v2160_v16 = vmul.f32 %v8471_v53, %v2098_v6 }
 0x584   : > { %8482 = vtanh.f32 %v2162_v46  ;;  %v2159_v63 = vmul.f32 %v8473_v57, %v2093_v48  ;;  %v6702_v57 = vld [vmem:[%s9170_s28 + $0x1e8] sm:$0xff] }
 0x585   : > { %8484 = vtanh.f32 %v2161_v52  ;;  %v2164_v1 = vadd.f32 %v6679_v54, %v2160_v16  ;;  %v6701_v52 = vld [vmem:[%s9170_s28 + $0x1e0] sm:$0xff] }
 0x586   : > { %v2163_v62 = vadd.f32 %v6678_v50, %v2159_v63  ;;  %v8475_v10 = vpop.eup %8474 }
 0x587   : > { %8486 = vtanh.f32 %v2164_v1  ;;  %v8477_v55 = vpop.eup %8476  ;;  %v2170_v21 = vsub.f32 1.0, %v8475_v10  ;;  %v2178_v27 = vmul.f32 %v8475_v10, %v9714_v45 }
 0x588   : > { %8488 = vtanh.f32 %v2163_v62  ;;  %v2169_v23 = vsub.f32 1.0, %v8477_v55  ;;  %v2177_v31 = vmul.f32 %v8477_v55, %v9716_v51 }
 0x58a   : > { %v8479_v15 = vpop.eup %8478 }
 0x58b   : > { %v8481_v19 = vpop.eup %8480  ;;  %v2172_v17 = vsub.f32 1.0, %v8479_v15  ;;  %v2180_v6 = vmul.f32 %v8479_v15, %v9722_v58 }
 0x58c   : > { %v2171_v28 = vsub.f32 1.0, %v8481_v19  ;;  %v2179_v46 = vmul.f32 %v8481_v19, %v9724_v49  ;;  %v6704_v19 = vld [vmem:[%s9170_s28 + $0x1f8] sm:$0xff] }
 0x58e   : > { %v8483_v3 = vpop.eup %8482 }
 0x58f   : > { %v8485_v0 = vpop.eup %8484  ;;  %v2174_v25 = vmul.f32 %v8483_v3, %v2170_v21 }
 0x590   : > { %v2173_v29 = vmul.f32 %v8485_v0, %v2169_v23  ;;  %v6703_v0 = vld [vmem:[%s9170_s28 + $0x1f0] sm:$0xff] }
 0x591   : > { %v8487_v33 = vpop.eup %8486  ;;  %v9812_v35 = vadd.f32 %v2178_v27, %v2174_v25 }
 0x592   : > { %v8489_v4 = vpop.eup %8488  ;;  %v9814_v42 = vadd.f32 %v2177_v31, %v2173_v29  ;;  %v2176_v43 = vmul.f32 %v8487_v33, %v2172_v17 }
 0x593   : > { %v2175_v53 = vmul.f32 %v8489_v4, %v2171_v28  ;;  %v6706_v28 = vld [vmem:[%s9170_s28 + $0x208] sm:$0xff] }
 0x594   : > { %v8066_v45 = vpack.c.bf16 %v9812_v35, %v9814_v42  ;;  %v9820_v54 = vadd.f32 %v2180_v6, %v2176_v43 }
 0x595   : > { %v9822_v51 = vadd.f32 %v2179_v46, %v2175_v53  ;;  %v6705_v53 = vld [vmem:[%s9170_s28 + $0x200] sm:$0xff] }
 0x596   : > { %8067 = vmatpush3.bf16.msra.mxu1 %v8066_v45 }
 0x597   : > { %8068 = vmatprep.subr.bf16.mxu1 %v9052_v36  ;;  %v8069_v48 = vpack.c.bf16 %v9820_v54, %v9822_v51 }
 0x59a   : > { %8070 = vmatpush3.bf16.msra.mxu1 %v8069_v48 }
 0x59b   : > { %8072 = vmatprep.subr.bf16.mxu1 %v8066_v45 }
 0x59d   : > { %7592 = vmatmul.mubr.msk.f32.vlgmr.msra.gmra.mrb[28].mxu1 %vm494_vm1, %v9732_v2 }
 0x59e   : > { %8074 = vmatpush3.bf16.msra.mxu1 %v8066_v45  ;;  %7602 = vmatprep.mubr.msk.f32.mxu1 %vm494_vm1, %v9581_v34 }
 0x59f   : > { %8076 = vmatprep.subr.bf16.mxu1 %v8069_v48 }
 0x5a2   : > { %8078 = vmatpush3.bf16.msra.mxu1 %v8069_v48 }
 0x5a3   : > { %8093 = vmatprep.subr.bf16.mxu1 %v9052_v36 }
 0x5a5   : > { %7603 = vmatmul.mubr.msk.f32.vlgmr.msra.gmra.mrb[30].mxu1 %vm494_vm1, %v9589_v13 }
 0x5a6   : > { %7605 = vmatprep.mubr.msk.f32.mxu1 %vm494_vm1, %v9596_v8 }
 0x5a9   : > { %7606 = vmatmul.mubr.msk.f32.gmra.mrb[32].mxu1 %vm494_vm1, %v9603_v11 }
 0x5aa   : > { %7608 = vmatprep.mubr.msk.f32.mxu1 %vm494_vm1, %v9610_v14 }
 0x5ad   : > { %7609 = vmatmul.mubr.msk.f32.gmra.mrb[34].mxu1 %vm494_vm1, %v9617_v22 }
 0x5ae   : > { %7611 = vmatprep.mubr.msk.f32.mxu1 %vm494_vm1, %v9624_v26 }
 0x5b1   : > { %7612 = vmatmul.mubr.msk.f32.gmra.mrb[36].mxu1 %vm494_vm1, %v9631_v30 }
 0x5b2   : > { %7614 = vmatprep.mubr.msk.f32.mxu1 %vm494_vm1, %v9638_v32 }
 0x5b5   : > { %7615 = vmatmul.mubr.msk.f32.gmra.mrb[38].mxu1 %vm494_vm1, %v9645_v7 }
 0x5b6   : > { %7617 = vmatprep.mubr.msk.f32.mxu1 %vm494_vm1, %v9652_v5 }
 0x5b9   : > { %7618 = vmatmul.mubr.msk.f32.gmra.mrb[40].mxu1 %vm494_vm1, %v9659_v9 }
 0x5ba   : > { %7665 = vmatprep.mubr.msk.f32.mxu1 %vm9053_vm2, %v9054_v37 }
 0x670   : > { %v2251_v34 = vpop.f32.mrb[28].mxu1 }
 0x671   : > { %v2252_v13 = vadd.f32 %v2251_v34, %v9415_v44  ;;  %v7593_v8 = vpop.f32.mrb[29].mxu1 }
 0x672   : > { %v6708_v8 = vld [vmem:[%s9170_s28 + $0x218] sm:$0xff] }
 0x673   : > { %v2255_v11 = vmax.f32 %v2252_v13, 0.0 }
 0x675   : > { %v2257_v14 = vcombine.high %v2255_v11, %v2255_v11  ;;  %v2264_v22 = vrot.slane %v2255_v11, %v9418_v47 }
 0x677   : > { %v2271_v26 = vrot.slane %v2257_v14, %v9418_v47  ;;  %v2272_v30 = vcombine.high %v2264_v22, %v2264_v22  ;;  %v2280_v32 = vrot.slane %v2264_v22, %v9418_v47 }
 0x678   : > { %v7604_v7 = vpop.f32.mrb[30].mxu1 }
 0x679   : > { %v2273_v5 = vcombine.high %v2271_v26, %v2271_v26  ;;  %v2287_v9 = vrot.slane %v2271_v26, %v9418_v47  ;;  %v2294_v58 = vrot.slane %v2272_v30, %v9418_v47  ;;  %v2302_v49 = vcombine.high %v2280_v32, %v2280_v32  ;;  %2314 = vst.msk [vmem:[%s9172_s16 + $0x4] sm:$0x1] %vm877_vm3, %v2280_v32  ;;  %v2401_v16 = vpop.f32.mrb[31].mxu1  ;;  %v6707_v26 = vld [vmem:[%s9170_s28 + $0x210] sm:$0xff] }
 0x67a   : > { %v2407_v50 = vadd.f32 %v7604_v7, %v9320_v40  ;;  %v2402_v63 = vadd.f32 %v2401_v16, %v9316_v38 }
 0x67b   : > { %v2301_v1 = vrot.slane %v2273_v5, %v9418_v47  ;;  %v2303_v62 = vcombine.high %v2287_v9, %v2287_v9  ;;  %v2304_v10 = vcombine.high %v2294_v58, %v2294_v58  ;;  %2315 = vst.msk [vmem:[%s9172_s16 + $0x14] sm:$0x1] %vm877_vm3, %v2294_v58  ;;  %2316 = vst.msk [vmem:[%s9172_s16 + $0x24] sm:$0x1] %vm877_vm3, %v2302_v49 }
 0x67c   : > { %2318 = vst.msk [vmem:[%s9172_s16 + $0x44] sm:$0x1] %vm877_vm3, %v2287_v9  ;;  %v2461_v55 = vadd.f32 %v6702_v57, %v2407_v50  ;;  %v2460_v15 = vadd.f32 %v6701_v52, %v2402_v63  ;;  %v7607_v21 = vpop.f32.mrb[32].mxu1 }
 0x67d   : > { %v2305_v3 = vcombine.high %v2301_v1, %v2301_v1  ;;  %2317 = vst.msk [vmem:[%s9172_s16 + $0x34] sm:$0x1] %vm877_vm3, %v2304_v10  ;;  %2319 = vst.msk [vmem:[%s9172_s16 + $0x54] sm:$0x1] %vm877_vm3, %v2301_v1  ;;  %v2417_v23 = vadd.f32 %v7607_v21, %v9322_v41  ;;  %v2411_v25 = vpop.f32.mrb[33].mxu1 }
 0x67e   : > { %2320 = vst.msk [vmem:[%s9172_s16 + $0x64] sm:$0x1] %vm877_vm3, %v2303_v62  ;;  %v6726_v27 = vmul.f32 -1.442695, %v2461_v55  ;;  %v6725_v29 = vmul.f32 -1.442695, %v2460_v15  ;;  %v2412_v31 = vadd.f32 %v2411_v25, %v9318_v39 }
 0x67f   : > { %2321 = vst.msk [vmem:[%s9172_s16 + $0x74] sm:$0x1] %vm877_vm3, %v2305_v3  ;;  %v2463_v17 = vadd.f32 %v6704_v19, %v2417_v23 }
 0x680   : > { %8490 = vpow2.f32 %v6726_v27  ;;  %v2462_v33 = vadd.f32 %v6703_v0, %v2412_v31  ;;  %v7610_v4 = vpop.f32.mrb[34].mxu1 }
 0x681   : > { %8492 = vpow2.f32 %v6725_v29  ;;  %v6728_v43 = vmul.f32 -1.442695, %v2463_v17  ;;  %v2427_v6 = vadd.f32 %v7610_v4, %v9331_v56  ;;  %v2421_v46 = vpop.f32.mrb[35].mxu1  ;;  %v6710_v4 = vld [vmem:[%s9170_s28 + $0x228] sm:$0xff] }
 0x682   : > { %v6727_v45 = vmul.f32 -1.442695, %v2462_v33  ;;  %v2422_v48 = vadd.f32 %v2421_v46, %v9334_v59  ;;  %v6709_v46 = vld [vmem:[%s9170_s28 + $0x220] sm:$0xff] }
 0x683   : > { %8494 = vpow2.f32 %v6728_v43  ;;  %v2489_v34 = vadd.f32 %v6706_v28, %v2427_v6 }
 0x684   : > { %8496 = vpow2.f32 %v6727_v45  ;;  %v2488_v13 = vadd.f32 %v6705_v53, %v2422_v48  ;;  %v7613_v11 = vpop.f32.mrb[36].mxu1 }
 0x685   : > { %v6730_v14 = vmul.f32 -1.442695, %v2489_v34  ;;  %v2437_v22 = vadd.f32 %v7613_v11, %v9340_v12  ;;  %v2431_v30 = vpop.f32.mrb[37].mxu1 }
 0x686   : > { %v6729_v32 = vmul.f32 -1.442695, %v2488_v13  ;;  %v2432_v7 = vadd.f32 %v2431_v30, %v9343_v18  ;;  %v6711_v30 = vld [vmem:[%s9170_s28 + $0x230] sm:$0xff] }
 0x687   : > { %8498 = vpow2.f32 %v6730_v14  ;;  %v2491_v5 = vadd.f32 %v6708_v8, %v2437_v22  ;;  %v6712_v8 = vld [vmem:[%s9170_s28 + $0x238] sm:$0xff] }
 0x688   : > { %8500 = vpow2.f32 %v6729_v32  ;;  %v2490_v9 = vadd.f32 %v6707_v26, %v2432_v7  ;;  %v7616_v58 = vpop.f32.mrb[38].mxu1 }
 0x689   : > { %v6732_v49 = vmul.f32 -1.442695, %v2491_v5  ;;  %v2441_v57 = vpop.f32.mrb[39].mxu1  ;;  %v2447_v17 = vadd.f32 %v7616_v58, %v9348_v60 }
 0x68a   : > { %v8491_v52 = vpop.eup %8490  ;;  %v6731_v16 = vmul.f32 -1.442695, %v2490_v9  ;;  %v2442_v43 = vadd.f32 %v2441_v57, %v9350_v61 }
 0x68b   : > { %v8493_v50 = vpop.eup %8492  ;;  %v2477_v63 = vadd.f32 1.0, %v8491_v52  ;;  %8502 = vpow2.f32 %v6732_v49 }
 0x68c   : > { %v2476_v1 = vadd.f32 1.0, %v8493_v50  ;;  %8504 = vpow2.f32 %v6731_v16  ;;  %v7619_v62 = vpop.f32.mrb[40].mxu1 }
 0x68d   : > { %v8495_v10 = vpop.eup %8494  ;;  %8506 = vrcp.f32 %v2477_v63  ;;  %v2451_v55 = vpop.f32.mrb[41].mxu1  ;;  %v2457_v48 = vadd.f32 %v7619_v62, %v9356_v20 }
 0x68e   : > { %v8497_v15 = vpop.eup %8496  ;;  %8508 = vrcp.f32 %v2476_v1  ;;  %v2479_v19 = vadd.f32 1.0, %v8495_v10  ;;  %v2452_v11 = vadd.f32 %v2451_v55, %v9358_v24 }
 0x68f   : > { %v2478_v21 = vadd.f32 1.0, %v8497_v15 }
 0x690   : > { %8510 = vrcp.f32 %v2479_v19 }
 0x691   : > { %v8499_v3 = vpop.eup %8498  ;;  %8512 = vrcp.f32 %v2478_v21 }
 0x692   : > { %v8501_v23 = vpop.eup %8500  ;;  %v2505_v0 = vadd.f32 1.0, %v8499_v3 }
 0x693   : > { %v2504_v27 = vadd.f32 1.0, %v8501_v23 }
 0x694   : > { %8514 = vrcp.f32 %v2505_v0 }
 0x695   : > { %v8503_v25 = vpop.eup %8502  ;;  %8516 = vrcp.f32 %v2504_v27 }
 0x696   : > { %v8505_v29 = vpop.eup %8504  ;;  %v2507_v31 = vadd.f32 1.0, %v8503_v25 }
 0x697   : > { %v8507_v33 = vpop.eup %8506  ;;  %v2506_v28 = vadd.f32 1.0, %v8505_v29 }
 0x698   : > { %v8509_v6 = vpop.eup %8508  ;;  %v2517_v53 = vmul.f32 %v8507_v33, %v2447_v17  ;;  %8518 = vrcp.f32 %v2507_v31 }
 0x699   : > { %v2516_v45 = vmul.f32 %v8509_v6, %v2442_v43  ;;  %8520 = vrcp.f32 %v2506_v28  ;;  %v9947_v28 = vld [vmem:[%s11139_s1 + $0x18] sm:$0xff]  ;;  %v9961_v43 = vld [vmem:[%s11139_s1 + $0x28] sm:$0xff]  ;;  %v9968_v6 = vld [vmem:[%s11139_s1 + $0x30] sm:$0xff] }
 0x69a   : > { %v8511_v34 = vpop.eup %8510  ;;  %v2521_v13 = vadd.f32 %v6710_v4, %v2517_v53  ;;  %v9954_v4 = vld [vmem:[%s11139_s1 + $0x20] sm:$0xff]  ;;  %v9975_v53 = vld [vmem:[%s11139_s1 + $0x38] sm:$0xff] }
 0x69b   : > { %v8513_v14 = vpop.eup %8512  ;;  %v2520_v22 = vadd.f32 %v6709_v46, %v2516_v45  ;;  %v2519_v26 = vmul.f32 %v8511_v34, %v2457_v48  ;;  %v9982_v46 = vld [vmem:[%s11139_s1 + $0x40] sm:$0xff]  ;;  %v9989_v45 = vld [vmem:[%s11139_s1 + $0x48] sm:$0xff]  ;;  %v9996_v48 = vld [vmem:[%s11139_s1 + $0x50] sm:$0xff] }
 0x69c   : > { %8522 = vtanh.f32 %v2521_v13  ;;  %v2518_v32 = vmul.f32 %v8513_v14, %v2452_v11  ;;  %v10003_v34 = vld [vmem:[%s11139_s1 + $0x58] sm:$0xff] }
 0x69d   : > { %8524 = vtanh.f32 %v2520_v22  ;;  %v2523_v7 = vadd.f32 %v6712_v8, %v2519_v26 }
 0x69e   : > { %v2522_v5 = vadd.f32 %v6711_v30, %v2518_v32  ;;  %v8515_v9 = vpop.eup %8514 }
 0x69f   : > { %8526 = vtanh.f32 %v2523_v7  ;;  %v8517_v58 = vpop.eup %8516  ;;  %v2529_v52 = vsub.f32 1.0, %v8515_v9  ;;  %v2537_v62 = vmul.f32 %v8515_v9, %v9812_v35 }
 0x6a0   : > { %8528 = vtanh.f32 %v2522_v5  ;;  %v2528_v50 = vsub.f32 1.0, %v8517_v58  ;;  %v2536_v55 = vmul.f32 %v8517_v58, %v9814_v42 }
 0x6a2   : > { %v8519_v49 = vpop.eup %8518 }
 0x6a3   : > { %v8521_v57 = vpop.eup %8520  ;;  %v2531_v15 = vsub.f32 1.0, %v8519_v49  ;;  %v2539_v27 = vmul.f32 %v8519_v49, %v9820_v54  ;;  %v9925_v54 = vld [vmem:[%s11139_s1] sm:$0xff] }
 0x6a4   : > { %v2530_v3 = vsub.f32 1.0, %v8521_v57  ;;  %v2538_v31 = vmul.f32 %v8521_v57, %v9822_v51  ;;  %v9933_v51 = vld [vmem:[%s11139_s1 + $0x8] sm:$0xff] }
 0x6a6   : > { %v8523_v16 = vpop.eup %8522 }
 0x6a7   : > { %v8525_v63 = vpop.eup %8524  ;;  %v2533_v1 = vmul.f32 %v8523_v16, %v2529_v52  ;;  %v6735_v52 = vld [vmem:[%s9170_s28 + $0x248] sm:$0xff]  ;;  %v6734_v16 = vld [vmem:[%s9170_s28 + $0x240] sm:$0xff] }
 0x6a8   : > { %v2532_v10 = vmul.f32 %v8525_v63, %v2528_v50 }
 0x6a9   : > { %v8527_v19 = vpop.eup %8526  ;;  %v9905_v21 = vadd.f32 %v2537_v62, %v2533_v1 }
 0x6aa   : > { %v8529_v23 = vpop.eup %8528  ;;  %v9907_v0 = vadd.f32 %v2536_v55, %v2532_v10  ;;  %v2535_v25 = vmul.f32 %v8527_v19, %v2531_v15 }
 0x6ab   : > { %v2534_v29 = vmul.f32 %v8529_v23, %v2530_v3  ;;  %v6737_v3 = vld [vmem:[%s9170_s28 + $0x258] sm:$0xff] }
 0x6ac   : > { %v8080_v35 = vpack.c.bf16 %v9905_v21, %v9907_v0  ;;  %v9913_v17 = vadd.f32 %v2539_v27, %v2535_v25 }
 0x6ad   : > { %v9915_v42 = vadd.f32 %v2538_v31, %v2534_v29  ;;  %v6736_v29 = vld [vmem:[%s9170_s28 + $0x250] sm:$0xff] }
 0x6ae   : > { %8081 = vmatpush3.bf16.msra.mxu0 %v8080_v35 }
 0x6af   : > { %8082 = vmatprep.subr.bf16.mxu0 %v9052_v36  ;;  %v8083_v33 = vpack.c.bf16 %v9913_v17, %v9915_v42 }
 0x6b2   : > { %8084 = vmatpush3.bf16.msra.mxu0 %v8083_v33 }
 0x6b3   : > { %8086 = vmatprep.subr.bf16.mxu0 %v8080_v35 }
 0x6b5   : > { %7629 = vmatmul.mubr.msk.f32.vlgmr.msra.gmra.mrb[40].mxu0 %vm494_vm1, %v9732_v2  ;;  %v9940_v2 = vld [vmem:[%s11139_s1 + $0x10] sm:$0xff] }
 0x6b6   : > { %8088 = vmatpush3.bf16.msra.mxu0 %v8080_v35  ;;  %7639 = vmatprep.mubr.msk.f32.mxu0 %vm494_vm1, %v9925_v54 }
 0x6b7   : > { %8090 = vmatprep.subr.bf16.mxu0 %v8083_v33 }
 0x6ba   : > { %8092 = vmatpush3.bf16.msra.mxu0 %v8083_v33 }
 0x6bb   : > { %8107 = vmatprep.subr.bf16.mxu0 %v9052_v36 }
 0x6bd   : > { %7640 = vmatmul.mubr.msk.f32.vlgmr.msra.gmra.mrb[42].mxu0 %vm494_vm1, %v9933_v51 }
 0x6be   : > { %7642 = vmatprep.mubr.msk.f32.mxu0 %vm494_vm1, %v9940_v2 }
 0x6c1   : > { %7643 = vmatmul.mubr.msk.f32.gmra.mrb[44].mxu0 %vm494_vm1, %v9947_v28 }
 0x6c2   : > { %7645 = vmatprep.mubr.msk.f32.mxu0 %vm494_vm1, %v9954_v4 }
 0x6c5   : > { %7646 = vmatmul.mubr.msk.f32.gmra.mrb[46].mxu0 %vm494_vm1, %v9961_v43 }
 0x6c6   : > { %7648 = vmatprep.mubr.msk.f32.mxu0 %vm494_vm1, %v9968_v6 }
 0x6c9   : > { %7649 = vmatmul.mubr.msk.f32.gmra.mrb[48].mxu0 %vm494_vm1, %v9975_v53 }
 0x6ca   : > { %7651 = vmatprep.mubr.msk.f32.mxu0 %vm494_vm1, %v9982_v46 }
 0x6cd   : > { %7652 = vmatmul.mubr.msk.f32.gmra.mrb[50].mxu0 %vm494_vm1, %v9989_v45 }
 0x6ce   : > { %7654 = vmatprep.mubr.msk.f32.mxu0 %vm494_vm1, %v9996_v48 }
 0x6d1   : > { %7655 = vmatmul.mubr.msk.f32.gmra.mrb[52].mxu0 %vm494_vm1, %v10003_v34 }
 0x6d2   : > { %7702 = vmatprep.mubr.msk.f32.mxu0 %vm9053_vm2, %v9054_v37 }
 0x788   : > { %v2610_v13 = vpop.f32.mrb[40].mxu0 }
 0x789   : > { %v2611_v8 = vadd.f32 %v2610_v13, %v9415_v44  ;;  %v7630_v11 = vpop.f32.mrb[41].mxu0 }
 0x78b   : > { %v2614_v14 = vmax.f32 %v2611_v8, 0.0 }
 0x78d   : > { %v2616_v22 = vcombine.high %v2614_v14, %v2614_v14  ;;  %v2623_v26 = vrot.slane %v2614_v14, %v9418_v47  ;;  %v6739_v14 = vld [vmem:[%s9170_s28 + $0x268] sm:$0xff] }
 0x78f   : > { %v2630_v30 = vrot.slane %v2616_v22, %v9418_v47  ;;  %v2631_v32 = vcombine.high %v2623_v26, %v2623_v26  ;;  %v2639_v7 = vrot.slane %v2623_v26, %v9418_v47 }
 0x790   : > { %v7641_v5 = vpop.f32.mrb[42].mxu0 }
 0x791   : > { %v2632_v9 = vcombine.high %v2630_v30, %v2630_v30  ;;  %v2646_v58 = vrot.slane %v2630_v30, %v9418_v47  ;;  %v2653_v49 = vrot.slane %v2631_v32, %v9418_v47  ;;  %v2661_v57 = vcombine.high %v2639_v7, %v2639_v7  ;;  %2673 = vst.msk [vmem:[%s9172_s16 + $0x5] sm:$0x1] %vm877_vm3, %v2639_v7  ;;  %v2760_v50 = vpop.f32.mrb[43].mxu0  ;;  %v6738_v32 = vld [vmem:[%s9170_s28 + $0x260] sm:$0xff] }
 0x792   : > { %v2766_v63 = vadd.f32 %v7641_v5, %v9320_v40  ;;  %v2761_v1 = vadd.f32 %v2760_v50, %v9316_v38 }
 0x793   : > { %v2660_v62 = vrot.slane %v2632_v9, %v9418_v47  ;;  %v2662_v10 = vcombine.high %v2646_v58, %v2646_v58  ;;  %v2663_v55 = vcombine.high %v2653_v49, %v2653_v49  ;;  %2674 = vst.msk [vmem:[%s9172_s16 + $0x15] sm:$0x1] %vm877_vm3, %v2653_v49  ;;  %2675 = vst.msk [vmem:[%s9172_s16 + $0x25] sm:$0x1] %vm877_vm3, %v2661_v57  ;;  %v6741_v57 = vld [vmem:[%s9170_s28 + $0x278] sm:$0xff] }
 0x794   : > { %2677 = vst.msk [vmem:[%s9172_s16 + $0x45] sm:$0x1] %vm877_vm3, %v2646_v58  ;;  %v2820_v15 = vadd.f32 %v6735_v52, %v2766_v63  ;;  %v2819_v19 = vadd.f32 %v6734_v16, %v2761_v1  ;;  %v7644_v23 = vpop.f32.mrb[44].mxu0  ;;  %v6740_v63 = vld [vmem:[%s9170_s28 + $0x270] sm:$0xff] }
 0x795   : > { %v2664_v25 = vcombine.high %v2660_v62, %v2660_v62  ;;  %2676 = vst.msk [vmem:[%s9172_s16 + $0x35] sm:$0x1] %vm877_vm3, %v2663_v55  ;;  %2678 = vst.msk [vmem:[%s9172_s16 + $0x55] sm:$0x1] %vm877_vm3, %v2660_v62  ;;  %v2776_v27 = vadd.f32 %v7644_v23, %v9322_v41  ;;  %v2770_v31 = vpop.f32.mrb[45].mxu0 }
 0x796   : > { %2679 = vst.msk [vmem:[%s9172_s16 + $0x65] sm:$0x1] %vm877_vm3, %v2662_v10  ;;  %v6759_v35 = vmul.f32 -1.442695, %v2820_v15  ;;  %v6758_v33 = vmul.f32 -1.442695, %v2819_v19  ;;  %v2771_v13 = vadd.f32 %v2770_v31, %v9318_v39 }
 0x797   : > { %2680 = vst.msk [vmem:[%s9172_s16 + $0x75] sm:$0x1] %vm877_vm3, %v2664_v25  ;;  %v2822_v8 = vadd.f32 %v6737_v3, %v2776_v27 }
 0x798   : > { %8530 = vpow2.f32 %v6759_v35  ;;  %v2821_v11 = vadd.f32 %v6736_v29, %v2771_v13  ;;  %v7647_v22 = vpop.f32.mrb[46].mxu0 }
 0x799   : > { %8532 = vpow2.f32 %v6758_v33  ;;  %v6761_v26 = vmul.f32 -1.442695, %v2822_v8  ;;  %v2786_v30 = vadd.f32 %v7647_v22, %v9331_v56  ;;  %v2780_v7 = vpop.f32.mrb[47].mxu0 }
 0x79a   : > { %v6760_v5 = vmul.f32 -1.442695, %v2821_v11  ;;  %v2781_v9 = vadd.f32 %v2780_v7, %v9334_v59 }
 0x79b   : > { %8534 = vpow2.f32 %v6761_v26  ;;  %v2848_v58 = vadd.f32 %v6739_v14, %v2786_v30 }
 0x79c   : > { %8536 = vpow2.f32 %v6760_v5  ;;  %v2847_v49 = vadd.f32 %v6738_v32, %v2781_v9  ;;  %v7650_v52 = vpop.f32.mrb[48].mxu0 }
 0x79d   : > { %v6763_v16 = vmul.f32 -1.442695, %v2848_v58  ;;  %v2796_v50 = vadd.f32 %v7650_v52, %v9340_v12  ;;  %v2790_v1 = vpop.f32.mrb[49].mxu0 }
 0x79e   : > { %v6762_v62 = vmul.f32 -1.442695, %v2847_v49  ;;  %v2791_v10 = vadd.f32 %v2790_v1, %v9343_v18 }
 0x79f   : > { %8538 = vpow2.f32 %v6763_v16  ;;  %v2850_v55 = vadd.f32 %v6741_v57, %v2796_v50  ;;  %v6743_v16 = vld [vmem:[%s9170_s28 + $0x288] sm:$0xff] }
 0x7a0   : > { %8540 = vpow2.f32 %v6762_v62  ;;  %v2849_v15 = vadd.f32 %v6740_v63, %v2791_v10  ;;  %v7653_v19 = vpop.f32.mrb[50].mxu0  ;;  %v6742_v62 = vld [vmem:[%s9170_s28 + $0x280] sm:$0xff] }
 0x7a1   : > { %v6765_v3 = vmul.f32 -1.442695, %v2850_v55  ;;  %v2800_v23 = vpop.f32.mrb[51].mxu0  ;;  %v2806_v49 = vadd.f32 %v7653_v19, %v9348_v60 }
 0x7a2   : > { %v8531_v25 = vpop.eup %8530  ;;  %v6764_v27 = vmul.f32 -1.442695, %v2849_v15  ;;  %v2801_v50 = vadd.f32 %v2800_v23, %v9350_v61  ;;  %v6744_v23 = vld [vmem:[%s9170_s28 + $0x290] sm:$0xff] }
 0x7a3   : > { %v8533_v29 = vpop.eup %8532  ;;  %v2836_v31 = vadd.f32 1.0, %v8531_v25  ;;  %8542 = vpow2.f32 %v6765_v3  ;;  %v6745_v25 = vld [vmem:[%s9170_s28 + $0x298] sm:$0xff] }
 0x7a4   : > { %v2835_v35 = vadd.f32 1.0, %v8533_v29  ;;  %8544 = vpow2.f32 %v6764_v27  ;;  %v7656_v33 = vpop.f32.mrb[52].mxu0 }
 0x7a5   : > { %v8535_v13 = vpop.eup %8534  ;;  %8546 = vrcp.f32 %v2836_v31  ;;  %v2810_v8 = vpop.f32.mrb[53].mxu0  ;;  %v2816_v55 = vadd.f32 %v7656_v33, %v9356_v20 }
 0x7a6   : > { %v8537_v11 = vpop.eup %8536  ;;  %8548 = vrcp.f32 %v2835_v35  ;;  %v2838_v14 = vadd.f32 1.0, %v8535_v13  ;;  %v2811_v19 = vadd.f32 %v2810_v8, %v9358_v24 }
 0x7a7   : > { %v2837_v22 = vadd.f32 1.0, %v8537_v11 }
 0x7a8   : > { %8550 = vrcp.f32 %v2838_v14 }
 0x7a9   : > { %v8539_v26 = vpop.eup %8538  ;;  %8552 = vrcp.f32 %v2837_v22 }
 0x7aa   : > { %v8541_v30 = vpop.eup %8540  ;;  %v2864_v32 = vadd.f32 1.0, %v8539_v26 }
 0x7ab   : > { %v2863_v5 = vadd.f32 1.0, %v8541_v30 }
 0x7ac   : > { %8554 = vrcp.f32 %v2864_v32 }
 0x7ad   : > { %v8543_v7 = vpop.eup %8542  ;;  %8556 = vrcp.f32 %v2863_v5 }
 0x7ae   : > { %v8545_v9 = vpop.eup %8544  ;;  %v2866_v58 = vadd.f32 1.0, %v8543_v7 }
 0x7af   : > { %v8547_v57 = vpop.eup %8546  ;;  %v2865_v52 = vadd.f32 1.0, %v8545_v9 }
 0x7b0   : > { %v8549_v63 = vpop.eup %8548  ;;  %v2876_v1 = vmul.f32 %v8547_v57, %v2806_v49  ;;  %8558 = vrcp.f32 %v2866_v58 }
 0x7b1   : > { %v2875_v10 = vmul.f32 %v8549_v63, %v2801_v50  ;;  %8560 = vrcp.f32 %v2865_v52 }
 0x7b2   : > { %v8551_v15 = vpop.eup %8550  ;;  %v2880_v3 = vadd.f32 %v6743_v16, %v2876_v1 }
 0x7b3   : > { %v8553_v27 = vpop.eup %8552  ;;  %v2879_v29 = vadd.f32 %v6742_v62, %v2875_v10  ;;  %v2878_v31 = vmul.f32 %v8551_v15, %v2816_v55 }
 0x7b4   : > { %8562 = vtanh.f32 %v2880_v3  ;;  %v2877_v35 = vmul.f32 %v8553_v27, %v2811_v19 }
 0x7b5   : > { %8564 = vtanh.f32 %v2879_v29  ;;  %v2882_v13 = vadd.f32 %v6745_v25, %v2878_v31 }
 0x7b6   : > { %v2881_v11 = vadd.f32 %v6744_v23, %v2877_v35  ;;  %v8555_v14 = vpop.eup %8554 }
 0x7b7   : > { %8566 = vtanh.f32 %v2882_v13  ;;  %v8557_v33 = vpop.eup %8556  ;;  %v2888_v30 = vsub.f32 1.0, %v8555_v14  ;;  %v2896_v9 = vmul.f32 %v8555_v14, %v9905_v21 }
 0x7b8   : > { %8568 = vtanh.f32 %v2881_v11  ;;  %v2887_v7 = vsub.f32 1.0, %v8557_v33  ;;  %v2895_v49 = vmul.f32 %v8557_v33, %v9907_v0 }
 0x7ba   : > { %v8559_v22 = vpop.eup %8558 }
 0x7bb   : > { %v8561_v26 = vpop.eup %8560  ;;  %v2890_v57 = vsub.f32 1.0, %v8559_v22  ;;  %v2898_v10 = vmul.f32 %v8559_v22, %v9913_v17  ;;  %v10076_v17 = vld [vmem:[%s11141_s3] sm:$0xff] }
 0x7bc   : > { %v2889_v50 = vsub.f32 1.0, %v8561_v26  ;;  %v2897_v15 = vmul.f32 %v8561_v26, %v9915_v42 }
 0x7be   : > { %v8563_v32 = vpop.eup %8562 }
 0x7bf   : > { %v8565_v8 = vpop.eup %8564  ;;  %v2892_v5 = vmul.f32 %v8563_v32, %v2888_v30  ;;  %v6768_v32 = vld [vmem:[%s9170_s28 + $0x2a8] sm:$0xff] }
 0x7c0   : > { %v2891_v58 = vmul.f32 %v8565_v8, %v2887_v7  ;;  %v6767_v7 = vld [vmem:[%s9170_s28 + $0x2a0] sm:$0xff] }
 0x7c1   : > { %v8567_v52 = vpop.eup %8566  ;;  %v10058_v16 = vadd.f32 %v2896_v9, %v2892_v5 }
 0x7c2   : > { %v8569_v63 = vpop.eup %8568  ;;  %v10060_v1 = vadd.f32 %v2895_v49, %v2891_v58  ;;  %v2894_v62 = vmul.f32 %v8567_v52, %v2890_v57 }
 0x7c3   : > { %v2893_v55 = vmul.f32 %v8569_v63, %v2889_v50  ;;  %v6770_v63 = vld [vmem:[%s9170_s28 + $0x2b8] sm:$0xff] }
 0x7c4   : > { %v8094_v21 = vpack.c.bf16 %v10058_v16, %v10060_v1  ;;  %v10066_v3 = vadd.f32 %v2898_v10, %v2894_v62 }
 0x7c5   : > { %v10068_v0 = vadd.f32 %v2897_v15, %v2893_v55  ;;  %v6769_v15 = vld [vmem:[%s9170_s28 + $0x2b0] sm:$0xff] }
 0x7c6   : > { %8095 = vmatpush3.bf16.msra.mxu1 %v8094_v21 }
 0x7c7   : > { %8096 = vmatprep.subr.bf16.mxu1 %v9052_v36  ;;  %v8097_v25 = vpack.c.bf16 %v10066_v3, %v10068_v0 }
 0x7ca   : > { %8098 = vmatpush3.bf16.msra.mxu1 %v8097_v25 }
 0x7cb   : > { %8100 = vmatprep.subr.bf16.mxu1 %v8094_v21 }
 0x7cd   : > { %7666 = vmatmul.mubr.msk.f32.vlgmr.msra.gmra.mrb[42].mxu1 %vm494_vm1, %v10076_v17 }
 0x7ce   : > { %8102 = vmatpush3.bf16.msra.mxu1 %v8094_v21  ;;  %7676 = vmatprep.mubr.msk.f32.mxu1 %vm494_vm1, %v9925_v54 }
 0x7cf   : > { %8104 = vmatprep.subr.bf16.mxu1 %v8097_v25 }
 0x7d2   : > { %8106 = vmatpush3.bf16.msra.mxu1 %v8097_v25 }
 0x7d3   : > { %8121 = vmatprep.subr.bf16.mxu1 %v9052_v36 }
 0x7d5   : > { %7677 = vmatmul.mubr.msk.f32.vlgmr.msra.gmra.mrb[44].mxu1 %vm494_vm1, %v9933_v51 }
 0x7d6   : > { %7679 = vmatprep.mubr.msk.f32.mxu1 %vm494_vm1, %v9940_v2 }
 0x7d9   : > { %7680 = vmatmul.mubr.msk.f32.gmra.mrb[46].mxu1 %vm494_vm1, %v9947_v28 }
 0x7da   : > { %7682 = vmatprep.mubr.msk.f32.mxu1 %vm494_vm1, %v9954_v4 }
 0x7dd   : > { %7683 = vmatmul.mubr.msk.f32.gmra.mrb[48].mxu1 %vm494_vm1, %v9961_v43 }
 0x7de   : > { %7685 = vmatprep.mubr.msk.f32.mxu1 %vm494_vm1, %v9968_v6 }
 0x7e1   : > { %7686 = vmatmul.mubr.msk.f32.gmra.mrb[50].mxu1 %vm494_vm1, %v9975_v53 }
 0x7e2   : > { %7688 = vmatprep.mubr.msk.f32.mxu1 %vm494_vm1, %v9982_v46 }
 0x7e5   : > { %7689 = vmatmul.mubr.msk.f32.gmra.mrb[52].mxu1 %vm494_vm1, %v9989_v45 }
 0x7e6   : > { %7691 = vmatprep.mubr.msk.f32.mxu1 %vm494_vm1, %v9996_v48 }
 0x7e9   : > { %7692 = vmatmul.mubr.msk.f32.gmra.mrb[54].mxu1 %vm494_vm1, %v10003_v34 }
 0x7ea   : > { %7739 = vmatprep.mubr.msk.f32.mxu1 %vm9053_vm2, %v9054_v37 }
 0x8a0   : > { %v2969_v42 = vpop.f32.mrb[42].mxu1 }
 0x8a1   : > { %v2970_v19 = vadd.f32 %v2969_v42, %v9415_v44  ;;  %v7667_v27 = vpop.f32.mrb[43].mxu1 }
 0x8a3   : > { %v2973_v29 = vmax.f32 %v2970_v19, 0.0 }
 0x8a5   : > { %v2975_v31 = vcombine.high %v2973_v29, %v2973_v29  ;;  %v2982_v23 = vrot.slane %v2973_v29, %v9418_v47 }
 0x8a7   : > { %v2989_v35 = vrot.slane %v2975_v31, %v9418_v47  ;;  %v2990_v13 = vcombine.high %v2982_v23, %v2982_v23  ;;  %v2998_v11 = vrot.slane %v2982_v23, %v9418_v47  ;;  %v6772_v31 = vld [vmem:[%s9170_s28 + $0x2c8] sm:$0xff] }
 0x8a8   : > { %v7678_v14 = vpop.f32.mrb[44].mxu1 }
 0x8a9   : > { %v2991_v33 = vcombine.high %v2989_v35, %v2989_v35  ;;  %v3005_v22 = vrot.slane %v2989_v35, %v9418_v47  ;;  %v3012_v26 = vrot.slane %v2990_v13, %v9418_v47  ;;  %v3020_v30 = vcombine.high %v2998_v11, %v2998_v11  ;;  %3032 = vst.msk [vmem:[%s9172_s16 + $0x6] sm:$0x1] %vm877_vm3, %v2998_v11  ;;  %v3119_v8 = vpop.f32.mrb[45].mxu1  ;;  %v6771_v11 = vld [vmem:[%s9170_s28 + $0x2c0] sm:$0xff] }
 0x8aa   : > { %v3125_v5 = vadd.f32 %v7678_v14, %v9320_v40  ;;  %v3120_v9 = vadd.f32 %v3119_v8, %v9316_v38 }
 0x8ab   : > { %v3019_v58 = vrot.slane %v2991_v33, %v9418_v47  ;;  %v3021_v49 = vcombine.high %v3005_v22, %v3005_v22  ;;  %v3022_v57 = vcombine.high %v3012_v26, %v3012_v26  ;;  %3033 = vst.msk [vmem:[%s9172_s16 + $0x16] sm:$0x1] %vm877_vm3, %v3012_v26  ;;  %3034 = vst.msk [vmem:[%s9172_s16 + $0x26] sm:$0x1] %vm877_vm3, %v3020_v30 }
 0x8ac   : > { %3036 = vst.msk [vmem:[%s9172_s16 + $0x46] sm:$0x1] %vm877_vm3, %v3005_v22  ;;  %v3179_v52 = vadd.f32 %v6768_v32, %v3125_v5  ;;  %v3178_v50 = vadd.f32 %v6767_v7, %v3120_v9  ;;  %v7681_v62 = vpop.f32.mrb[46].mxu1  ;;  %v6774_v32 = vld [vmem:[%s9170_s28 + $0x2d8] sm:$0xff]  ;;  %v6773_v9 = vld [vmem:[%s9170_s28 + $0x2d0] sm:$0xff] }
 0x8ad   : > { %v3023_v10 = vcombine.high %v3019_v58, %v3019_v58  ;;  %3035 = vst.msk [vmem:[%s9172_s16 + $0x36] sm:$0x1] %vm877_vm3, %v3022_v57  ;;  %3037 = vst.msk [vmem:[%s9172_s16 + $0x56] sm:$0x1] %vm877_vm3, %v3019_v58  ;;  %v3135_v55 = vadd.f32 %v7681_v62, %v9322_v41  ;;  %v3129_v21 = vpop.f32.mrb[47].mxu1 }
 0x8ae   : > { %3038 = vst.msk [vmem:[%s9172_s16 + $0x66] sm:$0x1] %vm877_vm3, %v3021_v49  ;;  %v6792_v25 = vmul.f32 -1.442695, %v3179_v52  ;;  %v6791_v42 = vmul.f32 -1.442695, %v3178_v50  ;;  %v3130_v19 = vadd.f32 %v3129_v21, %v9318_v39 }
 0x8af   : > { %3039 = vst.msk [vmem:[%s9172_s16 + $0x76] sm:$0x1] %vm877_vm3, %v3023_v10  ;;  %v3181_v27 = vadd.f32 %v6770_v63, %v3135_v55 }
 0x8b0   : > { %8570 = vpow2.f32 %v6792_v25  ;;  %v3180_v29 = vadd.f32 %v6769_v15, %v3130_v19  ;;  %v7684_v23 = vpop.f32.mrb[48].mxu1 }
 0x8b1   : > { %8572 = vpow2.f32 %v6791_v42  ;;  %v6794_v35 = vmul.f32 -1.442695, %v3181_v27  ;;  %v3145_v13 = vadd.f32 %v7684_v23, %v9331_v56  ;;  %v3139_v14 = vpop.f32.mrb[49].mxu1 }
 0x8b2   : > { %v6793_v33 = vmul.f32 -1.442695, %v3180_v29  ;;  %v3140_v22 = vadd.f32 %v3139_v14, %v9334_v59 }
 0x8b3   : > { %8574 = vpow2.f32 %v6794_v35  ;;  %v3207_v26 = vadd.f32 %v6772_v31, %v3145_v13 }
 0x8b4   : > { %8576 = vpow2.f32 %v6793_v33  ;;  %v3206_v30 = vadd.f32 %v6771_v11, %v3140_v22  ;;  %v7687_v7 = vpop.f32.mrb[50].mxu1 }
 0x8b5   : > { %v6796_v8 = vmul.f32 -1.442695, %v3207_v26  ;;  %v3155_v5 = vadd.f32 %v7687_v7, %v9340_v12  ;;  %v3149_v58 = vpop.f32.mrb[51].mxu1 }
 0x8b6   : > { %v6795_v49 = vmul.f32 -1.442695, %v3206_v30  ;;  %v3150_v57 = vadd.f32 %v3149_v58, %v9343_v18 }
 0x8b7   : > { %8578 = vpow2.f32 %v6796_v8  ;;  %v3209_v52 = vadd.f32 %v6774_v32, %v3155_v5  ;;  %v6776_v5 = vld [vmem:[%s9170_s28 + $0x2e8] sm:$0xff] }
 0x8b8   : > { %8580 = vpow2.f32 %v6795_v49  ;;  %v3208_v50 = vadd.f32 %v6773_v9, %v3150_v57  ;;  %v7690_v63 = vpop.f32.mrb[52].mxu1  ;;  %v6775_v57 = vld [vmem:[%s9170_s28 + $0x2e0] sm:$0xff] }
 0x8b9   : > { %v6798_v62 = vmul.f32 -1.442695, %v3209_v52  ;;  %v3159_v10 = vpop.f32.mrb[53].mxu1  ;;  %v3165_v32 = vadd.f32 %v7690_v63, %v9348_v60 }
 0x8ba   : > { %v8571_v55 = vpop.eup %8570  ;;  %v6797_v15 = vmul.f32 -1.442695, %v3208_v50  ;;  %v3160_v9 = vadd.f32 %v3159_v10, %v9350_v61  ;;  %v6777_v10 = vld [vmem:[%s9170_s28 + $0x2f0] sm:$0xff] }
 0x8bb   : > { %v8573_v21 = vpop.eup %8572  ;;  %v3195_v25 = vadd.f32 1.0, %v8571_v55  ;;  %8582 = vpow2.f32 %v6798_v62 }
 0x8bc   : > { %v3194_v42 = vadd.f32 1.0, %v8573_v21  ;;  %8584 = vpow2.f32 %v6797_v15  ;;  %v7693_v19 = vpop.f32.mrb[54].mxu1  ;;  %v6778_v15 = vld [vmem:[%s9170_s28 + $0x2f8] sm:$0xff] }
 0x8bd   : > { %v8575_v27 = vpop.eup %8574  ;;  %8586 = vrcp.f32 %v3195_v25  ;;  %v3169_v29 = vpop.f32.mrb[55].mxu1  ;;  %v3175_v50 = vadd.f32 %v7693_v19, %v9356_v20 }
 0x8be   : > { %v8577_v31 = vpop.eup %8576  ;;  %8588 = vrcp.f32 %v3194_v42  ;;  %v3197_v23 = vadd.f32 1.0, %v8575_v27  ;;  %v3170_v63 = vadd.f32 %v3169_v29, %v9358_v24 }
 0x8bf   : > { %v3196_v35 = vadd.f32 1.0, %v8577_v31 }
 0x8c0   : > { %8590 = vrcp.f32 %v3197_v23 }
 0x8c1   : > { %v8579_v13 = vpop.eup %8578  ;;  %8592 = vrcp.f32 %v3196_v35 }
 0x8c2   : > { %v8581_v11 = vpop.eup %8580  ;;  %v3223_v14 = vadd.f32 1.0, %v8579_v13 }
 0x8c3   : > { %v3222_v22 = vadd.f32 1.0, %v8581_v11 }
 0x8c4   : > { %8594 = vrcp.f32 %v3223_v14 }
 0x8c5   : > { %v8583_v33 = vpop.eup %8582  ;;  %8596 = vrcp.f32 %v3222_v22 }
 0x8c6   : > { %v8585_v26 = vpop.eup %8584  ;;  %v3225_v30 = vadd.f32 1.0, %v8583_v33 }
 0x8c7   : > { %v8587_v7 = vpop.eup %8586  ;;  %v3224_v8 = vadd.f32 1.0, %v8585_v26 }
 0x8c8   : > { %v8589_v58 = vpop.eup %8588  ;;  %v3235_v49 = vmul.f32 %v8587_v7, %v3165_v32  ;;  %8598 = vrcp.f32 %v3225_v30 }
 0x8c9   : > { %v3234_v52 = vmul.f32 %v8589_v58, %v3160_v9  ;;  %8600 = vrcp.f32 %v3224_v8 }
 0x8ca   : > { %v8591_v62 = vpop.eup %8590  ;;  %v3239_v55 = vadd.f32 %v6776_v5, %v3235_v49 }
 0x8cb   : > { %v8593_v21 = vpop.eup %8592  ;;  %v3238_v25 = vadd.f32 %v6775_v57, %v3234_v52  ;;  %v3237_v42 = vmul.f32 %v8591_v62, %v3175_v50 }
 0x8cc   : > { %8602 = vtanh.f32 %v3239_v55  ;;  %v3236_v27 = vmul.f32 %v8593_v21, %v3170_v63  ;;  %v6801_v21 = vld [vmem:[%s9170_s28 + $0x308] sm:$0xff] }
 0x8cd   : > { %8604 = vtanh.f32 %v3238_v25  ;;  %v3241_v31 = vadd.f32 %v6778_v15, %v3237_v42  ;;  %v6800_v25 = vld [vmem:[%s9170_s28 + $0x300] sm:$0xff] }
 0x8ce   : > { %v3240_v23 = vadd.f32 %v6777_v10, %v3236_v27  ;;  %v8595_v35 = vpop.eup %8594 }
 0x8cf   : > { %8606 = vtanh.f32 %v3241_v31  ;;  %v8597_v19 = vpop.eup %8596  ;;  %v3247_v14 = vsub.f32 1.0, %v8595_v35  ;;  %v3255_v30 = vmul.f32 %v8595_v35, %v10058_v16 }
 0x8d0   : > { %8608 = vtanh.f32 %v3240_v23  ;;  %v3246_v22 = vsub.f32 1.0, %v8597_v19  ;;  %v3254_v7 = vmul.f32 %v8597_v19, %v10060_v1 }
 0x8d2   : > { %v8599_v13 = vpop.eup %8598 }
 0x8d3   : > { %v8601_v11 = vpop.eup %8600  ;;  %v3249_v8 = vsub.f32 1.0, %v8599_v13  ;;  %v3257_v50 = vmul.f32 %v8599_v13, %v10066_v3 }
 0x8d4   : > { %v3248_v58 = vsub.f32 1.0, %v8601_v11  ;;  %v3256_v55 = vmul.f32 %v8601_v11, %v10068_v0  ;;  %v6803_v11 = vld [vmem:[%s9170_s28 + $0x318] sm:$0xff] }
 0x8d6   : > { %v8603_v33 = vpop.eup %8602 }
 0x8d7   : > { %v8605_v29 = vpop.eup %8604  ;;  %v3251_v26 = vmul.f32 %v8603_v33, %v3247_v14 }
 0x8d8   : > { %v3250_v32 = vmul.f32 %v8605_v29, %v3246_v22  ;;  %v6802_v29 = vld [vmem:[%s9170_s28 + $0x310] sm:$0xff] }
 0x8d9   : > { %v8607_v5 = vpop.eup %8606  ;;  %v10156_v9 = vadd.f32 %v3255_v30, %v3251_v26 }
 0x8da   : > { %v8609_v49 = vpop.eup %8608  ;;  %v10158_v57 = vadd.f32 %v3254_v7, %v3250_v32  ;;  %v3253_v52 = vmul.f32 %v8607_v5, %v3249_v8 }
 0x8db   : > { %v3252_v62 = vmul.f32 %v8609_v49, %v3248_v58  ;;  %v6805_v58 = vld [vmem:[%s9170_s28 + $0x328] sm:$0xff] }
 0x8dc   : > { %v8108_v16 = vpack.c.bf16 %v10156_v9, %v10158_v57  ;;  %v10164_v15 = vadd.f32 %v3257_v50, %v3253_v52 }
 0x8dd   : > { %v10166_v1 = vadd.f32 %v3256_v55, %v3252_v62  ;;  %v6804_v62 = vld [vmem:[%s9170_s28 + $0x320] sm:$0xff] }
 0x8de   : > { %8109 = vmatpush3.bf16.msra.mxu0 %v8108_v16 }
 0x8df   : > { %8110 = vmatprep.subr.bf16.mxu0 %v9052_v36  ;;  %v8111_v63 = vpack.c.bf16 %v10164_v15, %v10166_v1 }
 0x8e2   : > { %8112 = vmatpush3.bf16.msra.mxu0 %v8111_v63 }
 0x8e3   : > { %8114 = vmatprep.subr.bf16.mxu0 %v8108_v16 }
 0x8e5   : > { %7703 = vmatmul.mubr.msk.f32.vlgmr.msra.gmra.mrb[54].mxu0 %vm494_vm1, %v10076_v17 }
 0x8e6   : > { %8116 = vmatpush3.bf16.msra.mxu0 %v8108_v16  ;;  %7713 = vmatprep.mubr.msk.f32.mxu0 %vm494_vm1, %v9925_v54 }
 0x8e7   : > { %8118 = vmatprep.subr.bf16.mxu0 %v8111_v63 }
 0x8ea   : > { %8120 = vmatpush3.bf16.msra.mxu0 %v8111_v63 }
 0x8eb   : > { %8135 = vmatprep.subr.bf16.mxu0 %v9052_v36 }
 0x8ed   : > { %7714 = vmatmul.mubr.msk.f32.vlgmr.msra.gmra.mrb[56].mxu0 %vm494_vm1, %v9933_v51 }
 0x8ee   : > { %7716 = vmatprep.mubr.msk.f32.mxu0 %vm494_vm1, %v9940_v2 }
 0x8f1   : > { %7717 = vmatmul.mubr.msk.f32.gmra.mrb[58].mxu0 %vm494_vm1, %v9947_v28 }
 0x8f2   : > { %7719 = vmatprep.mubr.msk.f32.mxu0 %vm494_vm1, %v9954_v4 }
 0x8f5   : > { %7720 = vmatmul.mubr.msk.f32.gmra.mrb[60].mxu0 %vm494_vm1, %v9961_v43 }
 0x8f6   : > { %7722 = vmatprep.mubr.msk.f32.mxu0 %vm494_vm1, %v9968_v6 }
 0x8f9   : > { %7723 = vmatmul.mubr.msk.f32.gmra.mrb[62].mxu0 %vm494_vm1, %v9975_v53 }
 0x8fa   : > { %7725 = vmatprep.mubr.msk.f32.mxu0 %vm494_vm1, %v9982_v46 }
 0x8fd   : > { %7726 = vmatmul.mubr.msk.f32.gmra.mrb[64].mxu0 %vm494_vm1, %v9989_v45 }
 0x8fe   : > { %7728 = vmatprep.mubr.msk.f32.mxu0 %vm494_vm1, %v9996_v48 }
 0x901   : > { %7729 = vmatmul.mubr.msk.f32.gmra.mrb[66].mxu0 %vm494_vm1, %v10003_v34 }
 0x902   : > { %7776 = vmatprep.mubr.msk.f32.mxu0 %vm9053_vm2, %v9054_v37 }
 0x9b8   : > { %v3328_v54 = vpop.f32.mrb[54].mxu0 }
 0x9b9   : > { %v3329_v51 = vadd.f32 %v3328_v54, %v9415_v44  ;;  %v7704_v2 = vpop.f32.mrb[55].mxu0 }
 0x9ba   : > { %v6807_v2 = vld [vmem:[%s9170_s28 + $0x338] sm:$0xff] }
 0x9bb   : > { %v3332_v28 = vmax.f32 %v3329_v51, 0.0 }
 0x9bd   : > { %v3334_v4 = vcombine.high %v3332_v28, %v3332_v28  ;;  %v3341_v43 = vrot.slane %v3332_v28, %v9418_v47 }
 0x9bf   : > { %v3348_v6 = vrot.slane %v3334_v4, %v9418_v47  ;;  %v3349_v53 = vcombine.high %v3341_v43, %v3341_v43  ;;  %v3357_v46 = vrot.slane %v3341_v43, %v9418_v47 }
 0x9c0   : > { %v7715_v45 = vpop.f32.mrb[56].mxu0 }
 0x9c1   : > { %v3350_v48 = vcombine.high %v3348_v6, %v3348_v6  ;;  %v3364_v34 = vrot.slane %v3348_v6, %v9418_v47  ;;  %v3371_v3 = vrot.slane %v3349_v53, %v9418_v47  ;;  %v3379_v0 = vcombine.high %v3357_v46, %v3357_v46  ;;  %3391 = vst.msk [vmem:[%s9172_s16 + $0x7] sm:$0x1] %vm877_vm3, %v3357_v46  ;;  %v3478_v42 = vpop.f32.mrb[57].mxu0  ;;  %v6806_v6 = vld [vmem:[%s9170_s28 + $0x330] sm:$0xff] }
 0x9c2   : > { %v3484_v10 = vadd.f32 %v7715_v45, %v9320_v40  ;;  %v3479_v27 = vadd.f32 %v3478_v42, %v9316_v38 }
 0x9c3   : > { %v3378_v31 = vrot.slane %v3350_v48, %v9418_v47  ;;  %v3380_v23 = vcombine.high %v3364_v34, %v3364_v34  ;;  %v3381_v35 = vcombine.high %v3371_v3, %v3371_v3  ;;  %3392 = vst.msk [vmem:[%s9172_s16 + $0x17] sm:$0x1] %vm877_vm3, %v3371_v3  ;;  %3393 = vst.msk [vmem:[%s9172_s16 + $0x27] sm:$0x1] %vm877_vm3, %v3379_v0 }
 0x9c4   : > { %3395 = vst.msk [vmem:[%s9172_s16 + $0x47] sm:$0x1] %vm877_vm3, %v3364_v34  ;;  %v3538_v19 = vadd.f32 %v6801_v21, %v3484_v10  ;;  %v3537_v13 = vadd.f32 %v6800_v25, %v3479_v27  ;;  %v7718_v14 = vpop.f32.mrb[58].mxu0 }
 0x9c5   : > { %v3382_v33 = vcombine.high %v3378_v31, %v3378_v31  ;;  %3394 = vst.msk [vmem:[%s9172_s16 + $0x37] sm:$0x1] %vm877_vm3, %v3381_v35  ;;  %3396 = vst.msk [vmem:[%s9172_s16 + $0x57] sm:$0x1] %vm877_vm3, %v3378_v31  ;;  %v3494_v22 = vadd.f32 %v7718_v14, %v9322_v41  ;;  %v3488_v26 = vpop.f32.mrb[59].mxu0 }
 0x9c6   : > { %3397 = vst.msk [vmem:[%s9172_s16 + $0x67] sm:$0x1] %vm877_vm3, %v3380_v23  ;;  %v6825_v30 = vmul.f32 -1.442695, %v3538_v19  ;;  %v6824_v32 = vmul.f32 -1.442695, %v3537_v13  ;;  %v3489_v7 = vadd.f32 %v3488_v26, %v9318_v39 }
 0x9c7   : > { %3398 = vst.msk [vmem:[%s9172_s16 + $0x77] sm:$0x1] %vm877_vm3, %v3382_v33  ;;  %v3540_v8 = vadd.f32 %v6803_v11, %v3494_v22 }
 0x9c8   : > { %8610 = vpow2.f32 %v6825_v30  ;;  %v3539_v5 = vadd.f32 %v6802_v29, %v3489_v7  ;;  %v7721_v49 = vpop.f32.mrb[60].mxu0 }
 0x9c9   : > { %8612 = vpow2.f32 %v6824_v32  ;;  %v6827_v52 = vmul.f32 -1.442695, %v3540_v8  ;;  %v3504_v50 = vadd.f32 %v7721_v49, %v9331_v56  ;;  %v3498_v55 = vpop.f32.mrb[61].mxu0  ;;  %v6809_v49 = vld [vmem:[%s9170_s28 + $0x348] sm:$0xff] }
 0x9ca   : > { %v6826_v16 = vmul.f32 -1.442695, %v3539_v5  ;;  %v3499_v63 = vadd.f32 %v3498_v55, %v9334_v59  ;;  %v6808_v55 = vld [vmem:[%s9170_s28 + $0x340] sm:$0xff] }
 0x9cb   : > { %8614 = vpow2.f32 %v6827_v52  ;;  %v3566_v54 = vadd.f32 %v6805_v58, %v3504_v50 }
 0x9cc   : > { %8616 = vpow2.f32 %v6826_v16  ;;  %v3565_v51 = vadd.f32 %v6804_v62, %v3499_v63  ;;  %v7724_v28 = vpop.f32.mrb[62].mxu0 }
 0x9cd   : > { %v6829_v4 = vmul.f32 -1.442695, %v3566_v54  ;;  %v3514_v43 = vadd.f32 %v7724_v28, %v9340_v12  ;;  %v3508_v53 = vpop.f32.mrb[63].mxu0 }
 0x9ce   : > { %v6828_v46 = vmul.f32 -1.442695, %v3565_v51  ;;  %v3509_v45 = vadd.f32 %v3508_v53, %v9343_v18  ;;  %v6810_v53 = vld [vmem:[%s9170_s28 + $0x350] sm:$0xff] }
 0x9cf   : > { %8618 = vpow2.f32 %v6829_v4  ;;  %v3568_v48 = vadd.f32 %v6807_v2, %v3514_v43  ;;  %v6811_v2 = vld [vmem:[%s9170_s28 + $0x358] sm:$0xff] }
 0x9d0   : > { %8620 = vpow2.f32 %v6828_v46  ;;  %v3567_v34 = vadd.f32 %v6806_v6, %v3509_v45  ;;  %v7727_v3 = vpop.f32.mrb[64].mxu0 }
 0x9d1   : > { %v6831_v0 = vmul.f32 -1.442695, %v3568_v48  ;;  %v3518_v21 = vpop.f32.mrb[65].mxu0  ;;  %v3524_v8 = vadd.f32 %v7727_v3, %v9348_v60 }
 0x9d2   : > { %v8611_v25 = vpop.eup %8610  ;;  %v6830_v42 = vmul.f32 -1.442695, %v3567_v34  ;;  %v3519_v52 = vadd.f32 %v3518_v21, %v9350_v61 }
 0x9d3   : > { %v8613_v10 = vpop.eup %8612  ;;  %v3554_v27 = vadd.f32 1.0, %v8611_v25  ;;  %8622 = vpow2.f32 %v6831_v0 }
 0x9d4   : > { %v3553_v31 = vadd.f32 1.0, %v8613_v10  ;;  %8624 = vpow2.f32 %v6830_v42  ;;  %v7730_v23 = vpop.f32.mrb[66].mxu0 }
 0x9d5   : > { %v8615_v35 = vpop.eup %8614  ;;  %8626 = vrcp.f32 %v3554_v27  ;;  %v3528_v19 = vpop.f32.mrb[67].mxu0  ;;  %v3534_v63 = vadd.f32 %v7730_v23, %v9356_v20 }
 0x9d6   : > { %v8617_v13 = vpop.eup %8616  ;;  %8628 = vrcp.f32 %v3553_v31  ;;  %v3556_v11 = vadd.f32 1.0, %v8615_v35  ;;  %v3529_v28 = vadd.f32 %v3528_v19, %v9358_v24 }
 0x9d7   : > { %v3555_v14 = vadd.f32 1.0, %v8617_v13 }
 0x9d8   : > { %8630 = vrcp.f32 %v3556_v11 }
 0x9d9   : > { %v8619_v33 = vpop.eup %8618  ;;  %8632 = vrcp.f32 %v3555_v14 }
 0x9da   : > { %v8621_v22 = vpop.eup %8620  ;;  %v3582_v29 = vadd.f32 1.0, %v8619_v33 }
 0x9db   : > { %v3581_v30 = vadd.f32 1.0, %v8621_v22 }
 0x9dc   : > { %8634 = vrcp.f32 %v3582_v29 }
 0x9dd   : > { %v8623_v26 = vpop.eup %8622  ;;  %8636 = vrcp.f32 %v3581_v30 }
 0x9de   : > { %v8625_v32 = vpop.eup %8624  ;;  %v3584_v7 = vadd.f32 1.0, %v8623_v26 }
 0x9df   : > { %v8627_v5 = vpop.eup %8626  ;;  %v3583_v58 = vadd.f32 1.0, %v8625_v32 }
 0x9e0   : > { %v8629_v50 = vpop.eup %8628  ;;  %v3594_v62 = vmul.f32 %v8627_v5, %v3524_v8  ;;  %8638 = vrcp.f32 %v3584_v7 }
 0x9e1   : > { %v3593_v16 = vmul.f32 %v8629_v50, %v3519_v52  ;;  %8640 = vrcp.f32 %v3583_v58  ;;  %v10291_v58 = vld [vmem:[%s11139_s1 + $0x18] sm:$0xff]  ;;  %v10305_v52 = vld [vmem:[%s11139_s1 + $0x28] sm:$0xff]  ;;  %v10312_v50 = vld [vmem:[%s11139_s1 + $0x30] sm:$0xff] }
 0x9e2   : > { %v8631_v54 = vpop.eup %8630  ;;  %v3598_v51 = vadd.f32 %v6809_v49, %v3594_v62  ;;  %v10298_v49 = vld [vmem:[%s11139_s1 + $0x20] sm:$0xff]  ;;  %v10319_v62 = vld [vmem:[%s11139_s1 + $0x38] sm:$0xff] }
 0x9e3   : > { %v8633_v4 = vpop.eup %8632  ;;  %v3597_v43 = vadd.f32 %v6808_v55, %v3593_v16  ;;  %v3596_v6 = vmul.f32 %v8631_v54, %v3534_v63  ;;  %v10326_v55 = vld [vmem:[%s11139_s1 + $0x40] sm:$0xff]  ;;  %v10333_v16 = vld [vmem:[%s11139_s1 + $0x48] sm:$0xff]  ;;  %v10340_v63 = vld [vmem:[%s11139_s1 + $0x50] sm:$0xff] }
 0x9e4   : > { %8642 = vtanh.f32 %v3598_v51  ;;  %v3595_v46 = vmul.f32 %v8633_v4, %v3529_v28  ;;  %v10347_v54 = vld [vmem:[%s11139_s1 + $0x58] sm:$0xff] }
 0x9e5   : > { %8644 = vtanh.f32 %v3597_v43  ;;  %v3600_v45 = vadd.f32 %v6811_v2, %v3596_v6 }
 0x9e6   : > { %v3599_v48 = vadd.f32 %v6810_v53, %v3595_v46  ;;  %v8635_v34 = vpop.eup %8634 }
 0x9e7   : > { %8646 = vtanh.f32 %v3600_v45  ;;  %v8637_v3 = vpop.eup %8636  ;;  %v3606_v25 = vsub.f32 1.0, %v8635_v34  ;;  %v3614_v23 = vmul.f32 %v8635_v34, %v10156_v9 }
 0x9e8   : > { %8648 = vtanh.f32 %v3599_v48  ;;  %v3605_v10 = vsub.f32 1.0, %v8637_v3  ;;  %v3613_v19 = vmul.f32 %v8637_v3, %v10158_v57 }
 0x9ea   : > { %v8639_v0 = vpop.eup %8638 }
 0x9eb   : > { %v8641_v21 = vpop.eup %8640  ;;  %v3608_v13 = vsub.f32 1.0, %v8639_v0  ;;  %v3616_v30 = vmul.f32 %v8639_v0, %v10164_v15  ;;  %v10269_v15 = vld [vmem:[%s11139_s1] sm:$0xff] }
 0x9ec   : > { %v3607_v33 = vsub.f32 1.0, %v8641_v21  ;;  %v3615_v7 = vmul.f32 %v8641_v21, %v10166_v1  ;;  %v10277_v1 = vld [vmem:[%s11139_s1 + $0x8] sm:$0xff] }
 0x9ee   : > { %v8643_v42 = vpop.eup %8642 }
 0x9ef   : > { %v8645_v27 = vpop.eup %8644  ;;  %v3610_v31 = vmul.f32 %v8643_v42, %v3606_v25  ;;  %v6834_v25 = vld [vmem:[%s9170_s28 + $0x368] sm:$0xff]  ;;  %v6833_v42 = vld [vmem:[%s9170_s28 + $0x360] sm:$0xff] }
 0x9f0   : > { %v3609_v35 = vmul.f32 %v8645_v27, %v3605_v10 }
 0x9f1   : > { %v8647_v11 = vpop.eup %8646  ;;  %v10249_v14 = vadd.f32 %v3614_v23, %v3610_v31 }
 0x9f2   : > { %v8649_v22 = vpop.eup %8648  ;;  %v10251_v29 = vadd.f32 %v3613_v19, %v3609_v35  ;;  %v3612_v26 = vmul.f32 %v8647_v11, %v3608_v13 }
 0x9f3   : > { %v3611_v32 = vmul.f32 %v8649_v22, %v3607_v33  ;;  %v6836_v33 = vld [vmem:[%s9170_s28 + $0x378] sm:$0xff] }
 0x9f4   : > { %v8122_v9 = vpack.c.bf16 %v10249_v14, %v10251_v29  ;;  %v10257_v8 = vadd.f32 %v3616_v30, %v3612_v26 }
 0x9f5   : > { %v10259_v57 = vadd.f32 %v3615_v7, %v3611_v32  ;;  %v6835_v32 = vld [vmem:[%s9170_s28 + $0x370] sm:$0xff] }
 0x9f6   : > { %8123 = vmatpush3.bf16.msra.mxu1 %v8122_v9 }
 0x9f7   : > { %8124 = vmatprep.subr.bf16.mxu1 %v9052_v36  ;;  %v8125_v5 = vpack.c.bf16 %v10257_v8, %v10259_v57 }
 0x9fa   : > { %8126 = vmatpush3.bf16.msra.mxu1 %v8125_v5 }
 0x9fb   : > { %8128 = vmatprep.subr.bf16.mxu1 %v8122_v9 }
 0x9fd   : > { %7740 = vmatmul.mubr.msk.f32.vlgmr.msra.gmra.mrb[56].mxu1 %vm494_vm1, %v10076_v17  ;;  %v10284_v17 = vld [vmem:[%s11139_s1 + $0x10] sm:$0xff] }
 0x9fe   : > { %8130 = vmatpush3.bf16.msra.mxu1 %v8122_v9  ;;  %7750 = vmatprep.mubr.msk.f32.mxu1 %vm494_vm1, %v10269_v15 }
 0x9ff   : > { %8132 = vmatprep.subr.bf16.mxu1 %v8125_v5 }
 0xa02   : > { %8134 = vmatpush3.bf16.msra.mxu1 %v8125_v5 }
 0xa03   : > { %8149 = vmatprep.subr.bf16.mxu1 %v9052_v36 }
 0xa05   : > { %7751 = vmatmul.mubr.msk.f32.vlgmr.msra.gmra.mrb[58].mxu1 %vm494_vm1, %v10277_v1 }
 0xa06   : > { %7753 = vmatprep.mubr.msk.f32.mxu1 %vm494_vm1, %v10284_v17 }
 0xa09   : > { %7754 = vmatmul.mubr.msk.f32.gmra.mrb[60].mxu1 %vm494_vm1, %v10291_v58 }
 0xa0a   : > { %7756 = vmatprep.mubr.msk.f32.mxu1 %vm494_vm1, %v10298_v49 }
 0xa0d   : > { %7757 = vmatmul.mubr.msk.f32.gmra.mrb[62].mxu1 %vm494_vm1, %v10305_v52 }
 0xa0e   : > { %7759 = vmatprep.mubr.msk.f32.mxu1 %vm494_vm1, %v10312_v50 }
 0xa11   : > { %7760 = vmatmul.mubr.msk.f32.gmra.mrb[64].mxu1 %vm494_vm1, %v10319_v62 }
 0xa12   : > { %7762 = vmatprep.mubr.msk.f32.mxu1 %vm494_vm1, %v10326_v55 }
 0xa15   : > { %7763 = vmatmul.mubr.msk.f32.gmra.mrb[66].mxu1 %vm494_vm1, %v10333_v16 }
 0xa16   : > { %7765 = vmatprep.mubr.msk.f32.mxu1 %vm494_vm1, %v10340_v63 }
 0xa19   : > { %7766 = vmatmul.mubr.msk.f32.gmra.mrb[68].mxu1 %vm494_vm1, %v10347_v54 }
 0xa1a   : > { %7813 = vmatprep.mubr.msk.f32.mxu1 %vm9053_vm2, %v9054_v37 }
 0xad0   : > { %v3687_v51 = vpop.f32.mrb[56].mxu1 }
 0xad1   : > { %v3688_v2 = vadd.f32 %v3687_v51, %v9415_v44  ;;  %v7741_v28 = vpop.f32.mrb[57].mxu1 }
 0xad3   : > { %v3691_v4 = vmax.f32 %v3688_v2, 0.0 }
 0xad5   : > { %v3693_v43 = vcombine.high %v3691_v4, %v3691_v4  ;;  %v3700_v6 = vrot.slane %v3691_v4, %v9418_v47  ;;  %v6838_v4 = vld [vmem:[%s9170_s28 + $0x388] sm:$0xff] }
 0xad7   : > { %v3707_v53 = vrot.slane %v3693_v43, %v9418_v47  ;;  %v3708_v46 = vcombine.high %v3700_v6, %v3700_v6  ;;  %v3716_v45 = vrot.slane %v3700_v6, %v9418_v47 }
 0xad8   : > { %v7752_v48 = vpop.f32.mrb[58].mxu1 }
 0xad9   : > { %v3709_v34 = vcombine.high %v3707_v53, %v3707_v53  ;;  %v3723_v3 = vrot.slane %v3707_v53, %v9418_v47  ;;  %v3730_v0 = vrot.slane %v3708_v46, %v9418_v47  ;;  %v3738_v21 = vcombine.high %v3716_v45, %v3716_v45  ;;  %3750 = vst.msk [vmem:[%s9172_s16 + $0x8] sm:$0x1] %vm877_vm3, %v3716_v45  ;;  %v3837_v10 = vpop.f32.mrb[59].mxu1  ;;  %v6837_v46 = vld [vmem:[%s9170_s28 + $0x380] sm:$0xff] }
 0xada   : > { %v3843_v27 = vadd.f32 %v7752_v48, %v9320_v40  ;;  %v3838_v31 = vadd.f32 %v3837_v10, %v9316_v38 }
 0xadb   : > { %v3737_v23 = vrot.slane %v3709_v34, %v9418_v47  ;;  %v3739_v35 = vcombine.high %v3723_v3, %v3723_v3  ;;  %v3740_v19 = vcombine.high %v3730_v0, %v3730_v0  ;;  %3751 = vst.msk [vmem:[%s9172_s16 + $0x18] sm:$0x1] %vm877_vm3, %v3730_v0  ;;  %3752 = vst.msk [vmem:[%s9172_s16 + $0x28] sm:$0x1] %vm877_vm3, %v3738_v21  ;;  %v6840_v21 = vld [vmem:[%s9170_s28 + $0x398] sm:$0xff] }
 0xadc   : > { %3754 = vst.msk [vmem:[%s9172_s16 + $0x48] sm:$0x1] %vm877_vm3, %v3723_v3  ;;  %v3897_v13 = vadd.f32 %v6834_v25, %v3843_v27  ;;  %v3896_v11 = vadd.f32 %v6833_v42, %v3838_v31  ;;  %v7755_v22 = vpop.f32.mrb[60].mxu1  ;;  %v6839_v27 = vld [vmem:[%s9170_s28 + $0x390] sm:$0xff] }
 0xadd   : > { %v3741_v26 = vcombine.high %v3737_v23, %v3737_v23  ;;  %3753 = vst.msk [vmem:[%s9172_s16 + $0x38] sm:$0x1] %vm877_vm3, %v3740_v19  ;;  %3755 = vst.msk [vmem:[%s9172_s16 + $0x58] sm:$0x1] %vm877_vm3, %v3737_v23  ;;  %v3853_v30 = vadd.f32 %v7755_v22, %v9322_v41  ;;  %v3847_v7 = vpop.f32.mrb[61].mxu1 }
 0xade   : > { %3756 = vst.msk [vmem:[%s9172_s16 + $0x68] sm:$0x1] %vm877_vm3, %v3739_v35  ;;  %v6858_v9 = vmul.f32 -1.442695, %v3897_v13  ;;  %v6857_v5 = vmul.f32 -1.442695, %v3896_v11  ;;  %v3848_v51 = vadd.f32 %v3847_v7, %v9318_v39 }
 0xadf   : > { %3757 = vst.msk [vmem:[%s9172_s16 + $0x78] sm:$0x1] %vm877_vm3, %v3741_v26  ;;  %v3899_v2 = vadd.f32 %v6836_v33, %v3853_v30 }
 0xae0   : > { %8650 = vpow2.f32 %v6858_v9  ;;  %v3898_v28 = vadd.f32 %v6835_v32, %v3848_v51  ;;  %v7758_v43 = vpop.f32.mrb[62].mxu1 }
 0xae1   : > { %8652 = vpow2.f32 %v6857_v5  ;;  %v6860_v6 = vmul.f32 -1.442695, %v3899_v2  ;;  %v3863_v53 = vadd.f32 %v7758_v43, %v9331_v56  ;;  %v3857_v45 = vpop.f32.mrb[63].mxu1 }
 0xae2   : > { %v6859_v48 = vmul.f32 -1.442695, %v3898_v28  ;;  %v3858_v34 = vadd.f32 %v3857_v45, %v9334_v59 }
 0xae3   : > { %8654 = vpow2.f32 %v6860_v6  ;;  %v3925_v3 = vadd.f32 %v6838_v4, %v3863_v53 }
 0xae4   : > { %8656 = vpow2.f32 %v6859_v48  ;;  %v3924_v0 = vadd.f32 %v6837_v46, %v3858_v34  ;;  %v7761_v25 = vpop.f32.mrb[64].mxu1 }
 0xae5   : > { %v6862_v42 = vmul.f32 -1.442695, %v3925_v3  ;;  %v3873_v10 = vadd.f32 %v7761_v25, %v9340_v12  ;;  %v3867_v31 = vpop.f32.mrb[65].mxu1 }
 0xae6   : > { %v6861_v23 = vmul.f32 -1.442695, %v3924_v0  ;;  %v3868_v35 = vadd.f32 %v3867_v31, %v9343_v18 }
 0xae7   : > { %8658 = vpow2.f32 %v6862_v42  ;;  %v3927_v19 = vadd.f32 %v6840_v21, %v3873_v10  ;;  %v6842_v42 = vld [vmem:[%s9170_s28 + $0x3a8] sm:$0xff] }
 0xae8   : > { %8660 = vpow2.f32 %v6861_v23  ;;  %v3926_v13 = vadd.f32 %v6839_v27, %v3868_v35  ;;  %v7764_v11 = vpop.f32.mrb[66].mxu1  ;;  %v6841_v23 = vld [vmem:[%s9170_s28 + $0x3a0] sm:$0xff] }
 0xae9   : > { %v6864_v33 = vmul.f32 -1.442695, %v3927_v19  ;;  %v3877_v22 = vpop.f32.mrb[67].mxu1  ;;  %v3883_v0 = vadd.f32 %v7764_v11, %v9348_v60 }
 0xaea   : > { %v8651_v26 = vpop.eup %8650  ;;  %v6863_v30 = vmul.f32 -1.442695, %v3926_v13  ;;  %v3878_v10 = vadd.f32 %v3877_v22, %v9350_v61  ;;  %v6843_v22 = vld [vmem:[%s9170_s28 + $0x3b0] sm:$0xff] }
 0xaeb   : > { %v8653_v32 = vpop.eup %8652  ;;  %v3913_v7 = vadd.f32 1.0, %v8651_v26  ;;  %8662 = vpow2.f32 %v6864_v33  ;;  %v6844_v26 = vld [vmem:[%s9170_s28 + $0x3b8] sm:$0xff] }
 0xaec   : > { %v3912_v9 = vadd.f32 1.0, %v8653_v32  ;;  %8664 = vpow2.f32 %v6863_v30  ;;  %v7767_v5 = vpop.f32.mrb[68].mxu1 }
 0xaed   : > { %v8655_v51 = vpop.eup %8654  ;;  %8666 = vrcp.f32 %v3913_v7  ;;  %v3887_v2 = vpop.f32.mrb[69].mxu1  ;;  %v3893_v19 = vadd.f32 %v7767_v5, %v9356_v20 }
 0xaee   : > { %v8657_v28 = vpop.eup %8656  ;;  %8668 = vrcp.f32 %v3912_v9  ;;  %v3915_v4 = vadd.f32 1.0, %v8655_v51  ;;  %v3888_v11 = vadd.f32 %v3887_v2, %v9358_v24 }
 0xaef   : > { %v3914_v43 = vadd.f32 1.0, %v8657_v28 }
 0xaf0   : > { %8670 = vrcp.f32 %v3915_v4 }
 0xaf1   : > { %v8659_v6 = vpop.eup %8658  ;;  %8672 = vrcp.f32 %v3914_v43 }
 0xaf2   : > { %v8661_v53 = vpop.eup %8660  ;;  %v3941_v46 = vadd.f32 1.0, %v8659_v6 }
 0xaf3   : > { %v3940_v48 = vadd.f32 1.0, %v8661_v53 }
 0xaf4   : > { %8674 = vrcp.f32 %v3941_v46 }
 0xaf5   : > { %v8663_v45 = vpop.eup %8662  ;;  %8676 = vrcp.f32 %v3940_v48 }
 0xaf6   : > { %v8665_v34 = vpop.eup %8664  ;;  %v3943_v3 = vadd.f32 1.0, %v8663_v45 }
 0xaf7   : > { %v8667_v21 = vpop.eup %8666  ;;  %v3942_v25 = vadd.f32 1.0, %v8665_v34 }
 0xaf8   : > { %v8669_v27 = vpop.eup %8668  ;;  %v3953_v31 = vmul.f32 %v8667_v21, %v3883_v0  ;;  %8678 = vrcp.f32 %v3943_v3 }
 0xaf9   : > { %v3952_v35 = vmul.f32 %v8669_v27, %v3878_v10  ;;  %8680 = vrcp.f32 %v3942_v25 }
 0xafa   : > { %v8671_v13 = vpop.eup %8670  ;;  %v3957_v33 = vadd.f32 %v6842_v42, %v3953_v31 }
 0xafb   : > { %v8673_v30 = vpop.eup %8672  ;;  %v3956_v32 = vadd.f32 %v6841_v23, %v3952_v35  ;;  %v3955_v7 = vmul.f32 %v8671_v13, %v3893_v19 }
 0xafc   : > { %8682 = vtanh.f32 %v3957_v33  ;;  %v3954_v9 = vmul.f32 %v8673_v30, %v3888_v11 }
 0xafd   : > { %8684 = vtanh.f32 %v3956_v32  ;;  %v3959_v51 = vadd.f32 %v6844_v26, %v3955_v7 }
 0xafe   : > { %v3958_v28 = vadd.f32 %v6843_v22, %v3954_v9  ;;  %v8675_v4 = vpop.eup %8674 }
 0xaff   : > { %8686 = vtanh.f32 %v3959_v51  ;;  %v8677_v5 = vpop.eup %8676  ;;  %v3965_v53 = vsub.f32 1.0, %v8675_v4  ;;  %v3973_v34 = vmul.f32 %v8675_v4, %v10249_v14 }
 0xb00   : > { %8688 = vtanh.f32 %v3958_v28  ;;  %v3964_v45 = vsub.f32 1.0, %v8677_v5  ;;  %v3972_v0 = vmul.f32 %v8677_v5, %v10251_v29 }
 0xb02   : > { %v8679_v43 = vpop.eup %8678 }
 0xb03   : > { %v8681_v6 = vpop.eup %8680  ;;  %v3967_v21 = vsub.f32 1.0, %v8679_v43  ;;  %v3975_v35 = vmul.f32 %v8679_v43, %v10257_v8  ;;  %v10420_v8 = vld [vmem:[%s11141_s3] sm:$0xff] }
 0xb04   : > { %v3966_v10 = vsub.f32 1.0, %v8681_v6  ;;  %v3974_v13 = vmul.f32 %v8681_v6, %v10259_v57 }
 0xb06   : > { %v8683_v46 = vpop.eup %8682 }
 0xb07   : > { %v8685_v2 = vpop.eup %8684  ;;  %v3969_v48 = vmul.f32 %v8683_v46, %v3965_v53  ;;  %v6867_v46 = vld [vmem:[%s9170_s28 + $0x3c8] sm:$0xff] }
 0xb08   : > { %v3968_v3 = vmul.f32 %v8685_v2, %v3964_v45  ;;  %v6866_v45 = vld [vmem:[%s9170_s28 + $0x3c0] sm:$0xff] }
 0xb09   : > { %v8687_v25 = vpop.eup %8686  ;;  %v10402_v42 = vadd.f32 %v3973_v34, %v3969_v48 }
 0xb0a   : > { %v8689_v27 = vpop.eup %8688  ;;  %v10404_v31 = vadd.f32 %v3972_v0, %v3968_v3  ;;  %v3971_v23 = vmul.f32 %v8687_v25, %v3967_v21 }
 0xb0b   : > { %v3970_v19 = vmul.f32 %v8689_v27, %v3966_v10  ;;  %v6869_v27 = vld [vmem:[%s9170_s28 + $0x3d8] sm:$0xff] }
 0xb0c   : > { %v8136_v14 = vpack.c.bf16 %v10402_v42, %v10404_v31  ;;  %v10410_v33 = vadd.f32 %v3975_v35, %v3971_v23 }
 0xb0d   : > { %v10412_v29 = vadd.f32 %v3974_v13, %v3970_v19  ;;  %v6868_v13 = vld [vmem:[%s9170_s28 + $0x3d0] sm:$0xff] }
 0xb0e   : > { %8137 = vmatpush3.bf16.msra.mxu0 %v8136_v14 }
 0xb0f   : > { %8138 = vmatprep.subr.bf16.mxu0 %v9052_v36  ;;  %v8139_v26 = vpack.c.bf16 %v10410_v33, %v10412_v29 }
 0xb12   : > { %8140 = vmatpush3.bf16.msra.mxu0 %v8139_v26 }
 0xb13   : > { %8142 = vmatprep.subr.bf16.mxu0 %v8136_v14 }
 0xb15   : > { %7777 = vmatmul.mubr.msk.f32.vlgmr.msra.gmra.mrb[68].mxu0 %vm494_vm1, %v10420_v8 }
 0xb16   : > { %8144 = vmatpush3.bf16.msra.mxu0 %v8136_v14  ;;  %7787 = vmatprep.mubr.msk.f32.mxu0 %vm494_vm1, %v10269_v15 }
 0xb17   : > { %8146 = vmatprep.subr.bf16.mxu0 %v8139_v26 }
 0xb1a   : > { %8148 = vmatpush3.bf16.msra.mxu0 %v8139_v26 }
 0xb1b   : > { %8163 = vmatprep.subr.bf16.mxu0 %v9052_v36 }
 0xb1d   : > { %7788 = vmatmul.mubr.msk.f32.vlgmr.msra.gmra.mrb[70].mxu0 %vm494_vm1, %v10277_v1 }
 0xb1e   : > { %7790 = vmatprep.mubr.msk.f32.mxu0 %vm494_vm1, %v10284_v17 }
 0xb21   : > { %7791 = vmatmul.mubr.msk.f32.gmra.mrb[72].mxu0 %vm494_vm1, %v10291_v58 }
 0xb22   : > { %7793 = vmatprep.mubr.msk.f32.mxu0 %vm494_vm1, %v10298_v49 }
 0xb25   : > { %7794 = vmatmul.mubr.msk.f32.gmra.mrb[74].mxu0 %vm494_vm1, %v10305_v52 }
 0xb26   : > { %7796 = vmatprep.mubr.msk.f32.mxu0 %vm494_vm1, %v10312_v50 }
 0xb29   : > { %7797 = vmatmul.mubr.msk.f32.gmra.mrb[76].mxu0 %vm494_vm1, %v10319_v62 }
 0xb2a   : > { %7799 = vmatprep.mubr.msk.f32.mxu0 %vm494_vm1, %v10326_v55 }
 0xb2d   : > { %7800 = vmatmul.mubr.msk.f32.gmra.mrb[78].mxu0 %vm494_vm1, %v10333_v16 }
 0xb2e   : > { %7802 = vmatprep.mubr.msk.f32.mxu0 %vm494_vm1, %v10340_v63 }
 0xb31   : > { %7803 = vmatmul.mubr.msk.f32.gmra.mrb[80].mxu0 %vm494_vm1, %v10347_v54 }
 0xb32   : > { %7850 = vmatprep.mubr.msk.f32.mxu0 %vm9053_vm2, %v9054_v37 }
 0xbe8   : > { %v4046_v57 = vpop.f32.mrb[68].mxu0 }
 0xbe9   : > { %v4047_v11 = vadd.f32 %v4046_v57, %v9415_v44  ;;  %v7778_v30 = vpop.f32.mrb[69].mxu0 }
 0xbeb   : > { %v4050_v32 = vmax.f32 %v4047_v11, 0.0 }
 0xbed   : > { %v4052_v7 = vcombine.high %v4050_v32, %v4050_v32  ;;  %v4059_v22 = vrot.slane %v4050_v32, %v9418_v47 }
 0xbef   : > { %v4066_v9 = vrot.slane %v4052_v7, %v9418_v47  ;;  %v4067_v51 = vcombine.high %v4059_v22, %v4059_v22  ;;  %v4075_v28 = vrot.slane %v4059_v22, %v9418_v47  ;;  %v6871_v7 = vld [vmem:[%s9170_s28 + $0x3e8] sm:$0xff] }
 0xbf0   : > { %v7789_v4 = vpop.f32.mrb[70].mxu0 }
 0xbf1   : > { %v4068_v5 = vcombine.high %v4066_v9, %v4066_v9  ;;  %v4082_v43 = vrot.slane %v4066_v9, %v9418_v47  ;;  %v4089_v6 = vrot.slane %v4067_v51, %v9418_v47  ;;  %v4097_v53 = vcombine.high %v4075_v28, %v4075_v28  ;;  %4109 = vst.msk [vmem:[%s9172_s16 + $0x9] sm:$0x1] %vm877_vm3, %v4075_v28  ;;  %v4196_v2 = vpop.f32.mrb[71].mxu0  ;;  %v6870_v28 = vld [vmem:[%s9170_s28 + $0x3e0] sm:$0xff] }
 0xbf2   : > { %v4202_v48 = vadd.f32 %v7789_v4, %v9320_v40  ;;  %v4197_v34 = vadd.f32 %v4196_v2, %v9316_v38 }
 0xbf3   : > { %v4096_v3 = vrot.slane %v4068_v5, %v9418_v47  ;;  %v4098_v0 = vcombine.high %v4082_v43, %v4082_v43  ;;  %v4099_v21 = vcombine.high %v4089_v6, %v4089_v6  ;;  %4110 = vst.msk [vmem:[%s9172_s16 + $0x19] sm:$0x1] %vm877_vm3, %v4089_v6  ;;  %4111 = vst.msk [vmem:[%s9172_s16 + $0x29] sm:$0x1] %vm877_vm3, %v4097_v53 }
 0xbf4   : > { %4113 = vst.msk [vmem:[%s9172_s16 + $0x49] sm:$0x1] %vm877_vm3, %v4082_v43  ;;  %v4256_v25 = vadd.f32 %v6867_v46, %v4202_v48  ;;  %v4255_v10 = vadd.f32 %v6866_v45, %v4197_v34  ;;  %v7792_v23 = vpop.f32.mrb[72].mxu0  ;;  %v6873_v46 = vld [vmem:[%s9170_s28 + $0x3f8] sm:$0xff]  ;;  %v6872_v34 = vld [vmem:[%s9170_s28 + $0x3f0] sm:$0xff] }
 0xbf5   : > { %v4100_v35 = vcombine.high %v4096_v3, %v4096_v3  ;;  %4112 = vst.msk [vmem:[%s9172_s16 + $0x39] sm:$0x1] %vm877_vm3, %v4099_v21  ;;  %4114 = vst.msk [vmem:[%s9172_s16 + $0x59] sm:$0x1] %vm877_vm3, %v4096_v3  ;;  %v4212_v19 = vadd.f32 %v7792_v23, %v9322_v41  ;;  %v4206_v14 = vpop.f32.mrb[73].mxu0 }
 0xbf6   : > { %4115 = vst.msk [vmem:[%s9172_s16 + $0x69] sm:$0x1] %vm877_vm3, %v4098_v0  ;;  %v6891_v26 = vmul.f32 -1.442695, %v4256_v25  ;;  %v6890_v57 = vmul.f32 -1.442695, %v4255_v10  ;;  %v4207_v11 = vadd.f32 %v4206_v14, %v9318_v39 }
 0xbf7   : > { %4116 = vst.msk [vmem:[%s9172_s16 + $0x79] sm:$0x1] %vm877_vm3, %v4100_v35  ;;  %v4258_v30 = vadd.f32 %v6869_v27, %v4212_v19 }
 0xbf8   : > { %8690 = vpow2.f32 %v6891_v26  ;;  %v4257_v32 = vadd.f32 %v6868_v13, %v4207_v11  ;;  %v7795_v22 = vpop.f32.mrb[74].mxu0 }
 0xbf9   : > { %8692 = vpow2.f32 %v6890_v57  ;;  %v6893_v9 = vmul.f32 -1.442695, %v4258_v30  ;;  %v4222_v51 = vadd.f32 %v7795_v22, %v9331_v56  ;;  %v4216_v4 = vpop.f32.mrb[75].mxu0 }
 0xbfa   : > { %v6892_v5 = vmul.f32 -1.442695, %v4257_v32  ;;  %v4217_v43 = vadd.f32 %v4216_v4, %v9334_v59 }
 0xbfb   : > { %8694 = vpow2.f32 %v6893_v9  ;;  %v4284_v6 = vadd.f32 %v6871_v7, %v4222_v51 }
 0xbfc   : > { %8696 = vpow2.f32 %v6892_v5  ;;  %v4283_v53 = vadd.f32 %v6870_v28, %v4217_v43  ;;  %v7798_v45 = vpop.f32.mrb[76].mxu0 }
 0xbfd   : > { %v6895_v2 = vmul.f32 -1.442695, %v4284_v6  ;;  %v4232_v48 = vadd.f32 %v7798_v45, %v9340_v12  ;;  %v4226_v3 = vpop.f32.mrb[77].mxu0 }
 0xbfe   : > { %v6894_v0 = vmul.f32 -1.442695, %v4283_v53  ;;  %v4227_v21 = vadd.f32 %v4226_v3, %v9343_v18 }
 0xbff   : > { %8698 = vpow2.f32 %v6895_v2  ;;  %v4286_v25 = vadd.f32 %v6873_v46, %v4232_v48  ;;  %v6875_v48 = vld [vmem:[%s9170_s28 + $0x408] sm:$0xff] }
 0xc00   : > { %8700 = vpow2.f32 %v6894_v0  ;;  %v4285_v10 = vadd.f32 %v6872_v34, %v4227_v21  ;;  %v7801_v27 = vpop.f32.mrb[78].mxu0  ;;  %v6874_v21 = vld [vmem:[%s9170_s28 + $0x400] sm:$0xff] }
 0xc01   : > { %v6897_v23 = vmul.f32 -1.442695, %v4286_v25  ;;  %v4236_v35 = vpop.f32.mrb[79].mxu0  ;;  %v4242_v46 = vadd.f32 %v7801_v27, %v9348_v60 }
 0xc02   : > { %v8691_v19 = vpop.eup %8690  ;;  %v6896_v13 = vmul.f32 -1.442695, %v4285_v10  ;;  %v4237_v34 = vadd.f32 %v4236_v35, %v9350_v61  ;;  %v6876_v35 = vld [vmem:[%s9170_s28 + $0x410] sm:$0xff] }
 0xc03   : > { %v8693_v14 = vpop.eup %8692  ;;  %v4272_v26 = vadd.f32 1.0, %v8691_v19  ;;  %8702 = vpow2.f32 %v6897_v23 }
 0xc04   : > { %v4271_v57 = vadd.f32 1.0, %v8693_v14  ;;  %8704 = vpow2.f32 %v6896_v13  ;;  %v7804_v11 = vpop.f32.mrb[80].mxu0  ;;  %v6877_v13 = vld [vmem:[%s9170_s28 + $0x418] sm:$0xff] }
 0xc05   : > { %v8695_v30 = vpop.eup %8694  ;;  %8706 = vrcp.f32 %v4272_v26  ;;  %v4246_v32 = vpop.f32.mrb[81].mxu0  ;;  %v4252_v10 = vadd.f32 %v7804_v11, %v9356_v20 }
 0xc06   : > { %v8697_v7 = vpop.eup %8696  ;;  %8708 = vrcp.f32 %v4271_v57  ;;  %v4274_v22 = vadd.f32 1.0, %v8695_v30  ;;  %v4247_v27 = vadd.f32 %v4246_v32, %v9358_v24 }
 0xc07   : > { %v4273_v9 = vadd.f32 1.0, %v8697_v7 }
 0xc08   : > { %8710 = vrcp.f32 %v4274_v22 }
 0xc09   : > { %v8699_v51 = vpop.eup %8698  ;;  %8712 = vrcp.f32 %v4273_v9 }
 0xc0a   : > { %v8701_v28 = vpop.eup %8700  ;;  %v4300_v4 = vadd.f32 1.0, %v8699_v51 }
 0xc0b   : > { %v4299_v43 = vadd.f32 1.0, %v8701_v28 }
 0xc0c   : > { %8714 = vrcp.f32 %v4300_v4 }
 0xc0d   : > { %v8703_v5 = vpop.eup %8702  ;;  %8716 = vrcp.f32 %v4299_v43 }
 0xc0e   : > { %v8705_v6 = vpop.eup %8704  ;;  %v4302_v53 = vadd.f32 1.0, %v8703_v5 }
 0xc0f   : > { %v8707_v45 = vpop.eup %8706  ;;  %v4301_v2 = vadd.f32 1.0, %v8705_v6 }
 0xc10   : > { %v8709_v3 = vpop.eup %8708  ;;  %v4312_v0 = vmul.f32 %v8707_v45, %v4242_v46  ;;  %8718 = vrcp.f32 %v4302_v53 }
 0xc11   : > { %v4311_v25 = vmul.f32 %v8709_v3, %v4237_v34  ;;  %8720 = vrcp.f32 %v4301_v2 }
 0xc12   : > { %v8711_v23 = vpop.eup %8710  ;;  %v4316_v19 = vadd.f32 %v6875_v48, %v4312_v0 }
 0xc13   : > { %v8713_v14 = vpop.eup %8712  ;;  %v4315_v26 = vadd.f32 %v6874_v21, %v4311_v25  ;;  %v4314_v57 = vmul.f32 %v8711_v23, %v4252_v10 }
 0xc14   : > { %8722 = vtanh.f32 %v4316_v19  ;;  %v4313_v30 = vmul.f32 %v8713_v14, %v4247_v27  ;;  %v6900_v14 = vld [vmem:[%s9170_s28 + $0x428] sm:$0xff] }
 0xc15   : > { %8724 = vtanh.f32 %v4315_v26  ;;  %v4318_v7 = vadd.f32 %v6877_v13, %v4314_v57  ;;  %v6899_v26 = vld [vmem:[%s9170_s28 + $0x420] sm:$0xff] }
 0xc16   : > { %v4317_v22 = vadd.f32 %v6876_v35, %v4313_v30  ;;  %v8715_v9 = vpop.eup %8714 }
 0xc17   : > { %8726 = vtanh.f32 %v4318_v7  ;;  %v8717_v11 = vpop.eup %8716  ;;  %v4324_v4 = vsub.f32 1.0, %v8715_v9  ;;  %v4332_v53 = vmul.f32 %v8715_v9, %v10402_v42 }
 0xc18   : > { %8728 = vtanh.f32 %v4317_v22  ;;  %v4323_v43 = vsub.f32 1.0, %v8717_v11  ;;  %v4331_v45 = vmul.f32 %v8717_v11, %v10404_v31 }
 0xc1a   : > { %v8719_v51 = vpop.eup %8718 }
 0xc1b   : > { %v8721_v28 = vpop.eup %8720  ;;  %v4326_v2 = vsub.f32 1.0, %v8719_v51  ;;  %v4334_v10 = vmul.f32 %v8719_v51, %v10410_v33 }
 0xc1c   : > { %v4325_v3 = vsub.f32 1.0, %v8721_v28  ;;  %v4333_v19 = vmul.f32 %v8721_v28, %v10412_v29  ;;  %v6902_v28 = vld [vmem:[%s9170_s28 + $0x438] sm:$0xff] }
 0xc1e   : > { %v8723_v5 = vpop.eup %8722 }
 0xc1f   : > { %v8725_v32 = vpop.eup %8724  ;;  %v4328_v6 = vmul.f32 %v8723_v5, %v4324_v4 }
 0xc20   : > { %v4327_v46 = vmul.f32 %v8725_v32, %v4323_v43  ;;  %v6901_v32 = vld [vmem:[%s9170_s28 + $0x430] sm:$0xff] }
 0xc21   : > { %v8727_v48 = vpop.eup %8726  ;;  %v10500_v34 = vadd.f32 %v4332_v53, %v4328_v6 }
 0xc22   : > { %v8729_v0 = vpop.eup %8728  ;;  %v10502_v21 = vadd.f32 %v4331_v45, %v4327_v46  ;;  %v4330_v25 = vmul.f32 %v8727_v48, %v4326_v2 }
 0xc23   : > { %v4329_v23 = vmul.f32 %v8729_v0, %v4325_v3  ;;  %v6904_v3 = vld [vmem:[%s9170_s28 + $0x448] sm:$0xff] }
 0xc24   : > { %v8150_v42 = vpack.c.bf16 %v10500_v34, %v10502_v21  ;;  %v10508_v13 = vadd.f32 %v4334_v10, %v4330_v25 }
 0xc25   : > { %v10510_v31 = vadd.f32 %v4333_v19, %v4329_v23  ;;  %v6903_v23 = vld [vmem:[%s9170_s28 + $0x440] sm:$0xff] }
 0xc26   : > { %8151 = vmatpush3.bf16.msra.mxu1 %v8150_v42 }
 0xc27   : > { %8152 = vmatprep.subr.bf16.mxu1 %v9052_v36  ;;  %v8153_v27 = vpack.c.bf16 %v10508_v13, %v10510_v31 }
 0xc2a   : > { %8154 = vmatpush3.bf16.msra.mxu1 %v8153_v27 }
 0xc2b   : > { %8156 = vmatprep.subr.bf16.mxu1 %v8150_v42 }
 0xc2d   : > { %7814 = vmatmul.mubr.msk.f32.vlgmr.msra.gmra.mrb[70].mxu1 %vm494_vm1, %v10420_v8 }
 0xc2e   : > { %8158 = vmatpush3.bf16.msra.mxu1 %v8150_v42  ;;  %7824 = vmatprep.mubr.msk.f32.mxu1 %vm494_vm1, %v10269_v15 }
 0xc2f   : > { %8160 = vmatprep.subr.bf16.mxu1 %v8153_v27 }
 0xc32   : > { %8162 = vmatpush3.bf16.msra.mxu1 %v8153_v27 }
 0xc33   : > { %8177 = vmatprep.subr.bf16.mxu1 %v9052_v36 }
 0xc35   : > { %7825 = vmatmul.mubr.msk.f32.vlgmr.msra.gmra.mrb[72].mxu1 %vm494_vm1, %v10277_v1 }
 0xc36   : > { %7827 = vmatprep.mubr.msk.f32.mxu1 %vm494_vm1, %v10284_v17 }
 0xc39   : > { %7828 = vmatmul.mubr.msk.f32.gmra.mrb[74].mxu1 %vm494_vm1, %v10291_v58 }
 0xc3a   : > { %7830 = vmatprep.mubr.msk.f32.mxu1 %vm494_vm1, %v10298_v49 }
 0xc3d   : > { %7831 = vmatmul.mubr.msk.f32.gmra.mrb[76].mxu1 %vm494_vm1, %v10305_v52 }
 0xc3e   : > { %7833 = vmatprep.mubr.msk.f32.mxu1 %vm494_vm1, %v10312_v50 }
 0xc41   : > { %7834 = vmatmul.mubr.msk.f32.gmra.mrb[78].mxu1 %vm494_vm1, %v10319_v62 }
 0xc42   : > { %7836 = vmatprep.mubr.msk.f32.mxu1 %vm494_vm1, %v10326_v55 }
 0xc45   : > { %7837 = vmatmul.mubr.msk.f32.gmra.mrb[80].mxu1 %vm494_vm1, %v10333_v16 }
 0xc46   : > { %7839 = vmatprep.mubr.msk.f32.mxu1 %vm494_vm1, %v10340_v63 }
 0xc49   : > { %7840 = vmatmul.mubr.msk.f32.gmra.mrb[82].mxu1 %vm494_vm1, %v10347_v54 }
 0xc4a   : > { %7887 = vmatprep.mubr.msk.f32.mxu1 %vm9053_vm2, %v9054_v37 }
 0xd00   : > { %v4405_v15 = vpop.f32.mrb[70].mxu1 }
 0xd01   : > { %v4406_v1 = vadd.f32 %v4405_v15, %v9415_v44  ;;  %v7815_v17 = vpop.f32.mrb[71].mxu1 }
 0xd02   : > { %v6906_v17 = vld [vmem:[%s9170_s28 + $0x458] sm:$0xff] }
 0xd03   : > { %v4409_v58 = vmax.f32 %v4406_v1, 0.0 }
 0xd05   : > { %v4411_v49 = vcombine.high %v4409_v58, %v4409_v58  ;;  %v4418_v52 = vrot.slane %v4409_v58, %v9418_v47 }
 0xd07   : > { %v4425_v50 = vrot.slane %v4411_v49, %v9418_v47  ;;  %v4426_v62 = vcombine.high %v4418_v52, %v4418_v52  ;;  %v4434_v55 = vrot.slane %v4418_v52, %v9418_v47 }
 0xd08   : > { %v7826_v16 = vpop.f32.mrb[72].mxu1 }
 0xd09   : > { %v4427_v63 = vcombine.high %v4425_v50, %v4425_v50  ;;  %v4441_v54 = vrot.slane %v4425_v50, %v9418_v47  ;;  %v4448_v33 = vrot.slane %v4426_v62, %v9418_v47  ;;  %v4456_v29 = vcombine.high %v4434_v55, %v4434_v55  ;;  %4468 = vst.msk [vmem:[%s9172_s16 + $0xa] sm:$0x1] %vm877_vm3, %v4434_v55  ;;  %v4555_v57 = vpop.f32.mrb[73].mxu1  ;;  %v6905_v50 = vld [vmem:[%s9170_s28 + $0x450] sm:$0xff] }
 0xd0a   : > { %v4561_v35 = vadd.f32 %v7826_v16, %v9320_v40  ;;  %v4556_v30 = vadd.f32 %v4555_v57, %v9316_v38 }
 0xd0b   : > { %v4455_v7 = vrot.slane %v4427_v63, %v9418_v47  ;;  %v4457_v22 = vcombine.high %v4441_v54, %v4441_v54  ;;  %v4458_v9 = vcombine.high %v4448_v33, %v4448_v33  ;;  %4469 = vst.msk [vmem:[%s9172_s16 + $0x1a] sm:$0x1] %vm877_vm3, %v4448_v33  ;;  %4470 = vst.msk [vmem:[%s9172_s16 + $0x2a] sm:$0x1] %vm877_vm3, %v4456_v29 }
 0xd0c   : > { %4472 = vst.msk [vmem:[%s9172_s16 + $0x4a] sm:$0x1] %vm877_vm3, %v4441_v54  ;;  %v4615_v11 = vadd.f32 %v6900_v14, %v4561_v35  ;;  %v4614_v51 = vadd.f32 %v6899_v26, %v4556_v30  ;;  %v7829_v4 = vpop.f32.mrb[74].mxu1 }
 0xd0d   : > { %v4459_v5 = vcombine.high %v4455_v7, %v4455_v7  ;;  %4471 = vst.msk [vmem:[%s9172_s16 + $0x3a] sm:$0x1] %vm877_vm3, %v4458_v9  ;;  %4473 = vst.msk [vmem:[%s9172_s16 + $0x5a] sm:$0x1] %vm877_vm3, %v4455_v7  ;;  %v4571_v43 = vadd.f32 %v7829_v4, %v9322_v41  ;;  %v4565_v6 = vpop.f32.mrb[75].mxu1 }
 0xd0e   : > { %4474 = vst.msk [vmem:[%s9172_s16 + $0x6a] sm:$0x1] %vm877_vm3, %v4457_v22  ;;  %v6924_v53 = vmul.f32 -1.442695, %v4615_v11  ;;  %v6923_v46 = vmul.f32 -1.442695, %v4614_v51  ;;  %v4566_v45 = vadd.f32 %v4565_v6, %v9318_v39 }
 0xd0f   : > { %4475 = vst.msk [vmem:[%s9172_s16 + $0x7a] sm:$0x1] %vm877_vm3, %v4459_v5  ;;  %v4617_v2 = vadd.f32 %v6902_v28, %v4571_v43 }
 0xd10   : > { %8730 = vpow2.f32 %v6924_v53  ;;  %v4616_v48 = vadd.f32 %v6901_v32, %v4566_v45  ;;  %v7832_v0 = vpop.f32.mrb[76].mxu1 }
 0xd11   : > { %8732 = vpow2.f32 %v6923_v46  ;;  %v6926_v25 = vmul.f32 -1.442695, %v4617_v2  ;;  %v4581_v10 = vadd.f32 %v7832_v0, %v9331_v56  ;;  %v4575_v19 = vpop.f32.mrb[77].mxu1  ;;  %v6908_v0 = vld [vmem:[%s9170_s28 + $0x468] sm:$0xff] }
 0xd12   : > { %v6925_v42 = vmul.f32 -1.442695, %v4616_v48  ;;  %v4576_v27 = vadd.f32 %v4575_v19, %v9334_v59  ;;  %v6907_v19 = vld [vmem:[%s9170_s28 + $0x460] sm:$0xff] }
 0xd13   : > { %8734 = vpow2.f32 %v6926_v25  ;;  %v4643_v15 = vadd.f32 %v6904_v3, %v4581_v10 }
 0xd14   : > { %8736 = vpow2.f32 %v6925_v42  ;;  %v4642_v1 = vadd.f32 %v6903_v23, %v4576_v27  ;;  %v7835_v58 = vpop.f32.mrb[78].mxu1 }
 0xd15   : > { %v6928_v49 = vmul.f32 -1.442695, %v4643_v15  ;;  %v4591_v52 = vadd.f32 %v7835_v58, %v9340_v12  ;;  %v4585_v62 = vpop.f32.mrb[79].mxu1 }
 0xd16   : > { %v6927_v55 = vmul.f32 -1.442695, %v4642_v1  ;;  %v4586_v16 = vadd.f32 %v4585_v62, %v9343_v18  ;;  %v6909_v62 = vld [vmem:[%s9170_s28 + $0x470] sm:$0xff] }
 0xd17   : > { %8738 = vpow2.f32 %v6928_v49  ;;  %v4645_v63 = vadd.f32 %v6906_v17, %v4591_v52  ;;  %v6910_v17 = vld [vmem:[%s9170_s28 + $0x478] sm:$0xff] }
 0xd18   : > { %8740 = vpow2.f32 %v6927_v55  ;;  %v4644_v54 = vadd.f32 %v6905_v50, %v4586_v16  ;;  %v7838_v33 = vpop.f32.mrb[80].mxu1 }
 0xd19   : > { %v6930_v29 = vmul.f32 -1.442695, %v4645_v63  ;;  %v4595_v14 = vpop.f32.mrb[81].mxu1  ;;  %v4601_v2 = vadd.f32 %v7838_v33, %v9348_v60 }
 0xd1a   : > { %v8731_v26 = vpop.eup %8730  ;;  %v6929_v57 = vmul.f32 -1.442695, %v4644_v54  ;;  %v4596_v25 = vadd.f32 %v4595_v14, %v9350_v61 }
 0xd1b   : > { %v8733_v35 = vpop.eup %8732  ;;  %v4631_v30 = vadd.f32 1.0, %v8731_v26  ;;  %8742 = vpow2.f32 %v6930_v29 }
 0xd1c   : > { %v4630_v7 = vadd.f32 1.0, %v8733_v35  ;;  %8744 = vpow2.f32 %v6929_v57  ;;  %v7841_v22 = vpop.f32.mrb[82].mxu1 }
 0xd1d   : > { %v8735_v9 = vpop.eup %8734  ;;  %8746 = vrcp.f32 %v4631_v30  ;;  %v4605_v11 = vpop.f32.mrb[83].mxu1  ;;  %v4611_v27 = vadd.f32 %v7841_v22, %v9356_v20 }
 0xd1e   : > { %v8737_v51 = vpop.eup %8736  ;;  %8748 = vrcp.f32 %v4630_v7  ;;  %v4633_v28 = vadd.f32 1.0, %v8735_v9  ;;  %v4606_v58 = vadd.f32 %v4605_v11, %v9358_v24 }
 0xd1f   : > { %v4632_v4 = vadd.f32 1.0, %v8737_v51 }
 0xd20   : > { %8750 = vrcp.f32 %v4633_v28 }
 0xd21   : > { %v8739_v5 = vpop.eup %8738  ;;  %8752 = vrcp.f32 %v4632_v4 }
 0xd22   : > { %v8741_v43 = vpop.eup %8740  ;;  %v4659_v32 = vadd.f32 1.0, %v8739_v5 }
 0xd23   : > { %v4658_v53 = vadd.f32 1.0, %v8741_v43 }
 0xd24   : > { %8754 = vrcp.f32 %v4659_v32 }
 0xd25   : > { %v8743_v6 = vpop.eup %8742  ;;  %8756 = vrcp.f32 %v4658_v53 }
 0xd26   : > { %v8745_v46 = vpop.eup %8744  ;;  %v4661_v45 = vadd.f32 1.0, %v8743_v6 }
 0xd27   : > { %v8747_v48 = vpop.eup %8746  ;;  %v4660_v3 = vadd.f32 1.0, %v8745_v46 }
 0xd28   : > { %v8749_v10 = vpop.eup %8748  ;;  %v4671_v23 = vmul.f32 %v8747_v48, %v4601_v2  ;;  %8758 = vrcp.f32 %v4661_v45 }
 0xd29   : > { %v4670_v42 = vmul.f32 %v8749_v10, %v4596_v25  ;;  %8760 = vrcp.f32 %v4660_v3  ;;  %v10635_v3 = vld [vmem:[%s11139_s1 + $0x18] sm:$0xff]  ;;  %v10649_v25 = vld [vmem:[%s11139_s1 + $0x28] sm:$0xff]  ;;  %v10656_v10 = vld [vmem:[%s11139_s1 + $0x30] sm:$0xff] }
 0xd2a   : > { %v8751_v15 = vpop.eup %8750  ;;  %v4675_v1 = vadd.f32 %v6908_v0, %v4671_v23  ;;  %v10642_v0 = vld [vmem:[%s11139_s1 + $0x20] sm:$0xff]  ;;  %v10663_v23 = vld [vmem:[%s11139_s1 + $0x38] sm:$0xff] }
 0xd2b   : > { %v8753_v49 = vpop.eup %8752  ;;  %v4674_v52 = vadd.f32 %v6907_v19, %v4670_v42  ;;  %v4673_v50 = vmul.f32 %v8751_v15, %v4611_v27  ;;  %v10670_v19 = vld [vmem:[%s11139_s1 + $0x40] sm:$0xff]  ;;  %v10677_v42 = vld [vmem:[%s11139_s1 + $0x48] sm:$0xff]  ;;  %v10684_v27 = vld [vmem:[%s11139_s1 + $0x50] sm:$0xff] }
 0xd2c   : > { %8762 = vtanh.f32 %v4675_v1  ;;  %v4672_v55 = vmul.f32 %v8753_v49, %v4606_v58  ;;  %v10691_v15 = vld [vmem:[%s11139_s1 + $0x58] sm:$0xff] }
 0xd2d   : > { %8764 = vtanh.f32 %v4674_v52  ;;  %v4677_v16 = vadd.f32 %v6910_v17, %v4673_v50 }
 0xd2e   : > { %v4676_v63 = vadd.f32 %v6909_v62, %v4672_v55  ;;  %v8755_v54 = vpop.eup %8754 }
 0xd2f   : > { %8766 = vtanh.f32 %v4677_v16  ;;  %v8757_v33 = vpop.eup %8756  ;;  %v4683_v26 = vsub.f32 1.0, %v8755_v54  ;;  %v4691_v22 = vmul.f32 %v8755_v54, %v10500_v34 }
 0xd30   : > { %8768 = vtanh.f32 %v4676_v63  ;;  %v4682_v35 = vsub.f32 1.0, %v8757_v33  ;;  %v4690_v11 = vmul.f32 %v8757_v33, %v10502_v21 }
 0xd32   : > { %v8759_v29 = vpop.eup %8758 }
 0xd33   : > { %v8761_v14 = vpop.eup %8760  ;;  %v4685_v51 = vsub.f32 1.0, %v8759_v29  ;;  %v4693_v53 = vmul.f32 %v8759_v29, %v10508_v13  ;;  %v10613_v13 = vld [vmem:[%s11139_s1] sm:$0xff] }
 0xd34   : > { %v4684_v5 = vsub.f32 1.0, %v8761_v14  ;;  %v4692_v45 = vmul.f32 %v8761_v14, %v10510_v31  ;;  %v10621_v31 = vld [vmem:[%s11139_s1 + $0x8] sm:$0xff] }
 0xd36   : > { %v8763_v57 = vpop.eup %8762 }
 0xd37   : > { %v8765_v30 = vpop.eup %8764  ;;  %v4687_v7 = vmul.f32 %v8763_v57, %v4683_v26  ;;  %v6933_v26 = vld [vmem:[%s9170_s28 + $0x488] sm:$0xff]  ;;  %v6932_v57 = vld [vmem:[%s9170_s28 + $0x480] sm:$0xff] }
 0xd38   : > { %v4686_v9 = vmul.f32 %v8765_v30, %v4682_v35 }
 0xd39   : > { %v8767_v28 = vpop.eup %8766  ;;  %v10593_v4 = vadd.f32 %v4691_v22, %v4687_v7 }
 0xd3a   : > { %v8769_v43 = vpop.eup %8768  ;;  %v10595_v32 = vadd.f32 %v4690_v11, %v4686_v9  ;;  %v4689_v6 = vmul.f32 %v8767_v28, %v4685_v51 }
 0xd3b   : > { %v4688_v46 = vmul.f32 %v8769_v43, %v4684_v5  ;;  %v6935_v5 = vld [vmem:[%s9170_s28 + $0x498] sm:$0xff] }
 0xd3c   : > { %v8164_v34 = vpack.c.bf16 %v10593_v4, %v10595_v32  ;;  %v10601_v2 = vadd.f32 %v4693_v53, %v4689_v6 }
 0xd3d   : > { %v10603_v21 = vadd.f32 %v4692_v45, %v4688_v46  ;;  %v6934_v46 = vld [vmem:[%s9170_s28 + $0x490] sm:$0xff] }
 0xd3e   : > { %8165 = vmatpush3.bf16.msra.mxu0 %v8164_v34 }
 0xd3f   : > { %8166 = vmatprep.subr.bf16.mxu0 %v9052_v36  ;;  %v8167_v48 = vpack.c.bf16 %v10601_v2, %v10603_v21 }
 0xd42   : > { %8168 = vmatpush3.bf16.msra.mxu0 %v8167_v48 }
 0xd43   : > { %8170 = vmatprep.subr.bf16.mxu0 %v8164_v34 }
 0xd45   : > { %7851 = vmatmul.mubr.msk.f32.vlgmr.msra.gmra.mrb[82].mxu0 %vm494_vm1, %v10420_v8  ;;  %v10628_v8 = vld [vmem:[%s11139_s1 + $0x10] sm:$0xff] }
 0xd46   : > { %8172 = vmatpush3.bf16.msra.mxu0 %v8164_v34  ;;  %7861 = vmatprep.mubr.msk.f32.mxu0 %vm494_vm1, %v10613_v13 }
 0xd47   : > { %8174 = vmatprep.subr.bf16.mxu0 %v8167_v48 }
 0xd4a   : > { %8176 = vmatpush3.bf16.msra.mxu0 %v8167_v48 }
 0xd4b   : > { %8191 = vmatprep.subr.bf16.mxu0 %v9052_v36 }
 0xd4d   : > { %7862 = vmatmul.mubr.msk.f32.vlgmr.msra.gmra.mrb[84].mxu0 %vm494_vm1, %v10621_v31 }
 0xd4e   : > { %7864 = vmatprep.mubr.msk.f32.mxu0 %vm494_vm1, %v10628_v8 }
 0xd51   : > { %7865 = vmatmul.mubr.msk.f32.gmra.mrb[86].mxu0 %vm494_vm1, %v10635_v3 }
 0xd52   : > { %7867 = vmatprep.mubr.msk.f32.mxu0 %vm494_vm1, %v10642_v0 }
 0xd55   : > { %7868 = vmatmul.mubr.msk.f32.gmra.mrb[88].mxu0 %vm494_vm1, %v10649_v25 }
 0xd56   : > { %7870 = vmatprep.mubr.msk.f32.mxu0 %vm494_vm1, %v10656_v10 }
 0xd59   : > { %7871 = vmatmul.mubr.msk.f32.gmra.mrb[90].mxu0 %vm494_vm1, %v10663_v23 }
 0xd5a   : > { %7873 = vmatprep.mubr.msk.f32.mxu0 %vm494_vm1, %v10670_v19 }
 0xd5d   : > { %7874 = vmatmul.mubr.msk.f32.gmra.mrb[92].mxu0 %vm494_vm1, %v10677_v42 }
 0xd5e   : > { %7876 = vmatprep.mubr.msk.f32.mxu0 %vm494_vm1, %v10684_v27 }
 0xd61   : > { %7877 = vmatmul.mubr.msk.f32.gmra.mrb[94].mxu0 %vm494_vm1, %v10691_v15 }
 0xd62   : > { %7924 = vmatprep.mubr.msk.f32.mxu0 %vm9053_vm2, %v9054_v37 }
 0xe18   : > { %v4764_v1 = vpop.f32.mrb[82].mxu0 }
 0xe19   : > { %v4765_v17 = vadd.f32 %v4764_v1, %v9415_v44  ;;  %v7852_v58 = vpop.f32.mrb[83].mxu0 }
 0xe1b   : > { %v4768_v49 = vmax.f32 %v4765_v17, 0.0 }
 0xe1d   : > { %v4770_v52 = vcombine.high %v4768_v49, %v4768_v49  ;;  %v4777_v50 = vrot.slane %v4768_v49, %v9418_v47  ;;  %v6937_v49 = vld [vmem:[%s9170_s28 + $0x4a8] sm:$0xff] }
 0xe1f   : > { %v4784_v62 = vrot.slane %v4770_v52, %v9418_v47  ;;  %v4785_v55 = vcombine.high %v4777_v50, %v4777_v50  ;;  %v4793_v16 = vrot.slane %v4777_v50, %v9418_v47 }
 0xe20   : > { %v7863_v63 = vpop.f32.mrb[84].mxu0 }
 0xe21   : > { %v4786_v54 = vcombine.high %v4784_v62, %v4784_v62  ;;  %v4800_v33 = vrot.slane %v4784_v62, %v9418_v47  ;;  %v4807_v29 = vrot.slane %v4785_v55, %v9418_v47  ;;  %v4815_v14 = vcombine.high %v4793_v16, %v4793_v16  ;;  %4827 = vst.msk [vmem:[%s9172_s16 + $0xb] sm:$0x1] %vm877_vm3, %v4793_v16  ;;  %v4914_v35 = vpop.f32.mrb[85].mxu0  ;;  %v6936_v55 = vld [vmem:[%s9170_s28 + $0x4a0] sm:$0xff] }
 0xe22   : > { %v4920_v30 = vadd.f32 %v7863_v63, %v9320_v40  ;;  %v4915_v7 = vadd.f32 %v4914_v35, %v9316_v38 }
 0xe23   : > { %v4814_v22 = vrot.slane %v4786_v54, %v9418_v47  ;;  %v4816_v9 = vcombine.high %v4800_v33, %v4800_v33  ;;  %v4817_v11 = vcombine.high %v4807_v29, %v4807_v29  ;;  %4828 = vst.msk [vmem:[%s9172_s16 + $0x1b] sm:$0x1] %vm877_vm3, %v4807_v29  ;;  %4829 = vst.msk [vmem:[%s9172_s16 + $0x2b] sm:$0x1] %vm877_vm3, %v4815_v14  ;;  %v6939_v14 = vld [vmem:[%s9170_s28 + $0x4b8] sm:$0xff] }
 0xe24   : > { %4831 = vst.msk [vmem:[%s9172_s16 + $0x4b] sm:$0x1] %vm877_vm3, %v4800_v33  ;;  %v4974_v51 = vadd.f32 %v6933_v26, %v4920_v30  ;;  %v4973_v28 = vadd.f32 %v6932_v57, %v4915_v7  ;;  %v7866_v43 = vpop.f32.mrb[86].mxu0  ;;  %v6938_v30 = vld [vmem:[%s9170_s28 + $0x4b0] sm:$0xff] }
 0xe25   : > { %v4818_v6 = vcombine.high %v4814_v22, %v4814_v22  ;;  %4830 = vst.msk [vmem:[%s9172_s16 + $0x3b] sm:$0x1] %vm877_vm3, %v4817_v11  ;;  %4832 = vst.msk [vmem:[%s9172_s16 + $0x5b] sm:$0x1] %vm877_vm3, %v4814_v22  ;;  %v4930_v53 = vadd.f32 %v7866_v43, %v9322_v41  ;;  %v4924_v45 = vpop.f32.mrb[87].mxu0 }
 0xe26   : > { %4833 = vst.msk [vmem:[%s9172_s16 + $0x6b] sm:$0x1] %vm877_vm3, %v4816_v9  ;;  %v6957_v34 = vmul.f32 -1.442695, %v4974_v51  ;;  %v6956_v48 = vmul.f32 -1.442695, %v4973_v28  ;;  %v4925_v1 = vadd.f32 %v4924_v45, %v9318_v39 }
 0xe27   : > { %4834 = vst.msk [vmem:[%s9172_s16 + $0x7b] sm:$0x1] %vm877_vm3, %v4818_v6  ;;  %v4976_v17 = vadd.f32 %v6935_v5, %v4930_v53 }
 0xe28   : > { %8770 = vpow2.f32 %v6957_v34  ;;  %v4975_v58 = vadd.f32 %v6934_v46, %v4925_v1  ;;  %v7869_v52 = vpop.f32.mrb[88].mxu0 }
 0xe29   : > { %8772 = vpow2.f32 %v6956_v48  ;;  %v6959_v50 = vmul.f32 -1.442695, %v4976_v17  ;;  %v4940_v62 = vadd.f32 %v7869_v52, %v9331_v56  ;;  %v4934_v16 = vpop.f32.mrb[89].mxu0 }
 0xe2a   : > { %v6958_v63 = vmul.f32 -1.442695, %v4975_v58  ;;  %v4935_v54 = vadd.f32 %v4934_v16, %v9334_v59 }
 0xe2b   : > { %8774 = vpow2.f32 %v6959_v50  ;;  %v5002_v33 = vadd.f32 %v6937_v49, %v4940_v62 }
 0xe2c   : > { %8776 = vpow2.f32 %v6958_v63  ;;  %v5001_v29 = vadd.f32 %v6936_v55, %v4935_v54  ;;  %v7872_v26 = vpop.f32.mrb[90].mxu0 }
 0xe2d   : > { %v6961_v57 = vmul.f32 -1.442695, %v5002_v33  ;;  %v4950_v35 = vadd.f32 %v7872_v26, %v9340_v12  ;;  %v4944_v7 = vpop.f32.mrb[91].mxu0 }
 0xe2e   : > { %v6960_v22 = vmul.f32 -1.442695, %v5001_v29  ;;  %v4945_v9 = vadd.f32 %v4944_v7, %v9343_v18 }
 0xe2f   : > { %8778 = vpow2.f32 %v6961_v57  ;;  %v5004_v11 = vadd.f32 %v6939_v14, %v4950_v35  ;;  %v6941_v57 = vld [vmem:[%s9170_s28 + $0x4c8] sm:$0xff] }
 0xe30   : > { %8780 = vpow2.f32 %v6960_v22  ;;  %v5003_v51 = vadd.f32 %v6938_v30, %v4945_v9  ;;  %v7875_v28 = vpop.f32.mrb[92].mxu0  ;;  %v6940_v22 = vld [vmem:[%s9170_s28 + $0x4c0] sm:$0xff] }
 0xe31   : > { %v6963_v5 = vmul.f32 -1.442695, %v5004_v11  ;;  %v4954_v43 = vpop.f32.mrb[93].mxu0  ;;  %v4960_v29 = vadd.f32 %v7875_v28, %v9348_v60 }
 0xe32   : > { %v8771_v6 = vpop.eup %8770  ;;  %v6962_v53 = vmul.f32 -1.442695, %v5003_v51  ;;  %v4955_v35 = vadd.f32 %v4954_v43, %v9350_v61  ;;  %v6942_v43 = vld [vmem:[%s9170_s28 + $0x4d0] sm:$0xff] }
 0xe33   : > { %v8773_v46 = vpop.eup %8772  ;;  %v4990_v45 = vadd.f32 1.0, %v8771_v6  ;;  %8782 = vpow2.f32 %v6963_v5  ;;  %v6943_v6 = vld [vmem:[%s9170_s28 + $0x4d8] sm:$0xff] }
 0xe34   : > { %v4989_v34 = vadd.f32 1.0, %v8773_v46  ;;  %8784 = vpow2.f32 %v6962_v53  ;;  %v7878_v48 = vpop.f32.mrb[94].mxu0 }
 0xe35   : > { %v8775_v1 = vpop.eup %8774  ;;  %8786 = vrcp.f32 %v4990_v45  ;;  %v4964_v17 = vpop.f32.mrb[95].mxu0  ;;  %v4970_v11 = vadd.f32 %v7878_v48, %v9356_v20 }
 0xe36   : > { %v8777_v58 = vpop.eup %8776  ;;  %8788 = vrcp.f32 %v4989_v34  ;;  %v4992_v49 = vadd.f32 1.0, %v8775_v1  ;;  %v4965_v28 = vadd.f32 %v4964_v17, %v9358_v24 }
 0xe37   : > { %v4991_v52 = vadd.f32 1.0, %v8777_v58 }
 0xe38   : > { %8790 = vrcp.f32 %v4992_v49 }
 0xe39   : > { %v8779_v50 = vpop.eup %8778  ;;  %8792 = vrcp.f32 %v4991_v52 }
 0xe3a   : > { %v8781_v62 = vpop.eup %8780  ;;  %v5018_v55 = vadd.f32 1.0, %v8779_v50 }
 0xe3b   : > { %v5017_v63 = vadd.f32 1.0, %v8781_v62 }
 0xe3c   : > { %8794 = vrcp.f32 %v5018_v55 }
 0xe3d   : > { %v8783_v16 = vpop.eup %8782  ;;  %8796 = vrcp.f32 %v5017_v63 }
 0xe3e   : > { %v8785_v54 = vpop.eup %8784  ;;  %v5020_v33 = vadd.f32 1.0, %v8783_v16 }
 0xe3f   : > { %v8787_v14 = vpop.eup %8786  ;;  %v5019_v26 = vadd.f32 1.0, %v8785_v54 }
 0xe40   : > { %v8789_v30 = vpop.eup %8788  ;;  %v5030_v7 = vmul.f32 %v8787_v14, %v4960_v29  ;;  %8798 = vrcp.f32 %v5020_v33 }
 0xe41   : > { %v5029_v9 = vmul.f32 %v8789_v30, %v4955_v35  ;;  %8800 = vrcp.f32 %v5019_v26 }
 0xe42   : > { %v8791_v51 = vpop.eup %8790  ;;  %v5034_v5 = vadd.f32 %v6941_v57, %v5030_v7 }
 0xe43   : > { %v8793_v53 = vpop.eup %8792  ;;  %v5033_v46 = vadd.f32 %v6940_v22, %v5029_v9  ;;  %v5032_v45 = vmul.f32 %v8791_v51, %v4970_v11 }
 0xe44   : > { %8802 = vtanh.f32 %v5034_v5  ;;  %v5031_v34 = vmul.f32 %v8793_v53, %v4965_v28 }
 0xe45   : > { %8804 = vtanh.f32 %v5033_v46  ;;  %v5036_v1 = vadd.f32 %v6943_v6, %v5032_v45 }
 0xe46   : > { %v5035_v58 = vadd.f32 %v6942_v43, %v5031_v34  ;;  %v8795_v49 = vpop.eup %8794 }
 0xe47   : > { %8806 = vtanh.f32 %v5036_v1  ;;  %v8797_v48 = vpop.eup %8796  ;;  %v5042_v62 = vsub.f32 1.0, %v8795_v49  ;;  %v5050_v54 = vmul.f32 %v8795_v49, %v10593_v4 }
 0xe48   : > { %8808 = vtanh.f32 %v5035_v58  ;;  %v5041_v16 = vsub.f32 1.0, %v8797_v48  ;;  %v5049_v29 = vmul.f32 %v8797_v48, %v10595_v32 }
 0xe4a   : > { %v8799_v52 = vpop.eup %8798 }
 0xe4b   : > { %v8801_v50 = vpop.eup %8800  ;;  %v5044_v14 = vsub.f32 1.0, %v8799_v52  ;;  %v5052_v9 = vmul.f32 %v8799_v52, %v10601_v2  ;;  %v10764_v2 = vld [vmem:[%s11141_s3] sm:$0xff] }
 0xe4c   : > { %v5043_v35 = vsub.f32 1.0, %v8801_v50  ;;  %v5051_v51 = vmul.f32 %v8801_v50, %v10603_v21 }
 0xe4e   : > { %v8803_v55 = vpop.eup %8802 }
 0xe4f   : > { %v8805_v17 = vpop.eup %8804  ;;  %v5046_v63 = vmul.f32 %v8803_v55, %v5042_v62  ;;  %v6966_v55 = vld [vmem:[%s9170_s28 + $0x4e8] sm:$0xff] }
 0xe50   : > { %v5045_v33 = vmul.f32 %v8805_v17, %v5041_v16  ;;  %v6965_v16 = vld [vmem:[%s9170_s28 + $0x4e0] sm:$0xff] }
 0xe51   : > { %v8807_v26 = vpop.eup %8806  ;;  %v10746_v57 = vadd.f32 %v5050_v54, %v5046_v63 }
 0xe52   : > { %v8809_v30 = vpop.eup %8808  ;;  %v10748_v7 = vadd.f32 %v5049_v29, %v5045_v33  ;;  %v5048_v22 = vmul.f32 %v8807_v26, %v5044_v14 }
 0xe53   : > { %v5047_v11 = vmul.f32 %v8809_v30, %v5043_v35  ;;  %v6968_v30 = vld [vmem:[%s9170_s28 + $0x4f8] sm:$0xff] }
 0xe54   : > { %v8178_v4 = vpack.c.bf16 %v10746_v57, %v10748_v7  ;;  %v10754_v5 = vadd.f32 %v5052_v9, %v5048_v22 }
 0xe55   : > { %v10756_v32 = vadd.f32 %v5051_v51, %v5047_v11  ;;  %v6967_v51 = vld [vmem:[%s9170_s28 + $0x4f0] sm:$0xff] }
 0xe56   : > { %8179 = vmatpush3.bf16.msra.mxu1 %v8178_v4 }
 0xe57   : > { %8180 = vmatprep.subr.bf16.mxu1 %v9052_v36  ;;  %v8181_v6 = vpack.c.bf16 %v10754_v5, %v10756_v32 }
 0xe5a   : > { %8182 = vmatpush3.bf16.msra.mxu1 %v8181_v6 }
 0xe5b   : > { %8184 = vmatprep.subr.bf16.mxu1 %v8178_v4 }
 0xe5d   : > { %7888 = vmatmul.mubr.msk.f32.vlgmr.msra.gmra.mrb[84].mxu1 %vm494_vm1, %v10764_v2 }
 0xe5e   : > { %8186 = vmatpush3.bf16.msra.mxu1 %v8178_v4  ;;  %7898 = vmatprep.mubr.msk.f32.mxu1 %vm494_vm1, %v10613_v13 }
 0xe5f   : > { %8188 = vmatprep.subr.bf16.mxu1 %v8181_v6 }
 0xe62   : > { %8190 = vmatpush3.bf16.msra.mxu1 %v8181_v6 }
 0xe63   : > { %8205 = vmatprep.subr.bf16.mxu1 %v9052_v36 }
 0xe65   : > { %7899 = vmatmul.mubr.msk.f32.vlgmr.msra.gmra.mrb[86].mxu1 %vm494_vm1, %v10621_v31 }
 0xe66   : > { %7901 = vmatprep.mubr.msk.f32.mxu1 %vm494_vm1, %v10628_v8 }
 0xe69   : > { %7902 = vmatmul.mubr.msk.f32.gmra.mrb[88].mxu1 %vm494_vm1, %v10635_v3 }
 0xe6a   : > { %7904 = vmatprep.mubr.msk.f32.mxu1 %vm494_vm1, %v10642_v0 }
 0xe6d   : > { %7905 = vmatmul.mubr.msk.f32.gmra.mrb[90].mxu1 %vm494_vm1, %v10649_v25 }
 0xe6e   : > { %7907 = vmatprep.mubr.msk.f32.mxu1 %vm494_vm1, %v10656_v10 }
 0xe71   : > { %7908 = vmatmul.mubr.msk.f32.gmra.mrb[92].mxu1 %vm494_vm1, %v10663_v23 }
 0xe72   : > { %7910 = vmatprep.mubr.msk.f32.mxu1 %vm494_vm1, %v10670_v19 }
 0xe75   : > { %7911 = vmatmul.mubr.msk.f32.gmra.mrb[94].mxu1 %vm494_vm1, %v10677_v42 }
 0xe76   : > { %7913 = vmatprep.mubr.msk.f32.mxu1 %vm494_vm1, %v10684_v27 }
 0xe79   : > { %7914 = vmatmul.mubr.msk.f32.gmra.mrb[96].mxu1 %vm494_vm1, %v10691_v15 }
 0xe7a   : > { %7961 = vmatprep.mubr.msk.f32.mxu1 %vm9053_vm2, %v9054_v37 }
 0xf30   : > { %v5123_v21 = vpop.f32.mrb[84].mxu1 }
 0xf31   : > { %v5124_v28 = vadd.f32 %v5123_v21, %v9415_v44  ;;  %v7889_v53 = vpop.f32.mrb[85].mxu1 }
 0xf33   : > { %v5127_v46 = vmax.f32 %v5124_v28, 0.0 }
 0xf35   : > { %v5129_v45 = vcombine.high %v5127_v46, %v5127_v46  ;;  %v5136_v43 = vrot.slane %v5127_v46, %v9418_v47 }
 0xf37   : > { %v5143_v34 = vrot.slane %v5129_v45, %v9418_v47  ;;  %v5144_v1 = vcombine.high %v5136_v43, %v5136_v43  ;;  %v5152_v58 = vrot.slane %v5136_v43, %v9418_v47  ;;  %v6970_v45 = vld [vmem:[%s9170_s28 + $0x508] sm:$0xff] }
 0xf38   : > { %v7900_v49 = vpop.f32.mrb[86].mxu1 }
 0xf39   : > { %v5145_v48 = vcombine.high %v5143_v34, %v5143_v34  ;;  %v5159_v52 = vrot.slane %v5143_v34, %v9418_v47  ;;  %v5166_v50 = vrot.slane %v5144_v1, %v9418_v47  ;;  %v5174_v62 = vcombine.high %v5152_v58, %v5152_v58  ;;  %5186 = vst.msk [vmem:[%s9172_s16 + $0xc] sm:$0x1] %vm877_vm3, %v5152_v58  ;;  %v5273_v17 = vpop.f32.mrb[87].mxu1  ;;  %v6969_v58 = vld [vmem:[%s9170_s28 + $0x500] sm:$0xff] }
 0xf3a   : > { %v5279_v63 = vadd.f32 %v7900_v49, %v9320_v40  ;;  %v5274_v54 = vadd.f32 %v5273_v17, %v9316_v38 }
 0xf3b   : > { %v5173_v33 = vrot.slane %v5145_v48, %v9418_v47  ;;  %v5175_v29 = vcombine.high %v5159_v52, %v5159_v52  ;;  %v5176_v14 = vcombine.high %v5166_v50, %v5166_v50  ;;  %5187 = vst.msk [vmem:[%s9172_s16 + $0x1c] sm:$0x1] %vm877_vm3, %v5166_v50  ;;  %5188 = vst.msk [vmem:[%s9172_s16 + $0x2c] sm:$0x1] %vm877_vm3, %v5174_v62 }
 0xf3c   : > { %5190 = vst.msk [vmem:[%s9172_s16 + $0x4c] sm:$0x1] %vm877_vm3, %v5159_v52  ;;  %v5333_v26 = vadd.f32 %v6966_v55, %v5279_v63  ;;  %v5332_v35 = vadd.f32 %v6965_v16, %v5274_v54  ;;  %v7903_v22 = vpop.f32.mrb[88].mxu1  ;;  %v6972_v55 = vld [vmem:[%s9170_s28 + $0x518] sm:$0xff]  ;;  %v6971_v54 = vld [vmem:[%s9170_s28 + $0x510] sm:$0xff] }
 0xf3d   : > { %v5177_v9 = vcombine.high %v5173_v33, %v5173_v33  ;;  %5189 = vst.msk [vmem:[%s9172_s16 + $0x3c] sm:$0x1] %vm877_vm3, %v5176_v14  ;;  %5191 = vst.msk [vmem:[%s9172_s16 + $0x5c] sm:$0x1] %vm877_vm3, %v5173_v33  ;;  %v5289_v11 = vadd.f32 %v7903_v22, %v9322_v41  ;;  %v5283_v4 = vpop.f32.mrb[89].mxu1 }
 0xf3e   : > { %5192 = vst.msk [vmem:[%s9172_s16 + $0x6c] sm:$0x1] %vm877_vm3, %v5175_v29  ;;  %v6990_v6 = vmul.f32 -1.442695, %v5333_v26  ;;  %v6989_v21 = vmul.f32 -1.442695, %v5332_v35  ;;  %v5284_v28 = vadd.f32 %v5283_v4, %v9318_v39 }
 0xf3f   : > { %5193 = vst.msk [vmem:[%s9172_s16 + $0x7c] sm:$0x1] %vm877_vm3, %v5177_v9  ;;  %v5335_v53 = vadd.f32 %v6968_v30, %v5289_v11 }
 0xf40   : > { %8810 = vpow2.f32 %v6990_v6  ;;  %v5334_v46 = vadd.f32 %v6967_v51, %v5284_v28  ;;  %v7906_v43 = vpop.f32.mrb[90].mxu1 }
 0xf41   : > { %8812 = vpow2.f32 %v6989_v21  ;;  %v6992_v34 = vmul.f32 -1.442695, %v5335_v53  ;;  %v5299_v1 = vadd.f32 %v7906_v43, %v9331_v56  ;;  %v5293_v49 = vpop.f32.mrb[91].mxu1 }
 0xf42   : > { %v6991_v48 = vmul.f32 -1.442695, %v5334_v46  ;;  %v5294_v52 = vadd.f32 %v5293_v49, %v9334_v59 }
 0xf43   : > { %8814 = vpow2.f32 %v6992_v34  ;;  %v5361_v50 = vadd.f32 %v6970_v45, %v5299_v1 }
 0xf44   : > { %8816 = vpow2.f32 %v6991_v48  ;;  %v5360_v62 = vadd.f32 %v6969_v58, %v5294_v52  ;;  %v7909_v16 = vpop.f32.mrb[92].mxu1 }
 0xf45   : > { %v6994_v17 = vmul.f32 -1.442695, %v5361_v50  ;;  %v5309_v63 = vadd.f32 %v7909_v16, %v9340_v12  ;;  %v5303_v33 = vpop.f32.mrb[93].mxu1 }
 0xf46   : > { %v6993_v29 = vmul.f32 -1.442695, %v5360_v62  ;;  %v5304_v14 = vadd.f32 %v5303_v33, %v9343_v18 }
 0xf47   : > { %8818 = vpow2.f32 %v6994_v17  ;;  %v5363_v26 = vadd.f32 %v6972_v55, %v5309_v63  ;;  %v6974_v63 = vld [vmem:[%s9170_s28 + $0x528] sm:$0xff] }
 0xf48   : > { %8820 = vpow2.f32 %v6993_v29  ;;  %v5362_v35 = vadd.f32 %v6971_v54, %v5304_v14  ;;  %v7912_v30 = vpop.f32.mrb[94].mxu1  ;;  %v6973_v14 = vld [vmem:[%s9170_s28 + $0x520] sm:$0xff] }
 0xf49   : > { %v6996_v22 = vmul.f32 -1.442695, %v5363_v26  ;;  %v5313_v9 = vpop.f32.mrb[95].mxu1  ;;  %v5319_v55 = vadd.f32 %v7912_v30, %v9348_v60 }
 0xf4a   : > { %v8811_v11 = vpop.eup %8810  ;;  %v6995_v51 = vmul.f32 -1.442695, %v5362_v35  ;;  %v5314_v54 = vadd.f32 %v5313_v9, %v9350_v61  ;;  %v6975_v9 = vld [vmem:[%s9170_s28 + $0x530] sm:$0xff] }
 0xf4b   : > { %v8813_v4 = vpop.eup %8812  ;;  %v5349_v6 = vadd.f32 1.0, %v8811_v11  ;;  %8822 = vpow2.f32 %v6996_v22 }
 0xf4c   : > { %v5348_v21 = vadd.f32 1.0, %v8813_v4  ;;  %8824 = vpow2.f32 %v6995_v51  ;;  %v7915_v28 = vpop.f32.mrb[96].mxu1  ;;  %v6976_v51 = vld [vmem:[%s9170_s28 + $0x538] sm:$0xff] }
 0xf4d   : > { %v8815_v53 = vpop.eup %8814  ;;  %8826 = vrcp.f32 %v5349_v6  ;;  %v5323_v46 = vpop.f32.mrb[97].mxu1  ;;  %v5329_v35 = vadd.f32 %v7915_v28, %v9356_v20 }
 0xf4e   : > { %v8817_v45 = vpop.eup %8816  ;;  %8828 = vrcp.f32 %v5348_v21  ;;  %v5351_v43 = vadd.f32 1.0, %v8815_v53  ;;  %v5324_v30 = vadd.f32 %v5323_v46, %v9358_v24 }
 0xf4f   : > { %v5350_v34 = vadd.f32 1.0, %v8817_v45 }
 0xf50   : > { %8830 = vrcp.f32 %v5351_v43 }
 0xf51   : > { %v8819_v1 = vpop.eup %8818  ;;  %8832 = vrcp.f32 %v5350_v34 }
 0xf52   : > { %v8821_v58 = vpop.eup %8820  ;;  %v5377_v49 = vadd.f32 1.0, %v8819_v1 }
 0xf53   : > { %v5376_v52 = vadd.f32 1.0, %v8821_v58 }
 0xf54   : > { %8834 = vrcp.f32 %v5377_v49 }
 0xf55   : > { %v8823_v48 = vpop.eup %8822  ;;  %8836 = vrcp.f32 %v5376_v52 }
 0xf56   : > { %v8825_v50 = vpop.eup %8824  ;;  %v5379_v62 = vadd.f32 1.0, %v8823_v48 }
 0xf57   : > { %v8827_v16 = vpop.eup %8826  ;;  %v5378_v17 = vadd.f32 1.0, %v8825_v50 }
 0xf58   : > { %v8829_v33 = vpop.eup %8828  ;;  %v5389_v29 = vmul.f32 %v8827_v16, %v5319_v55  ;;  %8838 = vrcp.f32 %v5379_v62 }
 0xf59   : > { %v5388_v26 = vmul.f32 %v8829_v33, %v5314_v54  ;;  %8840 = vrcp.f32 %v5378_v17 }
 0xf5a   : > { %v8831_v22 = vpop.eup %8830  ;;  %v5393_v11 = vadd.f32 %v6974_v63, %v5389_v29 }
 0xf5b   : > { %v8833_v4 = vpop.eup %8832  ;;  %v5392_v6 = vadd.f32 %v6973_v14, %v5388_v26  ;;  %v5391_v21 = vmul.f32 %v8831_v22, %v5329_v35 }
 0xf5c   : > { %8842 = vtanh.f32 %v5393_v11  ;;  %v5390_v53 = vmul.f32 %v8833_v4, %v5324_v30  ;;  %v6998_v4 = vld [vmem:[%s9170_s28 + $0x540] sm:$0xff] }
 0xf5d   : > { %8844 = vtanh.f32 %v5392_v6  ;;  %v5395_v45 = vadd.f32 %v6976_v51, %v5391_v21 }
 0xf5e   : > { %v5394_v43 = vadd.f32 %v6975_v9, %v5390_v53  ;;  %v8835_v34 = vpop.eup %8834 }
 0xf5f   : > { %8846 = vtanh.f32 %v5395_v45  ;;  %v8837_v28 = vpop.eup %8836  ;;  %v5401_v49 = vsub.f32 1.0, %v8835_v34  ;;  %v5409_v62 = vmul.f32 %v8835_v34, %v10746_v57 }
 0xf60   : > { %8848 = vtanh.f32 %v5394_v43  ;;  %v5400_v52 = vsub.f32 1.0, %v8837_v28  ;;  %v5408_v16 = vmul.f32 %v8837_v28, %v10748_v7 }
 0xf62   : > { %v8839_v1 = vpop.eup %8838 }
 0xf63   : > { %v8841_v58 = vpop.eup %8840  ;;  %v5403_v17 = vsub.f32 1.0, %v8839_v1  ;;  %v5411_v35 = vmul.f32 %v8839_v1, %v10754_v5  ;;  %v7001_v1 = vld [vmem:[%s9170_s28 + $0x558] sm:$0xff] }
 0xf64   : > { %v5402_v33 = vsub.f32 1.0, %v8841_v58  ;;  %v5410_v11 = vmul.f32 %v8841_v58, %v10756_v32  ;;  %v6999_v32 = vld [vmem:[%s9170_s28 + $0x548] sm:$0xff] }
 0xf66   : > { %v8843_v48 = vpop.eup %8842 }
 0xf67   : > { %v8845_v46 = vpop.eup %8844  ;;  %v5405_v50 = vmul.f32 %v8843_v48, %v5401_v49 }
 0xf68   : > { %v5404_v55 = vmul.f32 %v8845_v46, %v5400_v52  ;;  %v7000_v52 = vld [vmem:[%s9170_s28 + $0x550] sm:$0xff] }
 0xf69   : > { %v8847_v63 = vpop.eup %8846  ;;  %v10844_v54 = vadd.f32 %v5409_v62, %v5405_v50 }
 0xf6a   : > { %v8849_v29 = vpop.eup %8848  ;;  %v10846_v14 = vadd.f32 %v5408_v16, %v5404_v55  ;;  %v5407_v26 = vmul.f32 %v8847_v63, %v5403_v17  ;;  %v7003_v63 = vld [vmem:[%s9170_s28 + $0x568] sm:$0xff] }
 0xf6b   : > { %v5406_v22 = vmul.f32 %v8849_v29, %v5402_v33 }
 0xf6c   : > { %v8192_v57 = vpack.c.bf16 %v10844_v54, %v10846_v14  ;;  %v10852_v51 = vadd.f32 %v5411_v35, %v5407_v26  ;;  %v7002_v35 = vld [vmem:[%s9170_s28 + $0x560] sm:$0xff] }
 0xf6d   : > { %v10854_v7 = vadd.f32 %v5410_v11, %v5406_v22 }
 0xf6e   : > { %8193 = vmatpush3.bf16.msra.mxu0 %v8192_v57 }
 0xf6f   : > { %8194 = vmatprep.subr.bf16.mxu0 %v9052_v36  ;;  %v8195_v30 = vpack.c.bf16 %v10852_v51, %v10854_v7 }
 0xf72   : > { %8196 = vmatpush3.bf16.msra.mxu0 %v8195_v30 }
 0xf73   : > { %8198 = vmatprep.subr.bf16.mxu0 %v8192_v57 }
 0xf75   : > { %7925 = vmatmul.mubr.msk.f32.vlgmr.msra.gmra.mrb[96].mxu0 %vm494_vm1, %v10764_v2 }
 0xf76   : > { %8200 = vmatpush3.bf16.msra.mxu0 %v8192_v57  ;;  %7935 = vmatprep.mubr.msk.f32.mxu0 %vm494_vm1, %v10613_v13 }
 0xf77   : > { %8202 = vmatprep.subr.bf16.mxu0 %v8195_v30 }
 0xf7a   : > { %8204 = vmatpush3.bf16.msra.mxu0 %v8195_v30 }
 0xf7b   : > { %8219 = vmatprep.subr.bf16.mxu0 %v9052_v36 }
 0xf7d   : > { %7936 = vmatmul.mubr.msk.f32.vlgmr.msra.gmra.mrb[98].mxu0 %vm494_vm1, %v10621_v31 }
 0xf7e   : > { %7938 = vmatprep.mubr.msk.f32.mxu0 %vm494_vm1, %v10628_v8 }
 0xf81   : > { %7939 = vmatmul.mubr.msk.f32.gmra.mrb[100].mxu0 %vm494_vm1, %v10635_v3 }
 0xf82   : > { %7941 = vmatprep.mubr.msk.f32.mxu0 %vm494_vm1, %v10642_v0 }
 0xf85   : > { %7942 = vmatmul.mubr.msk.f32.gmra.mrb[102].mxu0 %vm494_vm1, %v10649_v25 }
 0xf86   : > { %7944 = vmatprep.mubr.msk.f32.mxu0 %vm494_vm1, %v10656_v10 }
 0xf89   : > { %7945 = vmatmul.mubr.msk.f32.gmra.mrb[104].mxu0 %vm494_vm1, %v10663_v23 }
 0xf8a   : > { %7947 = vmatprep.mubr.msk.f32.mxu0 %vm494_vm1, %v10670_v19 }
 0xf8d   : > { %7948 = vmatmul.mubr.msk.f32.gmra.mrb[106].mxu0 %vm494_vm1, %v10677_v42 }
 0xf8e   : > { %7950 = vmatprep.mubr.msk.f32.mxu0 %vm494_vm1, %v10684_v27 }
 0xf91   : > { %7951 = vmatmul.mubr.msk.f32.gmra.mrb[108].mxu0 %vm494_vm1, %v10691_v15 }
 0xf92   : > { %7998 = vmatprep.mubr.msk.f32.mxu0 %vm9053_vm2, %v9054_v37 }
0x1048   : > { %v5482_v13 = vpop.f32.mrb[96].mxu0 }
0x1049   : > { %v5483_v31 = vadd.f32 %v5482_v13, %v9415_v44  ;;  %v7926_v8 = vpop.f32.mrb[97].mxu0 }
0x104b   : > { %v5486_v3 = vmax.f32 %v5483_v31, 0.0  ;;  %v7005_v31 = vld [vmem:[%s9170_s28 + $0x578] sm:$0xff] }
0x104d   : > { %v5488_v0 = vcombine.high %v5486_v3, %v5486_v3  ;;  %v5495_v25 = vrot.slane %v5486_v3, %v9418_v47 }
0x104f   : > { %v5502_v10 = vrot.slane %v5488_v0, %v9418_v47  ;;  %v5503_v23 = vcombine.high %v5495_v25, %v5495_v25  ;;  %v5511_v19 = vrot.slane %v5495_v25, %v9418_v47  ;;  %v7004_v25 = vld [vmem:[%s9170_s28 + $0x570] sm:$0xff] }
0x1050   : > { %v7937_v42 = vpop.f32.mrb[98].mxu0 }
0x1051   : > { %v5504_v37 = vcombine.high %v5502_v10, %v5502_v10  ;;  %v5518_v27 = vrot.slane %v5502_v10, %v9418_v47  ;;  %v5525_v15 = vrot.slane %v5503_v23, %v9418_v47  ;;  %v5533_v5 = vcombine.high %v5511_v19, %v5511_v19  ;;  %5545 = vst.msk [vmem:[%s9172_s16 + $0xd] sm:$0x1] %vm877_vm3, %v5511_v19  ;;  %v5632_v6 = vpop.f32.mrb[99].mxu0 }
0x1052   : > { %v5638_v21 = vadd.f32 %v7937_v42, %v9320_v40  ;;  %v5633_v9 = vadd.f32 %v5632_v6, %v9316_v38 }
0x1053   : > { %v5532_v53 = vrot.slane %v5504_v37, %v9418_v47  ;;  %v5534_v45 = vcombine.high %v5518_v27, %v5518_v27  ;;  %v5535_v43 = vcombine.high %v5525_v15, %v5525_v15  ;;  %5546 = vst.msk [vmem:[%s9172_s16 + $0x1d] sm:$0x1] %vm877_vm3, %v5525_v15  ;;  %5547 = vst.msk [vmem:[%s9172_s16 + $0x2d] sm:$0x1] %vm877_vm3, %v5533_v5 }
0x1054   : > { %5549 = vst.msk [vmem:[%s9172_s16 + $0x4d] sm:$0x1] %vm877_vm3, %v5518_v27  ;;  %v5692_v34 = vadd.f32 %v6999_v32, %v5638_v21  ;;  %v5691_v28 = vadd.f32 %v6998_v4, %v5633_v9  ;;  %v7940_v58 = vpop.f32.mrb[100].mxu0 }
0x1055   : > { %v5536_v49 = vcombine.high %v5532_v53, %v5532_v53  ;;  %5548 = vst.msk [vmem:[%s9172_s16 + $0x3d] sm:$0x1] %vm877_vm3, %v5535_v43  ;;  %5550 = vst.msk [vmem:[%s9172_s16 + $0x5d] sm:$0x1] %vm877_vm3, %v5532_v53  ;;  %v5648_v48 = vadd.f32 %v7940_v58, %v9322_v41  ;;  %v5642_v46 = vpop.f32.mrb[101].mxu0 }
0x1056   : > { %5551 = vst.msk [vmem:[%s9172_s16 + $0x6d] sm:$0x1] %vm877_vm3, %v5534_v45  ;;  %v7023_v50 = vmul.f32 -1.442695, %v5692_v34  ;;  %v7022_v62 = vmul.f32 -1.442695, %v5691_v28  ;;  %v5643_v55 = vadd.f32 %v5642_v46, %v9318_v39 }
0x1057   : > { %5552 = vst.msk [vmem:[%s9172_s16 + $0x7d] sm:$0x1] %vm877_vm3, %v5536_v49  ;;  %v5694_v16 = vadd.f32 %v7001_v1, %v5648_v48 }
0x1058   : > { %8850 = vpow2.f32 %v7023_v50  ;;  %v5693_v17 = vadd.f32 %v7000_v52, %v5643_v55  ;;  %v7943_v33 = vpop.f32.mrb[102].mxu0 }
0x1059   : > { %8852 = vpow2.f32 %v7022_v62  ;;  %v7025_v29 = vmul.f32 -1.442695, %v5694_v16  ;;  %v5658_v26 = vadd.f32 %v7943_v33, %v9331_v56  ;;  %v5652_v22 = vpop.f32.mrb[103].mxu0 }
0x105a   : > { %v7024_v11 = vmul.f32 -1.442695, %v5693_v17  ;;  %v5653_v57 = vadd.f32 %v5652_v22, %v9334_v59 }
0x105b   : > { %8854 = vpow2.f32 %v7025_v29  ;;  %v5720_v30 = vadd.f32 %v7003_v63, %v5658_v26  ;;  %v7007_v63 = vld [vmem:[%s9170_s28 + $0x588] sm:$0xff] }
0x105c   : > { %8856 = vpow2.f32 %v7024_v11  ;;  %v5719_v13 = vadd.f32 %v7002_v35, %v5653_v57  ;;  %v7946_v8 = vpop.f32.mrb[104].mxu0  ;;  %v7006_v35 = vld [vmem:[%s9170_s28 + $0x580] sm:$0xff] }
0x105d   : > { %v7027_v3 = vmul.f32 -1.442695, %v5720_v30  ;;  %v5668_v0 = vadd.f32 %v7946_v8, %v9340_v12  ;;  %v5662_v10 = vpop.f32.mrb[105].mxu0 }
0x105e   : > { %v7026_v23 = vmul.f32 -1.442695, %v5719_v13  ;;  %v5663_v19 = vadd.f32 %v5662_v10, %v9343_v18  ;;  %v7009_v13 = vld [vmem:[%s9170_s28 + $0x598] sm:$0xff] }
0x105f   : > { %8858 = vpow2.f32 %v7027_v3  ;;  %v5722_v42 = vadd.f32 %v7005_v31, %v5668_v0 }
0x1060   : > { %8860 = vpow2.f32 %v7026_v23  ;;  %v5721_v37 = vadd.f32 %v7004_v25, %v5663_v19  ;;  %v7949_v27 = vpop.f32.mrb[106].mxu0  ;;  %v7008_v25 = vld [vmem:[%s9170_s28 + $0x590] sm:$0xff] }
0x1061   : > { %v7029_v15 = vmul.f32 -1.442695, %v5722_v42  ;;  %v5672_v5 = vpop.f32.mrb[107].mxu0  ;;  %v5678_v55 = vadd.f32 %v7949_v27, %v9348_v60 }
0x1062   : > { %v8851_v32 = vpop.eup %8850  ;;  %v7028_v4 = vmul.f32 -1.442695, %v5721_v37  ;;  %v5673_v33 = vadd.f32 %v5672_v5, %v9350_v61 }
0x1063   : > { %v8853_v6 = vpop.eup %8852  ;;  %v5708_v21 = vadd.f32 1.0, %v8851_v32  ;;  %8862 = vpow2.f32 %v7029_v15 }
0x1064   : > { %v5707_v9 = vadd.f32 1.0, %v8853_v6  ;;  %8864 = vpow2.f32 %v7028_v4  ;;  %v7952_v53 = vpop.f32.mrb[108].mxu0 }
0x1065   : > { %v8855_v45 = vpop.eup %8854  ;;  %8866 = vrcp.f32 %v5708_v21  ;;  %v5682_v43 = vpop.f32.mrb[109].mxu0  ;;  %v5688_v11 = vadd.f32 %v7952_v53, %v9356_v20 }
0x1066   : > { %v8857_v34 = vpop.eup %8856  ;;  %8868 = vrcp.f32 %v5707_v9  ;;  %v5710_v28 = vadd.f32 1.0, %v8855_v45  ;;  %v5683_v31 = vadd.f32 %v5682_v43, %v9358_v24 }
0x1067   : > { %v5709_v1 = vadd.f32 1.0, %v8857_v34 }
0x1068   : > { %8870 = vrcp.f32 %v5710_v28 }
0x1069   : > { %v8859_v58 = vpop.eup %8858  ;;  %8872 = vrcp.f32 %v5709_v1 }
0x106a   : > { %v8861_v49 = vpop.eup %8860  ;;  %v5736_v48 = vadd.f32 1.0, %v8859_v58 }
0x106b   : > { %v5735_v46 = vadd.f32 1.0, %v8861_v49 }
0x106c   : > { %8874 = vrcp.f32 %v5736_v48 }
0x106d   : > { %v8863_v52 = vpop.eup %8862  ;;  %8876 = vrcp.f32 %v5735_v46 }
0x106e   : > { %v8865_v50 = vpop.eup %8864  ;;  %v5738_v62 = vadd.f32 1.0, %v8863_v52 }
0x106f   : > { %v8867_v16 = vpop.eup %8866  ;;  %v5737_v17 = vadd.f32 1.0, %v8865_v50 }
0x1070   : > { %v8869_v29 = vpop.eup %8868  ;;  %v5748_v26 = vmul.f32 %v8867_v16, %v5678_v55  ;;  %8878 = vrcp.f32 %v5738_v62  ;;  %v8984_v16 = vld [vmem:[%s11139_s1 + $0x10] sm:$0xff] }
0x1071   : > { %v5747_v22 = vmul.f32 %v8869_v29, %v5673_v33  ;;  %8880 = vrcp.f32 %v5737_v17  ;;  %v8986_v17 = vld [vmem:[%s11139_s1 + $0x20] sm:$0xff]  ;;  %v8988_v33 = vld [vmem:[%s11139_s1 + $0x30] sm:$0xff]  ;;  %v8989_v29 = vld [vmem:[%s11139_s1 + $0x38] sm:$0xff] }
0x1072   : > { %v8871_v57 = vpop.eup %8870  ;;  %v5752_v30 = vadd.f32 %v7007_v63, %v5748_v26  ;;  %v8987_v63 = vld [vmem:[%s11139_s1 + $0x28] sm:$0xff]  ;;  %v8990_v26 = vld [vmem:[%s11139_s1 + $0x40] sm:$0xff] }
0x1073   : > { %v8873_v8 = vpop.eup %8872  ;;  %v5751_v3 = vadd.f32 %v7006_v35, %v5747_v22  ;;  %v5750_v0 = vmul.f32 %v8871_v57, %v5688_v11  ;;  %v8991_v35 = vld [vmem:[%s11139_s1 + $0x48] sm:$0xff]  ;;  %v8992_v22 = vld [vmem:[%s11139_s1 + $0x50] sm:$0xff]  ;;  %v8993_v11 = vld [vmem:[%s11139_s1 + $0x58] sm:$0xff] }
0x1074   : > { %8882 = vtanh.f32 %v5752_v30  ;;  %v5749_v10 = vmul.f32 %v8873_v8, %v5683_v31 }
0x1075   : > { %8884 = vtanh.f32 %v5751_v3  ;;  %v5754_v23 = vadd.f32 %v7009_v13, %v5750_v0 }
0x1076   : > { %v5753_v19 = vadd.f32 %v7008_v25, %v5749_v10  ;;  %v8875_v42 = vpop.eup %8874 }
0x1077   : > { %8886 = vtanh.f32 %v5754_v23  ;;  %v8877_v37 = vpop.eup %8876  ;;  %v5760_v5 = vsub.f32 1.0, %v8875_v42  ;;  %v5768_v9 = vmul.f32 %v8875_v42, %v10844_v54 }
0x1078   : > { %8888 = vtanh.f32 %v5753_v19  ;;  %v5759_v4 = vsub.f32 1.0, %v8877_v37  ;;  %v5767_v45 = vmul.f32 %v8877_v37, %v10846_v14 }
0x107a   : > { %v8879_v27 = vpop.eup %8878 }
0x107b   : > { %v8881_v15 = vpop.eup %8880  ;;  %v5762_v43 = vsub.f32 1.0, %v8879_v27  ;;  %v5770_v52 = vmul.f32 %v8879_v27, %v10852_v51  ;;  %v8982_v51 = vld [vmem:[%s11139_s1] sm:$0xff] }
0x107c   : > { %v5761_v1 = vsub.f32 1.0, %v8881_v15  ;;  %v5769_v50 = vmul.f32 %v8881_v15, %v10854_v7  ;;  %v8983_v7 = vld [vmem:[%s11139_s1 + $0x8] sm:$0xff] }
0x107d   : > { %v7032_v15 = vld [vmem:[%s9170_s28 + $0x5a8] sm:$0xff] }
0x107e   : > { %v8883_v32 = vpop.eup %8882 }
0x107f   : > { %v8885_v6 = vpop.eup %8884  ;;  %v5764_v21 = vmul.f32 %v8883_v32, %v5760_v5  ;;  %v7031_v5 = vld [vmem:[%s9170_s28 + $0x5a0] sm:$0xff] }
0x1080   : > { %v5763_v53 = vmul.f32 %v8885_v6, %v5759_v4 }
0x1081   : > { %v8887_v34 = vpop.eup %8886  ;;  %v10937_v28 = vadd.f32 %v5768_v9, %v5764_v21 }
0x1082   : > { %v8889_v58 = vpop.eup %8888  ;;  %v10939_v49 = vadd.f32 %v5767_v45, %v5763_v53  ;;  %v5766_v48 = vmul.f32 %v8887_v34, %v5762_v43  ;;  %v7034_v34 = vld [vmem:[%s9170_s28 + $0x5b8] sm:$0xff] }
0x1083   : > { %v5765_v46 = vmul.f32 %v8889_v58, %v5761_v1  ;;  %v7033_v58 = vld [vmem:[%s9170_s28 + $0x5b0] sm:$0xff] }
0x1084   : > { %v8206_v54 = vpack.c.bf16 %v10937_v28, %v10939_v49  ;;  %v10945_v62 = vadd.f32 %v5770_v52, %v5766_v48 }
0x1085   : > { %v10947_v14 = vadd.f32 %v5769_v50, %v5765_v46 }
0x1086   : > { %8207 = vmatpush3.bf16.msra.mxu1 %v8206_v54 }
0x1087   : > { %8208 = vmatprep.subr.bf16.mxu1 %v9052_v36  ;;  %v8209_v55 = vpack.c.bf16 %v10945_v62, %v10947_v14 }
0x108a   : > { %8210 = vmatpush3.bf16.msra.mxu1 %v8209_v55 }
0x108b   : > { %8212 = vmatprep.subr.bf16.mxu1 %v8206_v54 }
0x108d   : > { %7962 = vmatmul.mubr.msk.f32.vlgmr.msra.gmra.mrb[98].mxu1 %vm494_vm1, %v10764_v2  ;;  %v8985_v2 = vld [vmem:[%s11139_s1 + $0x18] sm:$0xff] }
0x108e   : > { %8214 = vmatpush3.bf16.msra.mxu1 %v8206_v54  ;;  %7972 = vmatprep.mubr.msk.f32.mxu1 %vm494_vm1, %v8982_v51  ;;  %v7036_v51 = vld [vmem:[%s9170_s28 + $0x5c8] sm:$0xff] }
0x108f   : > { %8216 = vmatprep.subr.bf16.mxu1 %v8209_v55 }
0x1092   : > { %8218 = vmatpush3.bf16.msra.mxu1 %v8209_v55 }
0x1095   : > { %7973 = vmatmul.mubr.msk.f32.vlgmr.msra.gmra.mrb[100].mxu1 %vm494_vm1, %v8983_v7 }
0x1096   : > { %7975 = vmatprep.mubr.msk.f32.mxu1 %vm494_vm1, %v8984_v16 }
0x1099   : > { %7976 = vmatmul.mubr.msk.f32.gmra.mrb[102].mxu1 %vm494_vm1, %v8985_v2 }
0x109a   : > { %7978 = vmatprep.mubr.msk.f32.mxu1 %vm494_vm1, %v8986_v17 }
0x109d   : > { %7979 = vmatmul.mubr.msk.f32.gmra.mrb[104].mxu1 %vm494_vm1, %v8987_v63 }
0x109e   : > { %7981 = vmatprep.mubr.msk.f32.mxu1 %vm494_vm1, %v8988_v33 }
0x10a1   : > { %7982 = vmatmul.mubr.msk.f32.gmra.mrb[106].mxu1 %vm494_vm1, %v8989_v29 }
0x10a2   : > { %7984 = vmatprep.mubr.msk.f32.mxu1 %vm494_vm1, %v8990_v26  ;;  %v7038_v26 = vld [vmem:[%s9170_s28 + $0x5d8] sm:$0xff] }
0x10a5   : > { %7985 = vmatmul.mubr.msk.f32.gmra.mrb[108].mxu1 %vm494_vm1, %v8991_v35 }
0x10a6   : > { %7987 = vmatprep.mubr.msk.f32.mxu1 %vm494_vm1, %v8992_v22 }
0x10a9   : > { %7988 = vmatmul.mubr.msk.f32.gmra.mrb[110].mxu1 %vm494_vm1, %v8993_v11 }
0x1160   : > { %v5841_v57 = vpop.f32.mrb[98].mxu1 }
0x1161   : > { %v5842_v30 = vadd.f32 %v5841_v57, %v9415_v44  ;;  %v7963_v13 = vpop.f32.mrb[99].mxu1  ;;  %v7037_v57 = vld [vmem:[%s9170_s28 + $0x5d0] sm:$0xff] }
0x1163   : > { %v5845_v31 = vmax.f32 %v5842_v30, 0.0 }
0x1165   : > { %v5847_v8 = vcombine.high %v5845_v31, %v5845_v31  ;;  %v5854_v3 = vrot.slane %v5845_v31, %v9418_v47 }
0x1167   : > { %v5861_v0 = vrot.slane %v5847_v8, %v9418_v47  ;;  %v5862_v25 = vcombine.high %v5854_v3, %v5854_v3  ;;  %v5870_v10 = vrot.slane %v5854_v3, %v9418_v47 }
0x1168   : > { %v7974_v23 = vpop.f32.mrb[100].mxu1 }
0x1169   : > { %v5863_v19 = vcombine.high %v5861_v0, %v5861_v0  ;;  %v5877_v42 = vrot.slane %v5861_v0, %v9418_v47  ;;  %v5884_v37 = vrot.slane %v5862_v25, %v9418_v47  ;;  %v5892_v27 = vcombine.high %v5870_v10, %v5870_v10  ;;  %5904 = vst.msk [vmem:[%s9172_s16 + $0xe] sm:$0x1] %vm877_vm3, %v5870_v10  ;;  %v5991_v32 = vpop.f32.mrb[101].mxu1 }
0x116a   : > { %v5997_v4 = vadd.f32 %v7974_v23, %v9320_v40  ;;  %v5992_v6 = vadd.f32 %v5991_v32, %v9316_v38 }
0x116b   : > { %v5891_v21 = vrot.slane %v5863_v19, %v9418_v47  ;;  %v5893_v9 = vcombine.high %v5877_v42, %v5877_v42  ;;  %v5894_v53 = vcombine.high %v5884_v37, %v5884_v37  ;;  %5905 = vst.msk [vmem:[%s9172_s16 + $0x1e] sm:$0x1] %vm877_vm3, %v5884_v37  ;;  %5906 = vst.msk [vmem:[%s9172_s16 + $0x2e] sm:$0x1] %vm877_vm3, %v5892_v27 }
0x116c   : > { %5908 = vst.msk [vmem:[%s9172_s16 + $0x4e] sm:$0x1] %vm877_vm3, %v5877_v42  ;;  %v6051_v45 = vadd.f32 %v7032_v15, %v5997_v4  ;;  %v6050_v43 = vadd.f32 %v7031_v5, %v5992_v6  ;;  %v7977_v1 = vpop.f32.mrb[102].mxu1 }
0x116d   : > { %v5895_v40 = vcombine.high %v5891_v21, %v5891_v21  ;;  %5907 = vst.msk [vmem:[%s9172_s16 + $0x3e] sm:$0x1] %vm877_vm3, %v5894_v53  ;;  %5909 = vst.msk [vmem:[%s9172_s16 + $0x5e] sm:$0x1] %vm877_vm3, %v5891_v21  ;;  %v6007_v38 = vadd.f32 %v7977_v1, %v9322_v41  ;;  %v6001_v48 = vpop.f32.mrb[103].mxu1  ;;  %v7035_v41 = vld [vmem:[%s9170_s28 + $0x5c0] sm:$0xff] }
0x116e   : > { %5910 = vst.msk [vmem:[%s9172_s16 + $0x6e] sm:$0x1] %vm877_vm3, %v5893_v9  ;;  %v7056_v52 = vmul.f32 -1.442695, %v6051_v45  ;;  %v7055_v46 = vmul.f32 -1.442695, %v6050_v43  ;;  %v6002_v50 = vadd.f32 %v6001_v48, %v9318_v39 }
0x116f   : > { %5911 = vst.msk [vmem:[%s9172_s16 + $0x7e] sm:$0x1] %vm877_vm3, %v5895_v40  ;;  %v6053_v54 = vadd.f32 %v7034_v34, %v6007_v38  ;;  %v7040_v40 = vld [vmem:[%s9170_s28 + $0x5e8] sm:$0xff] }
0x1170   : > { %8890 = vpow2.f32 %v7056_v52  ;;  %v6052_v55 = vadd.f32 %v7033_v58, %v6002_v50  ;;  %v7980_v7 = vpop.f32.mrb[104].mxu1  ;;  %v7039_v52 = vld [vmem:[%s9170_s28 + $0x5e0] sm:$0xff] }
0x1171   : > { %8892 = vpow2.f32 %v7055_v46  ;;  %v7058_v16 = vmul.f32 -1.442695, %v6053_v54  ;;  %v6017_v2 = vadd.f32 %v7980_v7, %v9331_v56  ;;  %v6011_v17 = vpop.f32.mrb[105].mxu1 }
0x1172   : > { %v7057_v63 = vmul.f32 -1.442695, %v6052_v55  ;;  %v6012_v33 = vadd.f32 %v6011_v17, %v9334_v59 }
0x1173   : > { %8894 = vpow2.f32 %v7058_v16  ;;  %v6079_v39 = vadd.f32 %v7036_v51, %v6017_v2  ;;  %v7042_v51 = vld [vmem:[%s9170_s28 + $0x5f8] sm:$0xff] }
0x1174   : > { %8896 = vpow2.f32 %v7057_v63  ;;  %v6078_v29 = vadd.f32 %v7035_v41, %v6012_v33  ;;  %v7983_v35 = vpop.f32.mrb[106].mxu1 }
0x1175   : > { %v7060_v22 = vmul.f32 -1.442695, %v6079_v39  ;;  %v6027_v11 = vadd.f32 %v7983_v35, %v9340_v12  ;;  %v6021_v30 = vpop.f32.mrb[107].mxu1 }
0x1176   : > { %v7059_v13 = vmul.f32 -1.442695, %v6078_v29  ;;  %v6022_v31 = vadd.f32 %v6021_v30, %v9343_v18 }
0x1177   : > { %8898 = vpow2.f32 %v7060_v22  ;;  %v6081_v56 = vadd.f32 %v7038_v26, %v6027_v11 }
0x1178   : > { %8900 = vpow2.f32 %v7059_v13  ;;  %v6080_v8 = vadd.f32 %v7037_v57, %v6022_v31  ;;  %v7986_v3 = vpop.f32.mrb[108].mxu1 }
0x1179   : > { %v7062_v59 = vmul.f32 -1.442695, %v6081_v56  ;;  %v6031_v0 = vpop.f32.mrb[109].mxu1  ;;  %v6037_v43 = vadd.f32 %v7986_v3, %v9348_v60 }
0x117a   : > { %v8891_v25 = vpop.eup %8890  ;;  %v7061_v10 = vmul.f32 -1.442695, %v6080_v8  ;;  %v6032_v38 = vadd.f32 %v6031_v0, %v9350_v61  ;;  %v7041_v61 = vld [vmem:[%s9170_s28 + $0x5f0] sm:$0xff] }
0x117b   : > { %v8893_v23 = vpop.eup %8892  ;;  %v6067_v19 = vadd.f32 1.0, %v8891_v25  ;;  %8902 = vpow2.f32 %v7062_v59 }
0x117c   : > { %v6066_v42 = vadd.f32 1.0, %v8893_v23  ;;  %8904 = vpow2.f32 %v7061_v10  ;;  %v7989_v12 = vpop.f32.mrb[110].mxu1 }
0x117d   : > { %v8895_v37 = vpop.eup %8894  ;;  %8906 = vrcp.f32 %v6067_v19  ;;  %v6041_v27 = vpop.f32.mrb[111].mxu1  ;;  %v6047_v50 = vadd.f32 %v7989_v12, %v9356_v20 }
0x117e   : > { %v8897_v15 = vpop.eup %8896  ;;  %8908 = vrcp.f32 %v6066_v42  ;;  %v6069_v18 = vadd.f32 1.0, %v8895_v37  ;;  %v6042_v60 = vadd.f32 %v6041_v27, %v9358_v24 }
0x117f   : > { %v6068_v5 = vadd.f32 1.0, %v8897_v15 }
0x1180   : > { %8910 = vrcp.f32 %v6069_v18 }
0x1181   : > { %v8899_v32 = vpop.eup %8898  ;;  %8912 = vrcp.f32 %v6068_v5 }
0x1182   : > { %v8901_v4 = vpop.eup %8900  ;;  %v6095_v6 = vadd.f32 1.0, %v8899_v32 }
0x1183   : > { %v6094_v9 = vadd.f32 1.0, %v8901_v4 }
0x1184   : > { %8914 = vrcp.f32 %v6095_v6 }
0x1185   : > { %v8903_v21 = vpop.eup %8902  ;;  %8916 = vrcp.f32 %v6094_v9 }
0x1186   : > { %v8905_v53 = vpop.eup %8904  ;;  %v6097_v45 = vadd.f32 1.0, %v8903_v21 }
0x1187   : > { %v8907_v34 = vpop.eup %8906  ;;  %v6096_v1 = vadd.f32 1.0, %v8905_v53 }
0x1188   : > { %v8909_v58 = vpop.eup %8908  ;;  %v6107_v48 = vmul.f32 %v8907_v34, %v6037_v43  ;;  %8918 = vrcp.f32 %v6097_v45 }
0x1189   : > { %v6106_v46 = vmul.f32 %v8909_v58, %v6032_v38  ;;  %8920 = vrcp.f32 %v6096_v1 }
0x118a   : > { %v8911_v54 = vpop.eup %8910  ;;  %v6111_v55 = vadd.f32 %v7040_v40, %v6107_v48 }
0x118b   : > { %v8913_v7 = vpop.eup %8912  ;;  %v6110_v16 = vadd.f32 %v7039_v52, %v6106_v46  ;;  %v6109_v2 = vmul.f32 %v8911_v54, %v6047_v50 }
0x118c   : > { %8922 = vtanh.f32 %v6111_v55  ;;  %v6108_v41 = vmul.f32 %v8913_v7, %v6042_v60 }
0x118d   : > { %8924 = vtanh.f32 %v6110_v16  ;;  %v6113_v17 = vadd.f32 %v7042_v51, %v6109_v2 }
0x118e   : > { %v6112_v63 = vadd.f32 %v7041_v61, %v6108_v41  ;;  %v8915_v33 = vpop.eup %8914 }
0x118f   : > { %8926 = vtanh.f32 %v6113_v17  ;;  %v8917_v20 = vpop.eup %8916  ;;  %v6119_v26 = vsub.f32 1.0, %v8915_v33  ;;  %v6127_v57 = vmul.f32 %v8915_v33, %v10937_v28 }
0x1190   : > { %8928 = vtanh.f32 %v6112_v63  ;;  %v6118_v22 = vsub.f32 1.0, %v8917_v20  ;;  %v6126_v13 = vmul.f32 %v8917_v20, %v10939_v49 }
0x1192   : > { %v8919_v39 = vpop.eup %8918 }
0x1193   : > { %v8921_v29 = vpop.eup %8920  ;;  %v6121_v31 = vsub.f32 1.0, %v8919_v39  ;;  %v6129_v10 = vmul.f32 %v8919_v39, %v10945_v62  ;;  %v8994_v62 = vld [vmem:[%s11141_s3] sm:$0xff] }
0x1194   : > { %v6120_v3 = vsub.f32 1.0, %v8921_v29  ;;  %v6128_v19 = vmul.f32 %v8921_v29, %v10947_v14 }
0x1196   : > { %v8923_v35 = vpop.eup %8922 }
0x1197   : > { %v8925_v24 = vpop.eup %8924  ;;  %v6123_v11 = vmul.f32 %v8923_v35, %v6119_v26 }
0x1198   : > { %v6122_v30 = vmul.f32 %v8925_v24, %v6118_v22 }
0x1199   : > { %v8927_v56 = vpop.eup %8926  ;;  %v6131_v8 = vadd.f32 %v6127_v57, %v6123_v11 }
0x119a   : > { %v8929_v59 = vpop.eup %8928  ;;  %v6130_v0 = vadd.f32 %v6126_v13, %v6122_v30  ;;  %v6125_v25 = vmul.f32 %v8927_v56, %v6121_v31 }
0x119b   : > { %6273 = vst.msk [vmem:[#allocation2 + $0x8] sm:$0xff] %vm6271_vm4, %v6131_v8  ;;  %v6124_v23 = vmul.f32 %v8929_v59, %v6120_v3  ;;  %6281 = vst.msk [vmem:[%s9165_s9 + $0x8] sm:$0xff] (!%p7064_p12), %vm6271_vm4, %v6131_v8 }
0x119c   : > { %v8220_v42 = vpack.c.bf16 %v6131_v8, %v6130_v0  ;;  %6272 = vst.msk [vmem:[#allocation2] sm:$0xff] %vm6271_vm4, %v6130_v0  ;;  %v6133_v28 = vadd.f32 %v6129_v10, %v6125_v25  ;;  %6280 = vst.msk [vmem:[%s9165_s9] sm:$0xff] (!%p7064_p12), %vm6271_vm4, %v6130_v0 }
0x119d   : > { %v6132_v49 = vadd.f32 %v6128_v19, %v6124_v23 }
0x119e   : > { %8221 = vmatpush3.bf16.msra.mxu0 %v8220_v42  ;;  %6275 = vst.msk [vmem:[#allocation2 + $0x18] sm:$0xff] %vm6271_vm4, %v6133_v28  ;;  %6283 = vst.msk [vmem:[%s9165_s9 + $0x18] sm:$0xff] (!%p7064_p12), %vm6271_vm4, %v6133_v28 }
0x119f   : > { %8222 = vmatprep.subr.bf16.mxu0 %v9052_v36  ;;  %v8223_v12 = vpack.c.bf16 %v6133_v28, %v6132_v49  ;;  %6274 = vst.msk [vmem:[#allocation2 + $0x10] sm:$0xff] %vm6271_vm4, %v6132_v49  ;;  %6282 = vst.msk [vmem:[%s9165_s9 + $0x10] sm:$0xff] (!%p7064_p12), %vm6271_vm4, %v6132_v49 }
0x11a2   : > { %8224 = vmatpush3.bf16.msra.mxu0 %v8223_v12 }
0x11a5   : > { %7999 = vmatmul.mubr.msk.f32.vlgmr.msra.gmra.mrb[110].mxu0 %vm494_vm1, %v8994_v62 }
0x1278   : > { %v6200_v14 = vpop.f32.mrb[110].mxu0 }
0x1279   : > { %v6201_v37 = vadd.f32 %v6200_v14, %v9415_v44  ;;  %v8000_v27 = vpop.f32.mrb[111].mxu0 }
0x127b   : > { %v6204_v15 = vmax.f32 %v6201_v37, 0.0 }
0x127d   : > { %v6206_v36 = vcombine.high %v6204_v15, %v6204_v15  ;;  %v6213_v18 = vrot.slane %v6204_v15, %v9418_v47 }
0x127f   : > { %v6220_v5 = vrot.slane %v6206_v36, %v9418_v47  ;;  %v6221_v32 = vcombine.high %v6213_v18, %v6213_v18  ;;  %v6229_v4 = vrot.slane %v6213_v18, %v9418_v47 }
0x1281   : > { %v6222_v6 = vcombine.high %v6220_v5, %v6220_v5  ;;  %v6236_v44 = vrot.slane %v6220_v5, %v9418_v47  ;;  %v6243_v21 = vrot.slane %v6221_v32, %v9418_v47  ;;  %v6251_v9 = vcombine.high %v6229_v4, %v6229_v4  ;;  %6263 = vst.msk [vmem:[%s9172_s16 + $0xf] sm:$0x1] %vm877_vm3, %v6229_v4  ;;  %6279 = sbr.rel (%p7064_p12) target bundleno = 4744 (0x1288), region = 52 }
0x1283   : > { %v6250_v53 = vrot.slane %v6222_v6, %v9418_v47  ;;  %v6252_v45 = vcombine.high %v6236_v44, %v6236_v44  ;;  %v6253_v43 = vcombine.high %v6243_v21, %v6243_v21  ;;  %6264 = vst.msk [vmem:[%s9172_s16 + $0x1f] sm:$0x1] %vm877_vm3, %v6243_v21  ;;  %6265 = vst.msk [vmem:[%s9172_s16 + $0x2f] sm:$0x1] %vm877_vm3, %v6251_v9 }
0x1284   : > { %6267 = vst.msk [vmem:[%s9172_s16 + $0x4f] sm:$0x1] %vm877_vm3, %v6236_v44 }
0x1285   : > { %v6254_v34 = vcombine.high %v6250_v53, %v6250_v53  ;;  %6266 = vst.msk [vmem:[%s9172_s16 + $0x3f] sm:$0x1] %vm877_vm3, %v6253_v43  ;;  %6268 = vst.msk [vmem:[%s9172_s16 + $0x5f] sm:$0x1] %vm877_vm3, %v6250_v53 }
0x1286   : > { %6269 = vst.msk [vmem:[%s9172_s16 + $0x6f] sm:$0x1] %vm877_vm3, %v6252_v45 }
0x1287   : > { %6270 = vst.msk [vmem:[%s9172_s16 + $0x7f] sm:$0x1] %vm877_vm3, %v6254_v34 }
0x1288 PF: > { %6298 = sbr.rel (!%p9142_p5) target bundleno = 4757 (0x1295), region = 56  ;;  %s7066_s8 = sshll.u32 (%p9142_p5), %s9033_s26, 1  ;;  %v6362_v47 = vld [vmem:[%s9172_s16] sm:$0xff] (%p9142_p5)  ;;  %v6364_v1 = vld [vmem:[%s9172_s16 + $0x8] sm:$0xff] (%p9142_p5)  ;;  %v6366_v40 = vld [vmem:[%s9172_s16 + $0x10] sm:$0xff] (%p9142_p5) }
0x1289   : > { %s7067_s9 = sshll.u32 (%p9142_p5), %s9037_s27, 5  ;;  %v6370_v58 = vld [vmem:[%s9172_s16 + $0x20] sm:$0xff] (%p9142_p5)  ;;  %v6374_v52 = vld [vmem:[%s9172_s16 + $0x30] sm:$0xff] (%p9142_p5) }
0x128a   : > { %s6302_s12 = sadd.s32 (%p9142_p5), %s7067_s9, %s7066_s8  ;;  %v6368_v38 = vld [vmem:[%s9172_s16 + $0x18] sm:$0xff] (%p9142_p5)  ;;  %v6372_v48 = vld [vmem:[%s9172_s16 + $0x28] sm:$0xff] (%p9142_p5)  ;;  %v6378_v50 = vld [vmem:[%s9172_s16 + $0x40] sm:$0xff] (%p9142_p5) }
0x128b   : > { %s7068_s18 = sshll.u32 (%p9142_p5), %s6302_s12, 3  ;;  %v6380_v54 = vld [vmem:[%s9172_s16 + $0x48] sm:$0xff] (%p9142_p5)  ;;  %v6382_v55 = vld [vmem:[%s9172_s16 + $0x50] sm:$0xff] (%p9142_p5)  ;;  %v6386_v60 = vld [vmem:[%s9172_s16 + $0x60] sm:$0xff] (%p9142_p5) }
0x128c   : > { %v6376_v46 = vld [vmem:[%s9172_s16 + $0x38] sm:$0xff] (%p9142_p5)  ;;  %s6304_s21 = scalar_lea.vmem (%p9142_p5), %s11144_s6, %s7068_s18  ;;  %v6390_v16 = vld [vmem:[%s9172_s16 + $0x70] sm:$0xff] (%p9142_p5) }
0x128d   : > { %v6384_v51 = vld [vmem:[%s9172_s16 + $0x58] sm:$0xff] (%p9142_p5)  ;;  %6363 = vst [vmem:[%s6304_s21] sm:$0xff] (%p9142_p5), %v6362_v47  ;;  %6365 = vst [vmem:[%s6304_s21 + $0x8] sm:$0xff] (%p9142_p5), %v6364_v1  ;;  %v6388_v7 = vld [vmem:[%s9172_s16 + $0x68] sm:$0xff] (%p9142_p5) }
0x128e   : > { %6367 = vst [vmem:[%s6304_s21 + $0x20] sm:$0xff] (%p9142_p5), %v6366_v40  ;;  %6369 = vst [vmem:[%s6304_s21 + $0x28] sm:$0xff] (%p9142_p5), %v6368_v38  ;;  %v6392_v2 = vld [vmem:[%s9172_s16 + $0x78] sm:$0xff] (%p9142_p5) }
0x128f   : > { %6371 = vst [vmem:[%s6304_s21 + $0x40] sm:$0xff] %v6370_v58  ;;  %6373 = vst [vmem:[%s6304_s21 + $0x48] sm:$0xff] %v6372_v48 }
0x1290   : > { %6375 = vst [vmem:[%s6304_s21 + $0x60] sm:$0xff] %v6374_v52  ;;  %6377 = vst [vmem:[%s6304_s21 + $0x68] sm:$0xff] %v6376_v46 }
0x1291   : > { %6379 = vst [vmem:[%s6304_s21 + $0x80] sm:$0xff] %v6378_v50  ;;  %6381 = vst [vmem:[%s6304_s21 + $0x88] sm:$0xff] %v6380_v54 }
0x1292   : > { %6383 = vst [vmem:[%s6304_s21 + $0xa0] sm:$0xff] %v6382_v55  ;;  %6385 = vst [vmem:[%s6304_s21 + $0xa8] sm:$0xff] %v6384_v51 }
0x1293   : > { %6387 = vst [vmem:[%s6304_s21 + $0xc0] sm:$0xff] %v6386_v60  ;;  %6389 = vst [vmem:[%s6304_s21 + $0xc8] sm:$0xff] %v6388_v7 }
0x1294   : > { %6391 = vst [vmem:[%s6304_s21 + $0xe0] sm:$0xff] %v6390_v16  ;;  %6393 = vst [vmem:[%s6304_s21 + $0xe8] sm:$0xff] %v6392_v2 }
0x1295 PF: > { %s18_s30 = sadd.s32 1, %s9049_s30   ;;  %s11156_s26 = sld [smem:[#allocation8_spill]] }
0x1296   : > { %p15_p13 = scmp.ge.s32.totalorder %s18_s30, 6   ;;  %s11157_s27 = sld [smem:[#allocation4_spill]] }
0x1297   : > { %s11158_s22 = sld [smem:[#allocation5_spill]]  ;;  %s11159_s28 = sld [smem:[#allocation6_spill]] }
0x1298   : > { %s11160_s29 = sld [smem:[#allocation7_spill]]  ;;  %s11161_s24 = smov %s9029_s25 }
0x1299   :  { %17 = sbr.rel (!%p15_p13) target bundleno = 4 (0x4), region = 150 }
0x129b   : > { %s11162_s25 = smov %s11156_s26 }
0x129c   : > { %s11163_s26 = smov %s11157_s27 }
0x129d   : > { %s11164_s27 = smov %s11158_s22 }

</bundles_post_ra>
